<compile_context>
chip_gen: v7x
topology: tpu7x:2x2x1
jax: 0.10.0
libtpu: 0.0.40
codegen_flags: <defaults>
</compile_context>

<pallas_src>
import numpy as np
import jax
import jax.numpy as jnp
from jax.experimental import pallas as pl
from jax.experimental.pallas import tpu as pltpu

LEAKY_SLOPE = 0.01
BN_EPS = 1e-5


def cdiv(a, b):
    return (a + b - 1) // b


def round_up(a, b):
    return cdiv(a, b) * b


# ----------------------------------------------------------------------------
# Kernel
# ----------------------------------------------------------------------------
def make_kernel(Np, L, TE, T0, Tc, compute_dtype):
    """Grid = (num_cores, Tc).  Global tile gt = c*Tc + t; gt < T0 -> branch 0."""

    def kernel(att_ref,    # SMEM [2] f32             per-branch attention
               geo_ref,    # VMEM [G, TE] f32         streamed (transposed, dense)
               ijk_ref,    # VMEM [3, TE] int32       streamed (i, j+Np, k+2Np)
               nw0_ref,    # VMEM [2, 3*Np, Hp]       node@W0 blocks (BN folded)
               w0g_ref,    # VMEM [2, G, Hp]          geo part of layer 0
               wl_ref,     # VMEM [2*(L-1), Hp, Hp]   folded layers 1..L-1
               bl_ref,     # VMEM [2*L, Hp] f32       folded biases
               out_ref):   # VMEM [Np, Hp] f32        per-core accumulator
        c = pl.program_id(0)
        t = pl.program_id(1)
        gt = c * Tc + t
        bidx = (gt >= T0).astype(jnp.int32)        # branch-pure tile -> branch id

        @pl.when(t == 0)
        def _init():
            out_ref[...] = jnp.zeros_like(out_ref)

        # Fused gather + layer-0 node term: a single one-hot matmul over the
        # stacked row space {i, Np+j, 2Np+k} selects & sums the precomputed
        # node@W0 rows.  Padded edges carry index 3*Np -> all-zero column.
        rows3 = jax.lax.broadcasted_iota(jnp.int32, (3 * Np, TE), 0)
        oh3 = ((rows3 == ijk_ref[0:1, :]) |
               (rows3 == ijk_ref[1:2, :]) |
               (rows3 == ijk_ref[2:3, :]))
        oh3 = oh3.astype(jnp.float32).astype(compute_dtype)

        h = jax.lax.dot_general(                       # [TE, Hp], K = 3*Np
            oh3, nw0_ref[bidx],
            dimension_numbers=(((0,), (0,)), ((), ())),
            preferred_element_type=jnp.float32)
        h += jax.lax.dot_general(                      # geo @ W0g, K = G
            geo_ref[...].astype(compute_dtype), w0g_ref[bidx],
            dimension_numbers=(((0,), (0,)), ((), ())),
            preferred_element_type=jnp.float32)
        h += bl_ref[pl.ds(bidx * L, 1), :]
        h = jnp.maximum(h, 0.0)                        # ReLU (BN already folded)

        for l in range(1, L):                          # layers 1..L-1
            h = jnp.dot(h.astype(compute_dtype),
                        wl_ref[bidx * (L - 1) + (l - 1)],
                        preferred_element_type=jnp.float32)
            h += bl_ref[pl.ds(bidx * L + l, 1), :]
            h = jnp.maximum(h, 0.0)

        h = jnp.where(h >= 0.0, h, LEAKY_SLOPE * h)    # leaky_relu
        h = h * att_ref[bidx]                          # scalar per-branch attention

        # Scatter-add over i (one-hot recomputed here; exact f32 matmul).
        rows_n = jax.lax.broadcasted_iota(jnp.int32, (Np, TE), 0)
        oh_i = (rows_n == ijk_ref[0:1, :]).astype(jnp.float32)
        out_ref[...] += jnp.dot(oh_i, h, preferred_element_type=jnp.float32)

    return kernel


# ----------------------------------------------------------------------------
# Host-side parameter folding (BN eval-mode) + node@W0 precompute + padding
# ----------------------------------------------------------------------------
def _fold_params(params, node_feature, H, G, Hp, Np, use_bf16):
    f32 = jnp.float32
    gamma = params["gamma"].astype(f32)
    beta = params["beta"].astype(f32)
    mean = params["mean"].astype(f32)
    var = params["var"].astype(f32)
    w0 = params["w0"].astype(f32)      # [2, 3H+G, H]   (pre-transposed [in, out])
    w = params["w"].astype(f32)        # [2, L-1, H, H]
    b = params["b"].astype(f32)        # [2, L, H]
    L = b.shape[1]

    scale = gamma * jax.lax.rsqrt(var + BN_EPS)          # [2, L, H]
    bias = (b - mean) * scale + beta                     # [2, L, H]
    w0f = w0 * scale[:, 0][:, None, :]                   # fold BN of layer 0
    wf = w * scale[:, 1:][:, :, None, :]                 # fold BN of layers 1..

    dt = jnp.bfloat16 if use_bf16 else jnp.float32
    node = node_feature.astype(f32)                      # [N, H]
    N = node.shape[0]

    # node @ W0-block per branch, stacked on the row axis:
    #   rows [0,N)        -> x_i contribution
    #   rows [Np, Np+N)   -> x_j contribution
    #   rows [2Np, 2Np+N) -> x_k contribution
    nw0 = jnp.zeros((2, 3 * Np, Hp), f32)
    for blk in range(3):
        prod = jnp.einsum("nh,bho->bno", node,
                          w0f[:, blk * H:(blk + 1) * H, :],
                          precision=jax.lax.Precision.HIGHEST)   # [2, N, H]
        nw0 = nw0.at[:, blk * Np:blk * Np + N, :H].set(prod)
    nw0 = nw0.astype(dt)

    w0g = jnp.pad(w0f[:, 3 * H:, :],
                  ((0, 0), (0, 0), (0, Hp - H))).astype(dt)      # [2, G, Hp]
    if L > 1:
        wl = jnp.pad(wf, ((0, 0), (0, 0), (0, Hp - H), (0, Hp - H)))
        wl = wl.reshape(2 * (L - 1), Hp, Hp).astype(dt)
    else:
        wl = jnp.zeros((1, Hp, Hp), dt)                          # unused placeholder
    bl = jnp.pad(bias, ((0, 0), (0, 0), (0, Hp - H)))
    bl = bl.reshape(2 * L, Hp).astype(f32)
    return dict(nw0=nw0, w0g=w0g, wl=wl, bl=bl, L=L)


# ----------------------------------------------------------------------------
# Once-per-graph edge preparation (host side)
# ----------------------------------------------------------------------------
def prepare_edges(edge_index_2rd, geo_encoding, same_face, num_node,
                  *, edge_tile=512, num_cores=2):
    """Partition edges by `same_face` (scatter-add over i is permutation
    invariant), pad each segment to a multiple of TE, and lay out geo
    transposed [G, Ep] and indices as a [3, Ep] int32 slab."""
    N = num_node
    Np = round_up(max(N, 8), 8)
    TE = edge_tile
    assert TE % 128 == 0

    i_np = np.asarray(edge_index_2rd[0], np.int32)
    j_np = np.asarray(edge_index_2rd[1], np.int32)
    k_np = np.asarray(edge_index_2rd[2], np.int32)
    geo_np = np.asarray(geo_encoding, np.float32)
    same_np = np.asarray(same_face, bool)
    E, G = geo_np.shape

    idx0 = np.nonzero(same_np)[0]
    idx1 = np.nonzero(~same_np)[0]
    S0, S1 = idx0.size, idx1.size
    T0, T1 = cdiv(S0, TE), cdiv(S1, TE)
    T = max(T0 + T1, 1)
    Tc = cdiv(T, num_cores)                 # tiles per core
    Ep = Tc * num_cores * TE
    E0p = T0 * TE

    geo_T = np.zeros((G, Ep), np.float32)   # lane-dense streamed layout
    geo_T[:, :S0] = geo_np[idx0].T
    geo_T[:, E0p:E0p + S1] = geo_np[idx1].T

    # stacked-row indices (i, j+Np, k+2Np); padding index 3*Np selects nothing.
    ijk = np.full((3, Ep), 3 * Np, np.int32)
    for r, (arr, off) in enumerate(((i_np, 0), (j_np, Np), (k_np, 2 * Np))):
        ijk[r, :S0] = arr[idx0] + off
        ijk[r, E0p:E0p + S1] = arr[idx1] + off

    return dict(geo_T=jnp.asarray(geo_T), ijk=jnp.asarray(ijk),
                T0=T0, Tc=Tc, num_cores=num_cores, TE=TE, Np=Np, N=N, G=G)


# ----------------------------------------------------------------------------
# Forward wrapper
# ----------------------------------------------------------------------------
def spnn_forward(params, node_feature, geo_encoding, edge_index_2rd,
                 edx_jk, edx_ij, edge_whichface, att, same_face,
                 *, edges=None, edge_tile=512, num_cores=2, use_bf16=True):
    del edx_jk, edx_ij, edge_whichface          # unused by the reference forward
    N, H = node_feature.shape
    Hp = round_up(H, 128)                       # lane-dense hidden width

    if edges is None:                           # once-per-graph (review #10)
        edges = prepare_edges(edge_index_2rd, geo_encoding, same_face, N,
                              edge_tile=edge_tile, num_cores=num_cores)
    Np, TE, T0, Tc, C, G = (edges["Np"], edges["TE"], edges["T0"],
                            edges["Tc"], edges["num_cores"], edges["G"])

    folded = _fold_params(params, node_feature, H, G, Hp, Np, use_bf16)
    L = folded["L"]
    att2 = jnp.asarray(att, jnp.float32)        # (2,) scalar block -> SMEM

    compute_dtype = jnp.bfloat16 if use_bf16 else jnp.float32
    kernel = make_kernel(Np, L, TE, T0, Tc, compute_dtype)

    def resident(shape):                        # fetched once, stays in VMEM
        nd = len(shape)
        return pl.BlockSpec(shape, lambda c, t, _n=nd: (0,) * _n)

    out = pl.pallas_call(
        kernel,
        out_shape=jax.ShapeDtypeStruct((C, Np, Hp), jnp.float32),
        grid=(C, Tc),
        in_specs=[
            pl.BlockSpec(memory_space=pltpu.MemorySpace.SMEM),       # att
            pl.BlockSpec((G, TE), lambda c, t: (0, c * Tc + t)),     # geo_T
            pl.BlockSpec((3, TE), lambda c, t: (0, c * Tc + t)),     # i/j/k
            resident(folded["nw0"].shape),
            resident(folded["w0g"].shape),
            resident(folded["wl"].shape),
            resident(folded["bl"].shape),
        ],
        # per-core partial accumulator; summed in the wrapper (review #6)
        out_specs=pl.BlockSpec((None, Np, Hp), lambda c, t: (c, 0, 0)),
        compiler_params=pltpu.CompilerParams(
            dimension_semantics=("parallel", "arbitrary"),
            vmem_limit_bytes=32 * 1024 * 1024),
    )(att2, edges["geo_T"], edges["ijk"],
      folded["nw0"], folded["w0g"], folded["wl"], folded["bl"])

    return out.sum(axis=0)[:N, :H]


# ----------------------------------------------------------------------------
# Parameter init (mirrors the PyTorch module; BN in eval mode) + JAX reference
# ----------------------------------------------------------------------------
def init_params(key, hidden_channels, num_input_geofeature, finaldepth):
    H, G, L = hidden_channels, num_input_geofeature, finaldepth + 1
    cin = 3 * H + G
    k = jax.random.split(key, 4)
    return {
        # weights stored pre-transposed: [in, out]
        "w0": 0.1 * jax.random.normal(k[0], (2, cin, H), jnp.float32),
        "w": 0.1 * jax.random.normal(k[1], (2, L - 1, H, H), jnp.float32),
        "b": 0.05 * jax.random.normal(k[2], (2, L, H), jnp.float32),
        # BatchNorm1d defaults (eval mode)
        "gamma": jnp.ones((2, L, H), jnp.float32),
        "beta": jnp.zeros((2, L, H), jnp.float32),
        "mean": jnp.zeros((2, L, H), jnp.float32),
        "var": jnp.ones((2, L, H), jnp.float32),
    }


def spnn_reference(params, node_feature, geo, i, j, k, att, same_face):
    """Pure-JAX reference (unfolded weights, f32) for verification."""
    L = params["b"].shape[1]
    x = jnp.concatenate([node_feature[i], node_feature[j], node_feature[k], geo], -1)
    outs = []
    for bidx in range(2):
        h = x
        for l in range(L):
            w = params["w0"][bidx] if l == 0 else params["w"][bidx, l - 1]
            h = h @ w + params["b"][bidx, l]
            inv = 1.0 / jnp.sqrt(params["var"][bidx, l] + BN_EPS)
            h = (h - params["mean"][bidx, l]) * inv * params["gamma"][bidx, l] \
                + params["beta"][bidx, l]
            h = jnp.maximum(h, 0.0)
        h = jnp.where(h >= 0.0, h, LEAKY_SLOPE * h) * att[bidx]
        outs.append(h)
    x_out = jnp.where(same_face[:, None], outs[0], outs[1])
    return jax.ops.segment_sum(x_out, i, num_segments=node_feature.shape[0])


if __name__ == "__main__":
    # small shapes: num_node=16, hidden=32, geo-features=8, edges=256, depth=3
    N, H, G, E, FINALDEPTH = 16, 32, 8, 256, 3

    key = jax.random.PRNGKey(0)
    kp, kn, kg, ki, kj, kk, km, ka = jax.random.split(key, 8)

    params = init_params(kp, H, G, FINALDEPTH)
    node_feature = jax.random.normal(kn, (N, H), jnp.float32)
    geo_encoding = jax.random.normal(kg, (E, G), jnp.float32)
    i_idx = jax.random.randint(ki, (E,), 0, N, jnp.int32)
    j_idx = jax.random.randint(kj, (E,), 0, N, jnp.int32)
    k_idx = jax.random.randint(kk, (E,), 0, N, jnp.int32)
    edge_index_2rd = jnp.stack([i_idx, j_idx, k_idx], axis=0)
    same_face = jax.random.bernoulli(km, 0.5, (E,))
    att = jax.random.uniform(ka, (2,), jnp.float32, 0.5, 1.5)

    # unused by forward, constructed only to mirror the PyTorch signature
    edx_jk = jnp.arange(E, dtype=jnp.int32)
    edx_ij = jnp.arange(E, dtype=jnp.int32)
    edge_whichface = jnp.zeros((E,), jnp.int32)

    ref = spnn_reference(params, node_feature, geo_encoding,
                         i_idx, j_idx, k_idx, att, same_face)

    # host-side edge partitioning is done once per graph and reused
    edges = prepare_edges(edge_index_2rd, geo_encoding, same_face, N,
                          edge_tile=512, num_cores=2)

    # f32 MXU path: structurally exact (BN folding / padding / fused layer-0
    # only reassociate fp ops) -> tight tolerance.
    out_f32 = spnn_forward(params, node_feature, geo_encoding, edge_index_2rd,
                           edx_jk, edx_ij, edge_whichface, att, same_face,
                           edges=edges, use_bf16=False)
    out_f32 = jax.block_until_ready(out_f32)
    assert out_f32.shape == (N, H)
    assert jnp.allclose(out_f32, ref, rtol=1e-4, atol=1e-4), "f32 kernel mismatch"

    # bf16 MXU path (default fast path): relative-error check.
    out_bf16 = jax.block_until_ready(
        spnn_forward(params, node_feature, geo_encoding, edge_index_2rd,
                     edx_jk, edx_ij, edge_whichface, att, same_face,
                     edges=edges, use_bf16=True))
    rel = float(jnp.max(jnp.abs(out_bf16 - ref)) /
                (jnp.max(jnp.abs(ref)) + 1e-8))
    assert rel < 5e-2, f"bf16 kernel relative error too large: {rel}"

    print("KERNEL_OK")
</pallas_src>

<mosaic_0001>
module attributes {stable_mosaic.version = 11 : i64} {
  func.func @kernel(%arg0: i32, %arg1: i32, %arg2: memref<2xf32, #tpu.memory_space<smem>>, %arg3: memref<8x512xf32, #tpu.memory_space<vmem>>, %arg4: memref<3x512xi32, #tpu.memory_space<vmem>>, %arg5: memref<2x48x128xf32, #tpu.memory_space<vmem>>, %arg6: memref<2x8x128xf32, #tpu.memory_space<vmem>>, %arg7: memref<6x128x128xf32, #tpu.memory_space<vmem>>, %arg8: memref<8x128xf32, #tpu.memory_space<vmem>>, %arg9: memref<1x16x128xf32, #tpu.memory_space<vmem>>) attributes {dimension_semantics = [#tpu.dimension_semantics<parallel>, #tpu.dimension_semantics<arbitrary>], iteration_bounds = array<i64: 2, 1>, scalar_prefetch = 0 : i64, scratch_operands = 0 : i64, tpu.core_type = #tpu.core_type<tc>, window_params = [{transform_indices = @transform_0, window_bounds = array<i64: 2>}, {transform_indices = @transform_1, window_bounds = array<i64: 8, 512>}, {transform_indices = @transform_2, window_bounds = array<i64: 3, 512>}, {pipeline_mode = #tpu.pipeline_mode<synchronous>, transform_indices = @transform_3, window_bounds = array<i64: 2, 48, 128>}, {pipeline_mode = #tpu.pipeline_mode<synchronous>, transform_indices = @transform_4, window_bounds = array<i64: 2, 8, 128>}, {pipeline_mode = #tpu.pipeline_mode<synchronous>, transform_indices = @transform_5, window_bounds = array<i64: 6, 128, 128>}, {pipeline_mode = #tpu.pipeline_mode<synchronous>, transform_indices = @transform_6, window_bounds = array<i64: 8, 128>}, {transform_indices = @transform_7, window_bounds = array<i64: 1, 16, 128>}]} {
    %c1_i32 = arith.constant 1 : i32
    %0 = arith.muli %arg0, %c1_i32 : i32
    %1 = arith.addi %0, %arg1 : i32
    %c1_i32_0 = arith.constant 1 : i32
    %2 = arith.cmpi sge, %1, %c1_i32_0 : i32
    %3 = arith.extui %2 : i1 to i32
    %c0_i32 = arith.constant 0 : i32
    %4 = arith.cmpi eq, %arg1, %c0_i32 : i32
    %5 = arith.extui %4 : i1 to i32
    %c0_i32_1 = arith.constant 0 : i32
    %6 = arith.cmpi ne, %5, %c0_i32_1 : i32
    scf.if %6 {
      %cst_50 = arith.constant 0.000000e+00 : f32
      %102 = vector.broadcast %cst_50 : f32 to vector<16x128xf32>
      %c0_51 = arith.constant 0 : index
      %c0_52 = arith.constant 0 : index
      %c0_53 = arith.constant 0 : index
      %103 = vector.load %arg9[%c0_51, %c0_52, %c0_53] : memref<1x16x128xf32, #tpu.memory_space<vmem>>, vector<1x16x128xf32>
      %104 = vector.shape_cast %103 : vector<1x16x128xf32> to vector<16x128xf32>
      %105 = vector.shape_cast %102 : vector<16x128xf32> to vector<1x16x128xf32>
      tpu.vector_store %arg9[%c0_51, %c0_52, %c0_53], %105 {strides = array<i32>} : memref<1x16x128xf32, #tpu.memory_space<vmem>>, vector<1x16x128xf32>,
    } else {
    }
    %7 = tpu.iota {dimensions = array<i32: 0>} : vector<48x512xi32>
    %c0 = arith.constant 0 : index
    %c0_2 = arith.constant 0 : index
    %8 = vector.load %arg4[%c0, %c0_2] : memref<3x512xi32, #tpu.memory_space<vmem>>, vector<1x512xi32>
    %9 = vector.broadcast %8 : vector<1x512xi32> to vector<48x512xi32>
    %10 = arith.cmpi eq, %7, %9 : vector<48x512xi32>
    %c1 = arith.constant 1 : index
    %c0_3 = arith.constant 0 : index
    %11 = vector.load %arg4[%c1, %c0_3] : memref<3x512xi32, #tpu.memory_space<vmem>>, vector<1x512xi32>
    %12 = vector.broadcast %11 : vector<1x512xi32> to vector<48x512xi32>
    %13 = arith.cmpi eq, %7, %12 : vector<48x512xi32>
    %14 = arith.ori %10, %13 : vector<48x512xi1>
    %c2 = arith.constant 2 : index
    %c0_4 = arith.constant 0 : index
    %15 = vector.load %arg4[%c2, %c0_4] : memref<3x512xi32, #tpu.memory_space<vmem>>, vector<1x512xi32>
    %16 = vector.broadcast %15 : vector<1x512xi32> to vector<48x512xi32>
    %17 = arith.cmpi eq, %7, %16 : vector<48x512xi32>
    %18 = arith.ori %14, %17 : vector<48x512xi1>
    %19 = arith.extui %18 : vector<48x512xi1> to vector<48x512xi32>
    %20 = arith.sitofp %19 : vector<48x512xi32> to vector<48x512xf32>
    %21 = arith.index_cast %3 : i32 to index
    %c0_5 = arith.constant 0 : index
    %c0_6 = arith.constant 0 : index
    %22 = vector.load %arg5[%21, %c0_5, %c0_6] : memref<2x48x128xf32, #tpu.memory_space<vmem>>, vector<1x48x128xf32>
    %23 = vector.shape_cast %22 : vector<1x48x128xf32> to vector<48x128xf32>
    %cst = arith.constant dense<0.000000e+00> : vector<512x128xf32>
    %24 = tpu.matmul %20, %23, %cst {dimension_numbers = #tpu.dot_dimension_numbers<[0], [0], [1], [1], [0, 1, 1, 1], [], []>} : vector<48x512xf32>, vector<48x128xf32>, vector<512x128xf32> -> vector<512x128xf32>
    %c0_7 = arith.constant 0 : index
    %c0_8 = arith.constant 0 : index
    %25 = vector.load %arg3[%c0_7, %c0_8] : memref<8x512xf32, #tpu.memory_space<vmem>>, vector<8x512xf32>
    %26 = arith.index_cast %3 : i32 to index
    %c0_9 = arith.constant 0 : index
    %c0_10 = arith.constant 0 : index
    %27 = vector.load %arg6[%26, %c0_9, %c0_10] : memref<2x8x128xf32, #tpu.memory_space<vmem>>, vector<1x8x128xf32>
    %28 = vector.shape_cast %27 : vector<1x8x128xf32> to vector<8x128xf32>
    %cst_11 = arith.constant dense<0.000000e+00> : vector<512x128xf32>
    %29 = tpu.matmul %25, %28, %cst_11 {dimension_numbers = #tpu.dot_dimension_numbers<[0], [0], [1], [1], [0, 1, 1, 1], [], []>} : vector<8x512xf32>, vector<8x128xf32>, vector<512x128xf32> -> vector<512x128xf32>
    %30 = arith.addf %24, %29 : vector<512x128xf32>
    %c4_i32 = arith.constant 4 : i32
    %31 = arith.muli %3, %c4_i32 : i32
    %32 = arith.index_cast %31 : i32 to index
    %c0_12 = arith.constant 0 : index
    %33 = vector.load %arg8[%32, %c0_12] : memref<8x128xf32, #tpu.memory_space<vmem>>, vector<1x128xf32>
    %34 = vector.broadcast %33 : vector<1x128xf32> to vector<512x128xf32>
    %35 = arith.addf %30, %34 : vector<512x128xf32>
    %cst_13 = arith.constant 0.000000e+00 : f32
    %36 = vector.broadcast %cst_13 : f32 to vector<512x128xf32>
    %37 = arith.maximumf %35, %36 : vector<512x128xf32>
    %c3_i32 = arith.constant 3 : i32
    %38 = arith.muli %3, %c3_i32 : i32
    %c0_i32_14 = arith.constant 0 : i32
    %39 = arith.addi %38, %c0_i32_14 : i32
    %40 = arith.index_cast %39 : i32 to index
    %c0_15 = arith.constant 0 : index
    %c0_16 = arith.constant 0 : index
    %41 = vector.load %arg7[%40, %c0_15, %c0_16] : memref<6x128x128xf32, #tpu.memory_space<vmem>>, vector<1x128x128xf32>
    %42 = vector.shape_cast %41 : vector<1x128x128xf32> to vector<128x128xf32>
    %cst_17 = arith.constant dense<0.000000e+00> : vector<512x128xf32>
    %43 = tpu.matmul %37, %42, %cst_17 {dimension_numbers = #tpu.dot_dimension_numbers<[1], [0], [0], [1], [0, 0, 1, 1], [], []>} : vector<512x128xf32>, vector<128x128xf32>, vector<512x128xf32> -> vector<512x128xf32>
    %c4_i32_18 = arith.constant 4 : i32
    %44 = arith.muli %3, %c4_i32_18 : i32
    %c1_i32_19 = arith.constant 1 : i32
    %45 = arith.addi %44, %c1_i32_19 : i32
    %46 = arith.index_cast %45 : i32 to index
    %c0_20 = arith.constant 0 : index
    %47 = vector.load %arg8[%46, %c0_20] : memref<8x128xf32, #tpu.memory_space<vmem>>, vector<1x128xf32>
    %48 = vector.broadcast %47 : vector<1x128xf32> to vector<512x128xf32>
    %49 = arith.addf %43, %48 : vector<512x128xf32>
    %cst_21 = arith.constant 0.000000e+00 : f32
    %50 = vector.broadcast %cst_21 : f32 to vector<512x128xf32>
    %51 = arith.maximumf %49, %50 : vector<512x128xf32>
    %c3_i32_22 = arith.constant 3 : i32
    %52 = arith.muli %3, %c3_i32_22 : i32
    %c1_i32_23 = arith.constant 1 : i32
    %53 = arith.addi %52, %c1_i32_23 : i32
    %54 = arith.index_cast %53 : i32 to index
    %c0_24 = arith.constant 0 : index
    %c0_25 = arith.constant 0 : index
    %55 = vector.load %arg7[%54, %c0_24, %c0_25] : memref<6x128x128xf32, #tpu.memory_space<vmem>>, vector<1x128x128xf32>
    %56 = vector.shape_cast %55 : vector<1x128x128xf32> to vector<128x128xf32>
    %cst_26 = arith.constant dense<0.000000e+00> : vector<512x128xf32>
    %57 = tpu.matmul %51, %56, %cst_26 {dimension_numbers = #tpu.dot_dimension_numbers<[1], [0], [0], [1], [0, 0, 1, 1], [], []>} : vector<512x128xf32>, vector<128x128xf32>, vector<512x128xf32> -> vector<512x128xf32>
    %c4_i32_27 = arith.constant 4 : i32
    %58 = arith.muli %3, %c4_i32_27 : i32
    %c2_i32 = arith.constant 2 : i32
    %59 = arith.addi %58, %c2_i32 : i32
    %60 = arith.index_cast %59 : i32 to index
    %c0_28 = arith.constant 0 : index
    %61 = vector.load %arg8[%60, %c0_28] : memref<8x128xf32, #tpu.memory_space<vmem>>, vector<1x128xf32>
    %62 = vector.broadcast %61 : vector<1x128xf32> to vector<512x128xf32>
    %63 = arith.addf %57, %62 : vector<512x128xf32>
    %cst_29 = arith.constant 0.000000e+00 : f32
    %64 = vector.broadcast %cst_29 : f32 to vector<512x128xf32>
    %65 = arith.maximumf %63, %64 : vector<512x128xf32>
    %c3_i32_30 = arith.constant 3 : i32
    %66 = arith.muli %3, %c3_i32_30 : i32
    %c2_i32_31 = arith.constant 2 : i32
    %67 = arith.addi %66, %c2_i32_31 : i32
    %68 = arith.index_cast %67 : i32 to index
    %c0_32 = arith.constant 0 : index
    %c0_33 = arith.constant 0 : index
    %69 = vector.load %arg7[%68, %c0_32, %c0_33] : memref<6x128x128xf32, #tpu.memory_space<vmem>>, vector<1x128x128xf32>
    %70 = vector.shape_cast %69 : vector<1x128x128xf32> to vector<128x128xf32>
    %cst_34 = arith.constant dense<0.000000e+00> : vector<512x128xf32>
    %71 = tpu.matmul %65, %70, %cst_34 {dimension_numbers = #tpu.dot_dimension_numbers<[1], [0], [0], [1], [0, 0, 1, 1], [], []>} : vector<512x128xf32>, vector<128x128xf32>, vector<512x128xf32> -> vector<512x128xf32>
    %c4_i32_35 = arith.constant 4 : i32
    %72 = arith.muli %3, %c4_i32_35 : i32
    %c3_i32_36 = arith.constant 3 : i32
    %73 = arith.addi %72, %c3_i32_36 : i32
    %74 = arith.index_cast %73 : i32 to index
    %c0_37 = arith.constant 0 : index
    %75 = vector.load %arg8[%74, %c0_37] : memref<8x128xf32, #tpu.memory_space<vmem>>, vector<1x128xf32>
    %76 = vector.broadcast %75 : vector<1x128xf32> to vector<512x128xf32>
    %77 = arith.addf %71, %76 : vector<512x128xf32>
    %cst_38 = arith.constant 0.000000e+00 : f32
    %78 = vector.broadcast %cst_38 : f32 to vector<512x128xf32>
    %79 = arith.maximumf %77, %78 : vector<512x128xf32>
    %cst_39 = arith.constant 0.000000e+00 : f32
    %80 = vector.broadcast %cst_39 : f32 to vector<512x128xf32>
    %81 = arith.cmpf oge, %79, %80 : vector<512x128xf32>
    %cst_40 = arith.constant 0.00999999977 : f32
    %82 = vector.broadcast %cst_40 : f32 to vector<512x128xf32>
    %83 = arith.mulf %82, %79 : vector<512x128xf32>
    %84 = arith.select %81, %79, %83 : vector<512x128xi1>, vector<512x128xf32>
    %85 = arith.index_cast %3 : i32 to index
    %86 = memref.load %arg2[%85] : memref<2xf32, #tpu.memory_space<smem>>
    %87 = vector.broadcast %86 : f32 to vector<512x128xf32>
    %88 = arith.mulf %84, %87 : vector<512x128xf32>
    %89 = tpu.iota {dimensions = array<i32: 0>} : vector<16x512xi32>
    %c0_41 = arith.constant 0 : index
    %c0_42 = arith.constant 0 : index
    %90 = vector.load %arg4[%c0_41, %c0_42] : memref<3x512xi32, #tpu.memory_space<vmem>>, vector<1x512xi32>
    %91 = vector.broadcast %90 : vector<1x512xi32> to vector<16x512xi32>
    %92 = arith.cmpi eq, %89, %91 : vector<16x512xi32>
    %93 = arith.extui %92 : vector<16x512xi1> to vector<16x512xi32>
    %94 = arith.sitofp %93 : vector<16x512xi32> to vector<16x512xf32>
    %c0_43 = arith.constant 0 : index
    %c0_44 = arith.constant 0 : index
    %c0_45 = arith.constant 0 : index
    %95 = vector.load %arg9[%c0_43, %c0_44, %c0_45] : memref<1x16x128xf32, #tpu.memory_space<vmem>>, vector<1x16x128xf32>
    %96 = vector.shape_cast %95 : vector<1x16x128xf32> to vector<16x128xf32>
    %cst_46 = arith.constant dense<0.000000e+00> : vector<16x128xf32>
    %97 = tpu.matmul %94, %88, %cst_46 {dimension_numbers = #tpu.dot_dimension_numbers<[1], [0], [0], [1], [0, 0, 1, 1], [], []>} : vector<16x512xf32>, vector<512x128xf32>, vector<16x128xf32> -> vector<16x128xf32>
    %98 = arith.addf %96, %97 : vector<16x128xf32>
    %c0_47 = arith.constant 0 : index
    %c0_48 = arith.constant 0 : index
    %c0_49 = arith.constant 0 : index
    %99 = vector.load %arg9[%c0_47, %c0_48, %c0_49] : memref<1x16x128xf32, #tpu.memory_space<vmem>>, vector<1x16x128xf32>
    %100 = vector.shape_cast %99 : vector<1x16x128xf32> to vector<16x128xf32>
    %101 = vector.shape_cast %98 : vector<16x128xf32> to vector<1x16x128xf32>
    tpu.vector_store %arg9[%c0_47, %c0_48, %c0_49], %101 {strides = array<i32>} : memref<1x16x128xf32, #tpu.memory_space<vmem>>, vector<1x16x128xf32>,
    return
  }
  func.func @transform_0(%arg0: i32, %arg1: i32) -> i32 {
    %c0_i32 = arith.constant 0 : i32
    %c0_i32_0 = arith.constant 0 : i32
    return %c0_i32 : i32
  }
  func.func @transform_1(%arg0: i32, %arg1: i32) -> (i32, i32) {
    %c1_i32 = arith.constant 1 : i32
    %0 = arith.muli %arg0, %c1_i32 : i32
    %1 = arith.addi %0, %arg1 : i32
    %c0_i32 = arith.constant 0 : i32
    %c0_i32_0 = arith.constant 0 : i32
    return %c0_i32, %1 : i32, i32
  }
  func.func @transform_2(%arg0: i32, %arg1: i32) -> (i32, i32) {
    %c1_i32 = arith.constant 1 : i32
    %0 = arith.muli %arg0, %c1_i32 : i32
    %1 = arith.addi %0, %arg1 : i32
    %c0_i32 = arith.constant 0 : i32
    %c0_i32_0 = arith.constant 0 : i32
    return %c0_i32, %1 : i32, i32
  }
  func.func @transform_3(%arg0: i32, %arg1: i32) -> (i32, i32, i32) {
    %c0_i32 = arith.constant 0 : i32
    %c0_i32_0 = arith.constant 0 : i32
    %c0_i32_1 = arith.constant 0 : i32
    %c0_i32_2 = arith.constant 0 : i32
    return %c0_i32, %c0_i32_0, %c0_i32_1 : i32, i32, i32
  }
  func.func @transform_4(%arg0: i32, %arg1: i32) -> (i32, i32, i32) {
    %c0_i32 = arith.constant 0 : i32
    %c0_i32_0 = arith.constant 0 : i32
    %c0_i32_1 = arith.constant 0 : i32
    %c0_i32_2 = arith.constant 0 : i32
    return %c0_i32, %c0_i32_0, %c0_i32_1 : i32, i32, i32
  }
  func.func @transform_5(%arg0: i32, %arg1: i32) -> (i32, i32, i32) {
    %c0_i32 = arith.constant 0 : i32
    %c0_i32_0 = arith.constant 0 : i32
    %c0_i32_1 = arith.constant 0 : i32
    %c0_i32_2 = arith.constant 0 : i32
    return %c0_i32, %c0_i32_0, %c0_i32_1 : i32, i32, i32
  }
  func.func @transform_6(%arg0: i32, %arg1: i32) -> (i32, i32) {
    %c0_i32 = arith.constant 0 : i32
    %c0_i32_0 = arith.constant 0 : i32
    %c0_i32_1 = arith.constant 0 : i32
    return %c0_i32, %c0_i32_0 : i32, i32
  }
  func.func @transform_7(%arg0: i32, %arg1: i32) -> (i32, i32, i32) {
    %c0_i32 = arith.constant 0 : i32
    %c0_i32_0 = arith.constant 0 : i32
    %c0_i32_1 = arith.constant 0 : i32
    return %arg0, %c0_i32, %c0_i32_0 : i32, i32, i32
  }
}

</mosaic_0001>

<bundles_post_ra>
// kernel: tpu_custom_call.1
= control target key start
LH: loop header
LB: loop body
LE: loop exit
PB: predicated region body
PF: predicated region fallthrough
CT: control target
= control target key end

     0   :  { %s7975_s0 = inlined_call_operand.hbm [shape: f32[2], index: 0, kind: input, shape index: {}]   ;;  %s7976_s1 = inlined_call_operand.hbm [shape: f32[8,1024], index: 1, kind: input, shape index: {}]   ;;  %s7977_s2 = inlined_call_operand.hbm [shape: s32[3,1024], index: 2, kind: input, shape index: {}]   ;;  %s7978_s3 = inlined_call_operand.hbm [shape: f32[2,48,128], index: 3, kind: input, shape index: {}]   ;;  %s7979_s4 = inlined_call_operand.hbm [shape: f32[2,8,128], index: 4, kind: input, shape index: {}]   ;;  %s7980_s5 = inlined_call_operand.hbm [shape: f32[6,128,128], index: 5, kind: input, shape index: {}]   ;;  %s7981_s6 = inlined_call_operand.vmem [shape: f32[8,128], index: 6, kind: input, shape index: {}]   ;;  %s7982_s7 = inlined_call_operand.hbm [shape: f32[2,16,128], index: 7, kind: output, shape index: {}]  }
   0x1   :  { %7996 = sst [smem:[#allocation20_spill]] %s7975_s0 }
   0x2   :  { %7997 = sst [smem:[#allocation21_spill]] %s7976_s1 }
   0x3   :  { %7998 = sst [smem:[#allocation22_spill]] %s7978_s3 }
   0x4   :  { %7999 = sst [smem:[#allocation23_spill]] %s7979_s4 }
   0x5   :  { %8000 = sst [smem:[#allocation24_spill]] %s7980_s5 }
   0x6   :  { %12 = vsyncpa [#allocation5], 0 }
   0x7   :  { %13 = vsyncpa [#allocation3], 0 }
   0x8   :  { %15 = vsyncpa [#allocation3 + $0x1], 0 }
   0x9   :  { %16 = vsyncpa [#allocation8], 0 }
   0xa   :  { %18 = vsyncpa [#allocation8 + $0x1], 0 }
   0xb   :  { %19 = vsyncpa [#allocation11], 0 }
   0xc   :  { %20 = vsyncpa [#allocation4], 0 }
   0xd   :  { %22 = vsyncpa [#allocation4 + $0x1], 0  ;;  %s6383_s24 = smov 0   ;;  %s6385_s25 = smov 0  }
   0xe   :  { %s6387_s26 = smov 0   ;;  %s6389_s27 = smov 0  }
   0xf   :  { %s6391_s28 = smov 0   ;;  %s6393_s29 = smov 0  }
  0x10 LB: > { %s6330_s30 = smov [#allocation9]   ;;  %s6414_s9 = sadd.s32 4294967295, %s6328_s29   ;;  %s6328_s29 = sphi %s6393_s29, %s28_s29   ;;  %s6324_s28 = sphi %s6391_s28, %s8058_s28   ;;  %s6320_s27 = sphi %s6389_s27, %s8057_s27   ;;  %s6316_s26 = sphi %s6387_s26, %s8056_s26   ;;  %s6312_s25 = sphi %s6385_s25, %s8055_s25   ;;  %s6308_s24 = sphi %s6383_s24, %s8054_s24  }
  0x11   : > { %s253_s8 = sshll.u32 %s6330_s30, 4  ;;  %p4251_p0 = scmp.ge.s32.totalorder %s6328_s29, 1  ;;  %s6419_s8 = int_to_ptr.vmem [resolvable:$true] %s253_s8 }
  0x12   : > { %p7984_p1 = scmp.eq.s32.totalorder %s6414_s9, 0  ;;  %p232_p2 = scmp.lt.s32.totalorder %s6328_s29, 3 }
  0x13   : > { %s6331_s11 = smov [#allocation10]   ;;  %s8003_s3 = sld [smem:[#allocation22_spill]] }
  0x14   : > { %p6421_p3 = pnand %p4251_p0, %p232_p2  ;;  %s266_s12 = sshll.u32 %s6331_s11, 4  ;;  %s6434_s12 = int_to_ptr.vmem [resolvable:$true] %s266_s12 }
  0x16   : > { %s8001_s10 = scalar_select %p6421_p3, 1, 0 }
  0x17   : > { %p5797_p5 = pneg %p6421_p3 }
  0x19   : > { %p6430_p6 = pnand %p5797_p5, %p7984_p1  ;;  %s6073_s16 = scalar_lea.hbm %s8003_s3, 1536 }
  0x1a   : > { %p6074_p7 = scmp.ne.s32.totalorder %s8003_s3, %s6073_s16  ;;  %p6080_p11 = scmp.lt.u32.totalorder %s6073_s16, %s8003_s3 }
  0x1b   : > { %p6444_p8 = pneg %p6430_p6 }
  0x1d   : > { %p6076_p9 = pnand %p6444_p8, %p6074_p7 }
  0x1f   : > { %p6077_p10 = pneg %p6076_p9 }
  0x21   : > { %p6082_p12 = pnand %p6080_p11, %p6077_p10 }
  0x23   : > { %6085 = shalt.err (!%p6082_p12)
}
  0x24   : > { %s6086_s22 = scalar_lea.vmem %s6419_s8, 1536  ;;  %p6094_p5 = scmp.lt.s32.totalorder %s6419_s8, %s6419_s8 }
  0x25   : > { %p6087_p13 = scmp.ne.s32.totalorder %s6419_s8, %s6086_s22  ;;  %p6095_p4 = scmp.lt.s32.totalorder %s6086_s22, %s6086_s22 }
  0x27   : > { %p6089_p0 = pnand %p6087_p13, %p6444_p8  ;;  %p6096_p7 = por %p6095_p4, %p6094_p5 }
  0x29   : > { %p6090_p2 = pneg %p6089_p0 }
  0x2b   : > { %p6097_p9 = pnand %p6096_p7, %p6090_p2 }
  0x2d   : > { %6100 = shalt.err (!%p6097_p9)
}
  0x2e   : > { %s7983_s23 = smov 128   ;;  %s6333_s30 = smov 8  }
  0x2f   : > { %5803 = dma.hbm_to_vmem [thread:$0]  (!%p6430_p6), %s8003_s3, 1536, %s6419_s8, [#allocation8], %s7983_s23, %s7983_s23, %s6333_s30  }
  0x30   : > { %s8005_s4 = sld [smem:[#allocation23_spill]] }
  0x36   : > { %s6101_s17 = scalar_lea.hbm %s8005_s4, 256 }
  0x37   : > { %p6102_p4 = scmp.ne.s32.totalorder %s8005_s4, %s6101_s17  ;;  %p6108_p12 = scmp.lt.u32.totalorder %s6101_s17, %s8005_s4 }
  0x39   : > { %p6104_p10 = pnand %p6102_p4, %p6444_p8 }
  0x3b   : > { %p6105_p11 = pneg %p6104_p10 }
  0x3d   : > { %p6110_p13 = pnand %p6108_p12, %p6105_p11 }
  0x3f   : > { %6113 = shalt.err (!%p6110_p13)
}
  0x40   : > { %s6114_s8 = scalar_lea.vmem %s6434_s12, 256  ;;  %p6122_p7 = scmp.lt.s32.totalorder %s6434_s12, %s6434_s12 }
  0x41   : > { %p6115_p0 = scmp.ne.s32.totalorder %s6434_s12, %s6114_s8  ;;  %p6123_p9 = scmp.lt.s32.totalorder %s6114_s8, %s6114_s8 }
  0x43   : > { %p6117_p2 = pnand %p6115_p0, %p6444_p8  ;;  %p6124_p4 = por %p6123_p9, %p6122_p7 }
  0x45   : > { %p6118_p5 = pneg %p6117_p2 }
  0x47   : > { %p6125_p10 = pnand %p6124_p4, %p6118_p5 }
  0x49   : > { %6128 = shalt.err (!%p6125_p10)
}
  0x4a   : > { %5806 = dma.hbm_to_vmem [thread:$0]  (!%p6430_p6), %s8005_s4, 256, %s6434_s12, [#allocation11], %s7983_s23, %s7983_s23, %s6333_s30  }
  0x4b   : > { %s8006_s0 = sld [smem:[#allocation20_spill]] }
  0x51   : > { %s6129_s17 = scalar_lea.hbm %s8006_s0, 16 }
  0x52   : > { %p6130_p11 = scmp.ne.s32.totalorder %s8006_s0, %s6129_s17  ;;  %p6136_p0 = scmp.lt.u32.totalorder %s6129_s17, %s8006_s0 }
  0x54   : > { %p6132_p12 = pnand %p6130_p11, %p6444_p8 }
  0x56   : > { %p6133_p13 = pneg %p6132_p12 }
  0x58   : > { %p6138_p2 = pnand %p6136_p0, %p6133_p13 }
  0x5a   : > { %6141 = shalt.err (!%p6138_p2)
}
  0x5b   : > { %s6334_s8 = smov [#allocation2]   ;;  %s6335_s14 = smov [#allocation12]  }
  0x5c   : > { %5800 = dma.hbm_to_smem (!%p6430_p6), %s8006_s0, 16, %s6334_s8, [#allocation5]  }
  0x5d   : > { %s279_s15 = sshll.u32 %s6335_s14, 4  ;;  %s8007_s5 = sld [smem:[#allocation24_spill]]  ;;  %s280_s15 = int_to_ptr.vmem [resolvable:$true] %s279_s15 }
  0x63   : > { %s6142_s20 = scalar_lea.hbm %s8007_s5, 12288 }
  0x64   : > { %p6143_p5 = scmp.ne.s32.totalorder %s8007_s5, %s6142_s20  ;;  %p6149_p4 = scmp.lt.u32.totalorder %s6142_s20, %s8007_s5 }
  0x66   : > { %p6145_p7 = pnand %p6143_p5, %p6444_p8 }
  0x68   : > { %p6146_p9 = pneg %p6145_p7 }
  0x6a   : > { %p6151_p10 = pnand %p6149_p4, %p6146_p9 }
  0x6c   : > { %6154 = shalt.err (!%p6151_p10)
}
  0x6d   : > { %s6155_s8 = scalar_lea.vmem %s280_s15, 12288  ;;  %p6163_p0 = scmp.lt.s32.totalorder %s280_s15, %s280_s15 }
  0x6e   : > { %p6156_p11 = scmp.ne.s32.totalorder %s280_s15, %s6155_s8  ;;  %p6164_p2 = scmp.lt.s32.totalorder %s6155_s8, %s6155_s8 }
  0x70   : > { %p6158_p12 = pnand %p6156_p11, %p6444_p8  ;;  %p6165_p1 = por %p6164_p2, %p6163_p0 }
  0x72   : > { %p6159_p13 = pneg %p6158_p12 }
  0x74   : > { %p6166_p3 = pnand %p6165_p1, %p6159_p13 }
  0x76   : > { %6169 = shalt.err (!%p6166_p3)
}
  0x77   : > { %s8008_s23 = smov 128   ;;  %s4250_s13 = sadd.s32 4294967294, %s6328_s29  }
  0x78   : > { %5809 = dma.hbm_to_vmem [thread:$0]  (!%p6430_p6), %s8007_s5, 12288, %s280_s15, [#allocation11], %s8008_s23, %s8008_s23, %s6333_s30  }
  0x79   : > { %s40_s19 = sadd.s32 1, %s6324_s28  ;;  %s70_s14 = sadd.s32 1, %s6316_s26 }
  0x7a   : > { %p42_p1 = scmp.ge.s32.totalorder %s40_s19, 2  ;;  %p77_p3 = scmp.ne.s32.totalorder %s6316_s26, %s6312_s25 }
  0x7b   : > { %p78_p8 = scmp.eq.s32.totalorder %s6328_s29, 0  ;;  %p83_p7 = scmp.ne.s32.totalorder %s6312_s25, %s6308_s24 }
  0x7c   : > { %s8060_s19 = smov (%p42_p1, %s40_s19), 0  ;;  %p219_p6 = scmp.eq.s32.totalorder %s6414_s9, 1 }
  0x7d   : > { %p6539_p5 = por %p78_p8, %p77_p3  ;;  %s67_s30 = ssub.s32 %s6324_s28, %s8060_s19 }
  0x7e   : > { %p68_p9 = scmp.eq.s32.totalorder %s67_s30, 0  ;;  %p8010_p4 = scmp.eq.s32.totalorder %s6414_s9, 0 }
  0x7f   : > { %p6554_p11 = por %p219_p6, %p77_p3  ;;  %p225_p12 = scmp.eq.s32.totalorder %s4250_s13, 1 }
  0x80   : > { %p6550_p10 = por %p8010_p4, %p83_p7  ;;  %p5825_p0 = scmp.lt.s32.totalorder %s6328_s29, 2 }
  0x81   : > { %s8012_s18 = scalar_select %p6554_p11, 1, 0 }
  0x82   : > { %s8011_s15 = scalar_select %p6550_p10, 1, 0 }
  0x83   : > { %s6559_s20 = scalar_select %p68_p9, %s6316_s26, %s70_s14  }
  0x84   : > { %p6561_p13 = por %p225_p12, %p83_p7  ;;  %s6567_s17 = sand.u32 1, %s6316_s26  }
  0x85   : > { %s4493_s22 = sshll.u32 %s6324_s28, 9  ;;  %s4257_s8 = sshll.u32 %s6567_s17, 5 }
  0x86   : > { %s8013_s21 = scalar_select %p6561_p13, 1, 0 }
  0x87   : > { %s8014_s1 = sld [smem:[#allocation21_spill]]  ;;  %s300_s13 = scalar_lea.vmem [#allocation6], %s4257_s8 }
  0x88   : > { %s309_s14 = sshll.u32 %s300_s13, 4  ;;  %p6578_p2 = pnand %p5825_p0, %p6539_p5  ;;  %s6582_s14 = int_to_ptr.vmem [resolvable:$true] %s309_s14 }
  0x89   : > { %s297_s3 = scalar_lea.sflag [#allocation3], %s6567_s17 }
  0x8a   : > { %p6172_p3 = pneg %p6578_p2 }
  0x8d   : > { %s6574_s11 = scalar_lea.hbm %s8014_s1, %s4493_s22  ;;  %s6175_s8 = scalar_lea.hbm %s8014_s1, 1024 }
  0x8e   : > { %s6170_s23 = scalar_lea.hbm %s6574_s11, 512  ;;  %p6176_p5 = scmp.lt.u32.totalorder %s6574_s11, %s8014_s1 }
  0x8f   : > { %p6171_p1 = scmp.ne.s32.totalorder %s6574_s11, %s6170_s23  ;;  %p6177_p6 = scmp.lt.u32.totalorder %s6175_s8, %s6170_s23 }
  0x90   : > { %p6179_p4 = scmp.lt.u32.totalorder %s6170_s23, %s6574_s11 }
  0x91   : > { %p6173_p8 = pnand %p6172_p3, %p6171_p1  ;;  %p6178_p9 = por %p6177_p6, %p6176_p5 }
  0x93   : > { %p6174_p7 = pneg %p6173_p8  ;;  %p6180_p12 = por %p6179_p4, %p6178_p9 }
  0x95   : > { %p6181_p0 = pnand %p6180_p12, %p6174_p7 }
  0x97   : > { %6184 = shalt.err (!%p6181_p0)
}
  0x98   : > { %s6185_s0 = scalar_lea.vmem %s6582_s14, 512  ;;  %s6336_s22 = smov [#allocation6]  }
  0x99   : > { %p6186_p1 = scmp.ne.s32.totalorder %s6582_s14, %s6185_s0  ;;  %s6190_s16 = sshll.u32 %s6336_s22, 4  ;;  %s6191_s16 = int_to_ptr.vmem [resolvable:$false] %s6190_s16 }
  0x9a   : > { %s6192_s12 = scalar_lea.vmem %s6191_s16, 1024  ;;  %p6193_p11 = scmp.lt.s32.totalorder %s6582_s14, %s6191_s16 }
  0x9b   : > { %p6188_p8 = pnand %p6186_p1, %p6172_p3  ;;  %p6194_p5 = scmp.lt.s32.totalorder %s6192_s12, %s6185_s0 }
  0x9d   : > { %p6189_p13 = pneg %p6188_p8  ;;  %p6195_p6 = por %p6194_p5, %p6193_p11 }
  0x9f   : > { %p6196_p9 = pnand %p6195_p6, %p6189_p13 }
  0xa1   : > { %6199 = shalt.err (!%p6196_p9)
}
  0xa2   : > { %5813 = dma.hbm_to_vmem [thread:$0]  (!%p6578_p2), %s6574_s11, 512, %s6582_s14, %s297_s3  }
  0xa3   : > { %s4260_s23 = sshll.u32 %s6567_s17, 4  ;;  %s4494_s8 = sshll.u32 %s6324_s28, 8 }
  0xa4   : > { %s6616_s1 = scalar_lea.hbm %s7977_s2, %s4494_s8  ;;  %s320_s0 = scalar_lea.vmem [#allocation7], %s4260_s23 }
  0xa5   : > { %s329_s16 = sshll.u32 %s320_s0, 4  ;;  %s8016_s12 = sand.u32 1, %s6328_s29   ;;  %s330_s16 = int_to_ptr.vmem [resolvable:$true] %s329_s16 }
  0xa6   : > { %s317_s4 = scalar_lea.sflag [#allocation8], %s8016_s12  ;;  %s6200_s5 = scalar_lea.hbm %s6616_s1, 256 }
  0xa7   : > { %p6201_p11 = scmp.ne.s32.totalorder %s6616_s1, %s6200_s5  ;;  %s6205_s11 = scalar_lea.hbm %s7977_s2, 512 }
  0xa8   : > { %p6206_p4 = scmp.lt.u32.totalorder %s6616_s1, %s7977_s2  ;;  %p6207_p12 = scmp.lt.u32.totalorder %s6205_s11, %s6200_s5 }
  0xa9   : > { %p6203_p13 = pnand %p6201_p11, %p6172_p3  ;;  %p6209_p1 = scmp.lt.u32.totalorder %s6200_s5, %s6616_s1 }
  0xaa   : > { %p6208_p0 = por %p6207_p12, %p6206_p4 }
  0xab   : > { %p6204_p7 = pneg %p6203_p13 }
  0xac   : > { %p6210_p8 = por %p6209_p1, %p6208_p0 }
  0xae   : > { %p6211_p5 = pnand %p6210_p8, %p6204_p7 }
  0xb0   : > { %6214 = shalt.err (!%p6211_p5)
}
  0xb1   : > { %s6215_s23 = scalar_lea.vmem %s330_s16, 256  ;;  %s6337_s13 = smov [#allocation7]  }
  0xb2   : > { %p6216_p6 = scmp.ne.s32.totalorder %s330_s16, %s6215_s23  ;;  %s6220_s22 = sshll.u32 %s6337_s13, 4  ;;  %s6221_s22 = int_to_ptr.vmem [resolvable:$false] %s6220_s22 }
  0xb3   : > { %s6222_s0 = scalar_lea.vmem %s6221_s22, 512  ;;  %p6223_p13 = scmp.lt.s32.totalorder %s330_s16, %s6221_s22 }
  0xb4   : > { %p6218_p9 = pnand %p6216_p6, %p6172_p3  ;;  %p6224_p10 = scmp.lt.s32.totalorder %s6222_s0, %s6215_s23 }
  0xb6   : > { %p6219_p11 = pneg %p6218_p9  ;;  %p6225_p4 = por %p6224_p10, %p6223_p13 }
  0xb8   : > { %p6226_p12 = pnand %p6225_p4, %p6219_p11 }
  0xba   : > { %6229 = shalt.err (!%p6226_p12)
}
  0xbb   : > { %5816 = dma.hbm_to_vmem [thread:$0]  (!%p6578_p2), %s6616_s1, 256, %s330_s16, %s317_s4  }
  0xbc   : > { %p8017_p7 = scmp.ne.s32.totalorder %s8001_s10, 0 }
  0xbd   : > { %p8018_p0 = scmp.eq.s32.totalorder (!%p8017_p7), %s6414_s9, 0 }
  0xbe   : > { %338 = sbr.rel (%p8017_p7) target bundleno = 1735 (0x6c7), region = 48 }
  0xc5   : > { %6283 = dma.done.wait (%p8018_p0), [#allocation5], 16   ;;  %p8019_p3 = pmov %p8018_p0 }
  0xc6   : > { %s6646_s5 = sand.u32 1, %s6312_s25   ;;  %p8020_p10 = scmp.ne.s32.totalorder %s8011_s15, 0 }
  0xc7   : > { %6285 = vsyncadd (%p8019_p3), [#allocation5], 4294967280  ;;  %s4265_s12 = sshll.u32 %s6646_s5, 5  ;;  %s345_s3 = scalar_lea.sflag [#allocation3], %s6646_s5 }
  0xc8   : > { %s6650_s30 = scalar_lea.vmem [#allocation6], %s4265_s12 }
  0xc9   : > { %6287 = dma.done.wait (%p8020_p10), %s345_s3, 512  }
  0xca   : > { %6289 = vsyncadd (%p8020_p10), %s345_s3, 4294966784  ;;  %s353_s1 = sand.u32 1, %s6414_s9   ;;  %s4266_s4 = sshll.u32 %s6646_s5, 4 }
  0xcb   : > { %s354_s10 = scalar_lea.sflag [#allocation8], %s353_s1  ;;  %s357_s16 = scalar_lea.vmem [#allocation7], %s4266_s4 }
  0xcc   : > { %6291 = dma.done.wait (%p8020_p10), %s354_s10, 256  }
  0xcd   : > { %6293 = vsyncadd (%p8020_p10), %s354_s10, 4294967040  ;;  %p8021_p2 = pmov %p8018_p0 }
  0xce   : > { %p8022_p1 = pmov %p8018_p0 }
  0xcf   : > { %6295 = dma.done.wait (%p8021_p2), [#allocation8], 1536  }
  0xd0   : > { %6297 = vsyncadd (%p8022_p1), [#allocation8], 4294965760  ;;  %p8023_p8 = pmov %p8018_p0 }
  0xd1   : > { %p8024_p5 = pmov %p8018_p0 }
  0xd2   : > { %6299 = dma.done.wait (%p8023_p8), [#allocation11], 12544  }
  0xd3   : > { %6301 = vsyncadd (%p8024_p5), [#allocation11], 4294954752 }
  0xd4   : > { %374 = sfence }
  0xd5   : > { %v655_v0 = vld [vmem:[%s6650_s30] sm:$0xff]  ;;  %v657_v1 = vld [vmem:[%s6650_s30 + $0x10] sm:$0xff]  ;;  %p411_p6 = scmp.ge.s32.totalorder %s6320_s27, 1  ;;  %v419_v3 = vlaneseq  ;;  %v6338_v21 = vmov 0.0   ;;  %v656_v27 = vld [vmem:[%s6650_s30 + $0x8] sm:$0xff]  ;;  %s405_s1 = scalar_lea.vmem [#allocation13], %s4266_s4 }
  0xd6   : > { %662 = vxpose.xlu0.b32.start.end [1/1] (short) %v655_v0, 128  ;;  %726 = vxpose.xlu1.b32.start.end [1/1] (short) %v657_v1, 128  ;;  %v6681_v6 = vld [vmem:[%s357_s16] ss:$4 sm:$0xf]  ;;  %v6683_v7 = vld [vmem:[%s357_s16 + $0x1] ss:$4 sm:$0xf] }
  0xd7   : > { %s6675_s15 = scalar_select %p411_p6, 1, 0  ;;  %v6678_v4 = vshrl.u32 %v419_v3, 7  ;;  %v6692_v11 = vld [vmem:[%s357_s16 + $0x2] ss:$4 sm:$0xf] }
  0xd8   : > { %v658_v60 = vld [vmem:[%s6650_s30 + $0x18] sm:$0xff]  ;;  %s4495_s30 = sshll.u32 %s6320_s27, 8  ;;  %s4078_s10 = sshll.u32 %s405_s1, 4  ;;  %s7926_s10 = int_to_ptr.vmem [resolvable:$true] %s4078_s10 }
  0xd9   : > { %s4297_s17 = sshll.u32 %s6675_s15, 3  ;;  %v429_v5 = vsub.s32 0, %v6678_v4  ;;  %v433_v8 = vsub.s32 1, %v6678_v4  ;;  %v6708_v15 = vadd.s32 8, %v6678_v4  ;;  %v6727_v17 = vadd.s32 16, %v6678_v4  ;;  %s647_s9 = smul.u32 48, %s6675_s15 }
  0xda   : > { %s660_s11 = scalar_lea.vmem [#allocation10], %s4297_s17  ;;  %v6752_v19 = vadd.s32 24, %v6678_v4  ;;  %v6782_v24 = vadd.s32 32, %v6678_v4  ;;  %v6812_v31 = vadd.s32 40, %v6678_v4  ;;  %v437_v45 = vsub.s32 2, %v6678_v4  ;;  %s4428_s8 = smul.u32 384, %s6675_s15 }
  0xdb   : > { %v661_v2 = vld [vmem:[%s660_s11] sm:$0xff]  ;;  %v6687_v9 = vrot.slane %v6681_v6, %v429_v5  ;;  %v6690_v10 = vrot.slane %v6683_v7, %v429_v5  ;;  %v6695_v12 = vrot.slane %v6681_v6, %v433_v8  ;;  %v6698_v13 = vrot.slane %v6683_v7, %v433_v8  ;;  %s6987_s14 = scalar_lea.vmem [#allocation9], %s647_s9  ;;  %s4426_s13 = sshll.u32 %s6675_s15, 2 }
  0xdc   : > { %4947 = vmatprep.subr.mxu0 %v661_v2  ;;  %5709 = vmatprep.subr.mxu1 %v661_v2  ;;  %v6701_v14 = vrot.slane %v6692_v11, %v429_v5  ;;  %v6711_v16 = vrot.slane %v6692_v11, %v433_v8  ;;  %v441_v46 = vsub.s32 3, %v6678_v4  ;;  %v6845_v47 = vrot.slane %v6681_v6, %v437_v45  ;;  %s7125_s23 = scalar_lea.vmem [#allocation12], %s4428_s8  ;;  %s7327_s12 = scalar_lea.vmem %s7981_s6, %s4426_s13 }
  0xdd   : > { %4948 = vmatpush3.msra.mxu0 %v661_v2  ;;  %5710 = vmatpush3.msra.mxu1 %v661_v2  ;;  %vm7989_vm0 = vcmp.eq.s32.totalorder %v6678_v4, %v6687_v9  ;;  %vm485_vm1 = vcmp.eq.s32.totalorder %v6678_v4, %v6690_v10  ;;  %vm7991_vm2 = vcmp.eq.s32.totalorder %v6678_v4, %v6695_v12  ;;  %s3826_s3 = sld [smem:[#allocation2 + %s6675_s15]]  ;;  %s7924_s17 = scalar_lea.hbm %s7982_s7, %s4495_s30 }
  0xde   : > { %vm486_vm3 = vcmp.eq.s32.totalorder %v6678_v4, %v6698_v13  ;;  %vm509_vm4 = vmor %vm7989_vm0, %vm485_vm1  ;;  %vm551_vm5 = vcmp.eq.s32.totalorder %v6678_v4, %v6701_v14  ;;  %vm7988_vm6 = vcmp.eq.s32.totalorder %v6708_v15, %v6687_v9  ;;  %vm489_vm7 = vcmp.eq.s32.totalorder %v6708_v15, %v6690_v10  ;;  %s4065_s11 = scalar_lea.sflag [#allocation4], %s6646_s5  ;;  %s6230_s9 = scalar_lea.vmem %s7926_s10, 256 }
  0xdf   : > { %vm510_vm8 = vmor %vm7991_vm2, %vm486_vm3  ;;  %vm552_vm9 = vcmp.eq.s32.totalorder %v6678_v4, %v6711_v16  ;;  %vm7990_vm11 = vcmp.eq.s32.totalorder %v6708_v15, %v6695_v12  ;;  %vm490_vm12 = vcmp.eq.s32.totalorder %v6708_v15, %v6698_v13  ;;  %vm555_vm14 = vcmp.eq.s32.totalorder %v6708_v15, %v6701_v14  ;;  %p6231_p9 = scmp.ne.s32.totalorder %s7926_s10, %s6230_s9  ;;  %p8051_p11 = scmp.ne.s32.totalorder %s8012_s18, 0 }
  0xe0   : > { %vm6734_vm10 = vmor %vm509_vm4, %vm551_vm5  ;;  %vm451_vm1 = vcmp.eq.s32.totalorder %v6727_v17, %v6687_v9  ;;  %vm493_vm3 = vcmp.eq.s32.totalorder %v6727_v17, %v6690_v10  ;;  %vm556_vm5 = vcmp.eq.s32.totalorder %v6708_v15, %v6711_v16  ;;  %vm559_vm0 = vcmp.eq.s32.totalorder %v6727_v17, %v6701_v14  ;;  %s6340_s27 = smov [#allocation13]  }
  0xe1   : > { %vm513_vm13 = vmor %vm7988_vm6, %vm489_vm7  ;;  %v4273_v22 = vsel %vm6734_vm10, 1.0, %v6338_v21  ;;  %vm560_vm10 = vcmp.eq.s32.totalorder %v6727_v17, %v6711_v16  ;;  %v6848_v48 = vrot.slane %v6683_v7, %v437_v45  ;;  %v6851_v49 = vrot.slane %v6681_v6, %v441_v46  ;;  %p6232_p13 = pnand %p6231_p9, %p8051_p11  ;;  %s6234_s4 = sshll.u32 %s6340_s27, 4  ;;  %s6235_s4 = int_to_ptr.vmem [resolvable:$false] %s6234_s4 }
  0xe2   : > { %vm576_vm15 = vmor %vm510_vm8, %vm552_vm9  ;;  %vm452_vm8 = vcmp.eq.s32.totalorder %v6727_v17, %v6695_v12  ;;  %vm494_vm9 = vcmp.eq.s32.totalorder %v6727_v17, %v6698_v13  ;;  %v6854_v50 = vrot.slane %v6683_v7, %v441_v46  ;;  %v6857_v51 = vrot.slane %v6692_v11, %v437_v45  ;;  %p6237_p12 = scmp.lt.s32.totalorder %s7926_s10, %s6235_s4 }
  0xe3   : > { %vm514_vm4 = vmor %vm7990_vm11, %vm490_vm12  ;;  %v4274_v23 = vsel %vm576_vm15, 1.0, %v6338_v21  ;;  %v6864_v52 = vrot.slane %v6692_v11, %v441_v46  ;;  %v650_v11 = vld [vmem:[%s6987_s14 + $0x8] sm:$0xff]  ;;  %p6233_p4 = pneg %p6232_p13 }
  0xe4   : > { %vm6759_vm7 = vmor %vm513_vm13, %vm555_vm14  ;;  %vm455_vm13 = vcmp.eq.s32.totalorder %v6752_v19, %v6687_v9  ;;  %vm497_vm14 = vcmp.eq.s32.totalorder %v6752_v19, %v6690_v10  ;;  %v5889_v26 = vpack.i.bf16 %v4274_v23, %v4273_v22 }
  0xe5   : > { %vm517_vm6 = vmor %vm451_vm1, %vm493_vm3  ;;  %vm456_vm1 = vcmp.eq.s32.totalorder %v6752_v19, %v6695_v12  ;;  %vm498_vm3 = vcmp.eq.s32.totalorder %v6752_v19, %v6698_v13  ;;  %v4277_v28 = vsel %vm6759_vm7, 1.0, %v6338_v21  ;;  %vm460_vm7 = vcmp.eq.s32.totalorder %v6782_v24, %v6695_v12 }
  0xe6   : > { %vm580_vm12 = vmor %vm514_vm4, %vm556_vm5  ;;  %vm563_vm5 = vcmp.eq.s32.totalorder %v6752_v19, %v6701_v14 }
  0xe7   : > { %vm518_vm11 = vmor %vm452_vm8, %vm494_vm9  ;;  %v4278_v29 = vsel %vm580_vm12, 1.0, %v6338_v21  ;;  %vm564_vm9 = vcmp.eq.s32.totalorder %v6752_v19, %v6711_v16  ;;  %vm502_vm12 = vcmp.eq.s32.totalorder %v6782_v24, %v6698_v13 }
  0xe8   : > { %vm6786_vm15 = vmor %vm517_vm6, %vm559_vm0  ;;  %vm459_vm6 = vcmp.eq.s32.totalorder %v6782_v24, %v6687_v9  ;;  %v5891_v32 = vpack.i.bf16 %v4278_v29, %v4277_v28  ;;  %v652_v28 = vld [vmem:[%s6987_s14 + $0x18] sm:$0xff] }
  0xe9   : > { %vm521_vm4 = vmor %vm455_vm13, %vm497_vm14  ;;  %vm501_vm13 = vcmp.eq.s32.totalorder %v6782_v24, %v6690_v10  ;;  %v4281_v33 = vsel %vm6786_vm15, 1.0, %v6338_v21  ;;  %vm464_vm15 = vcmp.eq.s32.totalorder %v6812_v31, %v6695_v12 }
  0xea   : > { %vm522_vm8 = vmor %vm456_vm1, %vm498_vm3  ;;  %vm567_vm3 = vcmp.eq.s32.totalorder %v6782_v24, %v6701_v14 }
  0xeb   : > { %vm584_vm0 = vmor %vm518_vm11, %vm560_vm10 }
  0xec   : > { %vm6803_vm14 = vmor %vm521_vm4, %vm563_vm5  ;;  %v4282_v34 = vsel %vm584_vm0, 1.0, %v6338_v21  ;;  %vm568_vm4 = vcmp.eq.s32.totalorder %v6782_v24, %v6711_v16  ;;  %vm463_vm5 = vcmp.eq.s32.totalorder %v6812_v31, %v6687_v9  ;;  %vm506_vm0 = vcmp.eq.s32.totalorder %v6812_v31, %v6698_v13 }
  0xed   : > { %vm588_vm11 = vmor %vm522_vm8, %vm564_vm9  ;;  %vm505_vm8 = vcmp.eq.s32.totalorder %v6812_v31, %v6690_v10  ;;  %v5893_v35 = vpack.i.bf16 %v4282_v34, %v4281_v33  ;;  %v4285_v36 = vsel %vm6803_vm14, 1.0, %v6338_v21  ;;  %vm487_vm14 = vcmp.eq.s32.totalorder %v6678_v4, %v6848_v48  ;;  %v649_v10 = vld [vmem:[%s6987_s14] sm:$0xff] }
  0xee   : > { %vm525_vm1 = vmor %vm459_vm6, %vm501_vm13  ;;  %v4286_v37 = vsel %vm588_vm11, 1.0, %v6338_v21  ;;  %vm7995_vm11 = vcmp.eq.s32.totalorder %v6678_v4, %v6851_v49 }
  0xef   : > { %vm526_vm10 = vmor %vm460_vm7, %vm502_vm12  ;;  %vm571_vm7 = vcmp.eq.s32.totalorder %v6812_v31, %v6701_v14  ;;  %v5895_v38 = vpack.i.bf16 %v4286_v37, %v4285_v36  ;;  %v5537_v14 = vpack.c.bf16 %v650_v11, %v649_v10 }
  0xf0   : > { %vm591_vm9 = vmor %vm525_vm1, %vm567_vm3  ;;  %vm572_vm1 = vcmp.eq.s32.totalorder %v6812_v31, %v6711_v16 }
  0xf1   : > { %vm592_vm6 = vmor %vm526_vm10, %vm568_vm4  ;;  %v4289_v39 = vsel %vm591_vm9, 1.0, %v6338_v21  ;;  %vm488_vm10 = vcmp.eq.s32.totalorder %v6678_v4, %v6854_v50  ;;  %vm491_vm9 = vcmp.eq.s32.totalorder %v6708_v15, %v6848_v48  ;;  %5538 = vmatprep.subr.bf16.mxu0 %v5537_v14 }
  0xf2   : > { %vm529_vm13 = vmor %vm463_vm5, %vm505_vm8  ;;  %v4290_v40 = vsel %vm592_vm6, 1.0, %v6338_v21  ;;  %vm553_vm5 = vcmp.eq.s32.totalorder %v6678_v4, %v6857_v51  ;;  %vm7993_vm8 = vcmp.eq.s32.totalorder %v6708_v15, %v6845_v47 }
  0xf3   : > { %vm530_vm12 = vmor %vm464_vm15, %vm506_vm0  ;;  %v5897_v41 = vpack.i.bf16 %v4290_v40, %v4289_v39  ;;  %vm554_vm0 = vcmp.eq.s32.totalorder %v6678_v4, %v6864_v52 }
  0xf4   : > { %vm595_vm3 = vmor %vm529_vm13, %vm571_vm7  ;;  %vm7994_vm13 = vcmp.eq.s32.totalorder %v6708_v15, %v6851_v49  ;;  %vm492_vm7 = vcmp.eq.s32.totalorder %v6708_v15, %v6854_v50 }
  0xf5   : > { %vm596_vm2 = vmor %vm530_vm12, %vm572_vm1  ;;  %v4293_v42 = vsel %vm595_vm3, 1.0, %v6338_v21  ;;  %vm557_vm1 = vcmp.eq.s32.totalorder %v6708_v15, %v6857_v51 }
  0xf6   : > { %v4294_v43 = vsel %vm596_vm2, 1.0, %v6338_v21  ;;  %vm7992_vm2 = vcmp.eq.s32.totalorder %v6678_v4, %v6845_v47  ;;  %vm512_vm15 = vmor %vm7995_vm11, %vm488_vm10  ;;  %vm495_vm10 = vcmp.eq.s32.totalorder %v6727_v17, %v6848_v48  ;;  %vm458_vm11 = vcmp.eq.s32.totalorder %v6752_v19, %v6851_v49 }
  0xf7   : > { %v5899_v44 = vpack.i.bf16 %v4294_v43, %v4293_v42  ;;  %vm511_vm4 = vmor %vm7992_vm2, %vm487_vm14  ;;  %vm453_vm14 = vcmp.eq.s32.totalorder %v6727_v17, %v6845_v47 }
  0xf8   : > { %vm577_vm6 = vmor %vm511_vm4, %vm553_vm5  ;;  %vm558_vm5 = vcmp.eq.s32.totalorder %v6708_v15, %v6864_v52 }
  0xf9   : > { %vm515_vm12 = vmor %vm7993_vm8, %vm491_vm9  ;;  %vm454_vm9 = vcmp.eq.s32.totalorder %v6727_v17, %v6851_v49  ;;  %vm561_vm8 = vcmp.eq.s32.totalorder %v6727_v17, %v6857_v51  ;;  %v4275_v54 = vsel %vm577_vm6, 1.0, %v6338_v21  ;;  %vm562_vm6 = vcmp.eq.s32.totalorder %v6727_v17, %v6864_v52 }
  0xfa   : > { %vm578_vm3 = vmor %vm512_vm15, %vm554_vm0  ;;  %vm496_vm15 = vcmp.eq.s32.totalorder %v6727_v17, %v6854_v50 }
  0xfb   : > { %vm516_vm4 = vmor %vm7994_vm13, %vm492_vm7  ;;  %v4276_v55 = vsel %vm578_vm3, 1.0, %v6338_v21 }
  0xfc   : > { %vm6902_vm2 = vmor %vm515_vm12, %vm557_vm1  ;;  %vm457_vm12 = vcmp.eq.s32.totalorder %v6752_v19, %v6845_v47  ;;  %vm499_vm1 = vcmp.eq.s32.totalorder %v6752_v19, %v6848_v48  ;;  %v5981_v57 = vpack.i.bf16 %v4276_v55, %v4275_v54 }
  0xfd   : > { %vm519_vm0 = vmor %vm453_vm14, %vm495_vm10  ;;  %vm500_vm14 = vcmp.eq.s32.totalorder %v6752_v19, %v6854_v50  ;;  %v4279_v58 = vsel %vm6902_vm2, 1.0, %v6338_v21  ;;  %vm462_vm2 = vcmp.eq.s32.totalorder %v6782_v24, %v6851_v49 }
  0xfe   : > { %vm582_vm7 = vmor %vm516_vm4, %vm558_vm5  ;;  %vm565_vm4 = vcmp.eq.s32.totalorder %v6752_v19, %v6857_v51 }
  0xff   : > { %vm520_vm13 = vmor %vm454_vm9, %vm496_vm15  ;;  %v4280_v59 = vsel %vm582_vm7, 1.0, %v6338_v21  ;;  %vm566_vm9 = vcmp.eq.s32.totalorder %v6752_v19, %v6864_v52  ;;  %vm461_vm15 = vcmp.eq.s32.totalorder %v6782_v24, %v6845_v47 }
 0x100   : > { %vm6924_vm10 = vmor %vm519_vm0, %vm561_vm8  ;;  %vm503_vm0 = vcmp.eq.s32.totalorder %v6782_v24, %v6848_v48  ;;  %v5983_v62 = vpack.i.bf16 %v4280_v59, %v4279_v58 }
 0x101   : > { %vm523_vm3 = vmor %vm457_vm12, %vm499_vm1  ;;  %v4283_v0 = vsel %vm6924_vm10, 1.0, %v6338_v21  ;;  %vm569_vm1 = vcmp.eq.s32.totalorder %v6782_v24, %v6857_v51 }
 0x102   : > { %vm524_vm5 = vmor %vm458_vm11, %vm500_vm14  ;;  %vm504_vm11 = vcmp.eq.s32.totalorder %v6782_v24, %v6854_v50 }
 0x103   : > { %vm586_vm8 = vmor %vm520_vm13, %vm562_vm6  ;;  %vm570_vm6 = vcmp.eq.s32.totalorder %v6782_v24, %v6864_v52 }
 0x104   : > { %vm6941_vm12 = vmor %vm523_vm3, %vm565_vm4  ;;  %v4284_v1 = vsel %vm586_vm8, 1.0, %v6338_v21  ;;  %vm465_vm3 = vcmp.eq.s32.totalorder %v6812_v31, %v6845_v47  ;;  %vm507_vm4 = vcmp.eq.s32.totalorder %v6812_v31, %v6848_v48  ;;  %vm508_vm8 = vcmp.eq.s32.totalorder %v6812_v31, %v6854_v50 }
 0x105   : > { %vm6949_vm7 = vmor %vm524_vm5, %vm566_vm9  ;;  %vm790_vm5 = vcmask 64512   ;;  %v5985_v2 = vpack.i.bf16 %v4284_v1, %v4283_v0  ;;  %vm466_vm9 = vcmp.eq.s32.totalorder %v6812_v31, %v6851_v49  ;;  %v4287_v5 = vsel %vm6941_vm12, 1.0, %v6338_v21 }
 0x106   : > { %vm527_vm13 = vmor %vm461_vm15, %vm503_vm0  ;;  %v4288_v6 = vsel %vm6949_vm7, 1.0, %v6338_v21 }
 0x107   : > { %vm528_vm14 = vmor %vm462_vm2, %vm504_vm11  ;;  %vm573_vm2 = vcmp.eq.s32.totalorder %v6812_v31, %v6857_v51  ;;  %v5987_v13 = vpack.i.bf16 %v4288_v6, %v4287_v5 }
 0x108   : > { %vm6965_vm10 = vmor %vm527_vm13, %vm569_vm1  ;;  %vm574_vm13 = vcmp.eq.s32.totalorder %v6812_v31, %v6864_v52  ;;  %vm1496_vm1 = vcmask 392192  }
 0x109   : > { %vm594_vm15 = vmor %vm528_vm14, %vm570_vm6  ;;  %v4291_v16 = vsel %vm6965_vm10, 1.0, %v6338_v21  ;;  %vm8043_vm14 = vcmp.eq.s32.totalorder %v6678_v4, %v6695_v12 }
 0x10a   : > { %vm531_vm0 = vmor %vm465_vm3, %vm507_vm4  ;;  %v4292_v17 = vsel %vm594_vm15, 1.0, %v6338_v21 }
 0x10b   : > { %vm532_vm11 = vmor %vm466_vm9, %vm508_vm8  ;;  %v5989_v20 = vpack.i.bf16 %v4292_v17, %v4291_v16 }
 0x10c   : > { %vm597_vm12 = vmor %vm531_vm0, %vm573_vm2 }
 0x10d   : > { %vm598_vm7 = vmor %vm532_vm11, %vm574_vm13  ;;  %v4295_v22 = vsel %vm597_vm12, 1.0, %v6338_v21 }
 0x10e   : > { %v4296_v23 = vsel %vm598_vm7, 1.0, %v6338_v21  ;;  %v653_v21 = vld [vmem:[%s6987_s14 + $0x20] sm:$0xff] }
 0x113   : > { %694 = vxpose.xlu0.b32.start.end [1/1] (short) %v656_v27, 128  ;;  %5890 = vxpose.xlu1.b32.start [1/6] (short) %v5889_v26, 128  ;;  %v5991_v26 = vpack.i.bf16 %v4296_v23, %v4295_v22  ;;  %v651_v27 = vld [vmem:[%s6987_s14 + $0x10] sm:$0xff] }
 0x114   : > { %v5541_v29 = vpack.c.bf16 %v652_v28, %v651_v27 }
 0x117   : > { %5892 = vxpose.xlu1.b32.cont [2/6] (short) %v5891_v32, 128  ;;  %v654_v32 = vld [vmem:[%s6987_s14 + $0x28] sm:$0xff]  ;;  %s6236_s14 = scalar_lea.vmem %s6235_s4, 512 }
 0x118   : > { %v5545_v33 = vpack.c.bf16 %v654_v32, %v653_v21  ;;  %p6238_p7 = scmp.lt.s32.totalorder %s6236_s14, %s6230_s9 }
 0x11a   : > { %p6239_p0 = por %p6238_p7, %p6237_p12 }
 0x11b   : > { %5894 = vxpose.xlu1.b32.cont [3/6] (short) %v5893_v35, 128 }
 0x11c   : > { %p6240_p3 = pnand %p6239_p0, %p6233_p4 }
 0x11f   : > { %5896 = vxpose.xlu1.b32.cont [4/6] (short) %v5895_v38, 128 }
 0x123   : > { %5898 = vxpose.xlu1.b32.cont [5/6] (short) %v5897_v41, 128 }
 0x127   : > { %5900 = vxpose.xlu1.b32.end [6/6] (short) %v5899_v44, 128 }
 0x150   : > { %5982 = vxpose.xlu0.b32.start [1/6] (short) %v5981_v57, 128  ;;  %758 = vxpose.xlu1.b32.start.end [1/1] (short) %v658_v60, 128 }
 0x154   : > { %5984 = vxpose.xlu0.b32.cont [2/6] (short) %v5983_v62, 128 }
 0x156   : > { %v678_v7 = vpop.trf.xlu0  ;;  %v6980_v8 = vpop.trf.xlu1 }
 0x157   : > { %4949 = vmatprep.mubr.msk.f32.mxu0 %vm790_vm5, %v678_v7 }
 0x158   : > { %5986 = vxpose.xlu0.b32.cont [3/6] (short) %v5985_v2, 128 }
 0x15a   : > { %v679_v18 = vpop.trf.xlu0  ;;  %v6995_v19 = vpop.trf.xlu1 }
 0x15b   : > { %4950 = vmatmul.mubr.msk.f32.vlgmr.msra.gmra.mrb[0].mxu0 %vm790_vm5, %v679_v18 }
 0x15c   : > { %5988 = vxpose.xlu0.b32.cont [4/6] (short) %v5987_v13, 128  ;;  %5540 = vmatpush3.bf16.msra.mxu0 %v5537_v14 }
 0x15d   : > { %5542 = vmatprep.subr.bf16.mxu0 %v5541_v29 }
 0x15e   : > { %v680_v24 = vpop.trf.xlu0  ;;  %v7000_v25 = vpop.trf.xlu1 }
 0x15f   : > { %4952 = vmatprep.mubr.msk.f32.mxu0 %vm790_vm5, %v680_v24 }
 0x160   : > { %5990 = vxpose.xlu0.b32.cont [5/6] (short) %v5989_v20, 128  ;;  %5544 = vmatpush3.bf16.msra.mxu0 %v5541_v29 }
 0x161   : > { %5546 = vmatprep.subr.bf16.mxu0 %v5545_v33 }
 0x162   : > { %v681_v30 = vpop.trf.xlu0  ;;  %v7005_v31 = vpop.trf.xlu1 }
 0x163   : > { %4953 = vmatmul.mubr.msk.f32.gmra.mrb[2].mxu0 %vm790_vm5, %v681_v30 }
 0x164   : > { %5992 = vxpose.xlu0.b32.end [6/6] (short) %v5991_v26, 128  ;;  %5548 = vmatpush3.bf16.msra.mxu0 %v5545_v33 }
 0x166   : > { %v682_v34 = vpop.trf.xlu0  ;;  %v7010_v35 = vpop.trf.xlu1 }
 0x167   : > { %4955 = vmatprep.mubr.msk.f32.mxu0 %vm790_vm5, %v682_v34 }
 0x16a   : > { %v683_v36 = vpop.trf.xlu0  ;;  %v7013_v37 = vpop.trf.xlu1 }
 0x16b   : > { %4956 = vmatmul.mubr.msk.f32.gmra.mrb[4].mxu0 %vm790_vm5, %v683_v36 }
 0x16e   : > { %v684_v38 = vpop.trf.xlu0  ;;  %v7016_v39 = vpop.trf.xlu1 }
 0x16f   : > { %4958 = vmatprep.mubr.msk.f32.mxu0 %vm790_vm5, %v684_v38 }
 0x172   : > { %v685_v40 = vpop.trf.xlu0  ;;  %v7019_v41 = vpop.trf.xlu1 }
 0x173   : > { %4959 = vmatmul.mubr.msk.f32.gmra.mrb[6].mxu0 %vm790_vm5, %v685_v40 }
 0x176   : > { %v686_v42 = vpop.trf.xlu0  ;;  %v7022_v43 = vpop.trf.xlu1 }
 0x177   : > { %4961 = vmatprep.mubr.msk.f32.mxu0 %vm790_vm5, %v686_v42 }
 0x17a   : > { %v687_v44 = vpop.trf.xlu0  ;;  %v7025_v45 = vpop.trf.xlu1 }
 0x17b   : > { %4962 = vmatmul.mubr.msk.f32.gmra.mrb[8].mxu0 %vm790_vm5, %v687_v44 }
 0x17e   : > { %v688_v46 = vpop.trf.xlu0  ;;  %v752_v48 = vpop.trf.xlu1 }
 0x17f   : > { %4964 = vmatprep.mubr.msk.f32.mxu0 %vm790_vm5, %v688_v46  ;;  %5012 = vmatprep.mubr.msk.f32.mxu1 %vm790_vm5, %v752_v48 }
 0x182   : > { %v689_v50 = vpop.trf.xlu0  ;;  %v753_v51 = vpop.trf.xlu1 }
 0x183   : > { %4965 = vmatmul.mubr.msk.f32.gmra.mrb[10].mxu0 %vm790_vm5, %v689_v50  ;;  %5013 = vmatmul.mubr.msk.f32.vlgmr.msra.gmra.mrb[0].mxu1 %vm790_vm5, %v753_v51  ;;  %v2215_v50 = vld [vmem:[%s7125_s23 + $0x18] sm:$0xff] }
 0x186   : > { %v690_v52 = vpop.trf.xlu0  ;;  %v754_v53 = vpop.trf.xlu1 }
 0x187   : > { %4967 = vmatprep.mubr.msk.f32.mxu0 %vm790_vm5, %v690_v52  ;;  %5015 = vmatprep.mubr.msk.f32.mxu1 %vm790_vm5, %v754_v53 }
 0x18a   : > { %v691_v54 = vpop.trf.xlu0  ;;  %v755_v55 = vpop.trf.xlu1 }
 0x18b   : > { %4968 = vmatmul.mubr.msk.f32.gmra.mrb[12].mxu0 %vm790_vm5, %v691_v54  ;;  %5016 = vmatmul.mubr.msk.f32.gmra.mrb[2].mxu1 %vm790_vm5, %v755_v55  ;;  %v2216_v55 = vld [vmem:[%s7125_s23 + $0x20] sm:$0xff] }
 0x18e   : > { %v692_v56 = vpop.trf.xlu0  ;;  %v756_v57 = vpop.trf.xlu1 }
 0x18f   : > { %4970 = vmatprep.mubr.msk.f32.mxu0 %vm790_vm5, %v692_v56  ;;  %5018 = vmatprep.mubr.msk.f32.mxu1 %vm790_vm5, %v756_v57  ;;  %v2217_v56 = vld [vmem:[%s7125_s23 + $0x28] sm:$0xff] }
 0x192   : > { %v693_v58 = vpop.trf.xlu0  ;;  %v757_v59 = vpop.trf.xlu1 }
 0x193   : > { %4971 = vmatmul.mubr.msk.f32.gmra.mrb[14].mxu0 %vm790_vm5, %v693_v58  ;;  %5019 = vmatmul.mubr.msk.f32.gmra.mrb[4].mxu1 %vm790_vm5, %v757_v59  ;;  %v5557_v58 = vpack.c.bf16 %v2217_v56, %v2216_v55 }
 0x196   : > { %v710_v60 = vpop.trf.xlu0  ;;  %v7040_v61 = vpop.trf.xlu1 }
 0x197   : > { %4973 = vmatprep.mubr.msk.f32.mxu0 %vm790_vm5, %v710_v60 }
 0x19a   : > { %v711_v62 = vpop.trf.xlu0  ;;  %v7043_v63 = vpop.trf.xlu1 }
 0x19b   : > { %4974 = vmatmul.mubr.msk.f32.gmra.mrb[16].mxu0 %vm790_vm5, %v711_v62  ;;  %v5907_v51 = vunpack.i.l.bf16 %v7043_v63 }
 0x19e   : > { %v712_v0 = vpop.trf.xlu0  ;;  %v7046_v1 = vpop.trf.xlu1 }
 0x19f   : > { %4976 = vmatprep.mubr.msk.f32.mxu0 %vm790_vm5, %v712_v0  ;;  %v5912_v52 = vunpack.i.l.bf16 %v7046_v1  ;;  %v2218_v0 = vld [vmem:[%s7125_s23 + $0x30] sm:$0xff] }
 0x1a2   : > { %v713_v2 = vpop.trf.xlu0  ;;  %v7049_v3 = vpop.trf.xlu1 }
 0x1a3   : > { %4977 = vmatmul.mubr.msk.f32.gmra.mrb[18].mxu0 %vm790_vm5, %v713_v2  ;;  %v5917_v57 = vunpack.i.l.bf16 %v7049_v3  ;;  %v2219_v2 = vld [vmem:[%s7125_s23 + $0x38] sm:$0xff] }
 0x1a6   : > { %v714_v5 = vpop.trf.xlu0  ;;  %v7052_v6 = vpop.trf.xlu1 }
 0x1a7   : > { %4979 = vmatprep.mubr.msk.f32.mxu0 %vm790_vm5, %v714_v5  ;;  %v5922_v59 = vunpack.i.l.bf16 %v7052_v6 }
 0x1aa   : > { %v715_v7 = vpop.trf.xlu0  ;;  %v7055_v10 = vpop.trf.xlu1 }
 0x1ab   : > { %4980 = vmatmul.mubr.msk.f32.gmra.mrb[20].mxu0 %vm790_vm5, %v715_v7  ;;  %v5927_v5 = vunpack.i.l.bf16 %v7055_v10  ;;  %v5561_v7 = vpack.c.bf16 %v2219_v2, %v2218_v0  ;;  %v5910_v2 = vunpack.i.h.bf16 %v7043_v63  ;;  %v5930_v63 = vunpack.i.h.bf16 %v7055_v10 }
 0x1ae   : > { %v716_v11 = vpop.trf.xlu0  ;;  %v7058_v13 = vpop.trf.xlu1 }
 0x1af   : > { %4982 = vmatprep.mubr.msk.f32.mxu0 %vm790_vm5, %v716_v11  ;;  %v5932_v11 = vunpack.i.l.bf16 %v7058_v13 }
 0x1b2   : > { %v717_v14 = vpop.trf.xlu0  ;;  %v7061_v16 = vpop.trf.xlu1 }
 0x1b3   : > { %4983 = vmatmul.mubr.msk.f32.gmra.mrb[22].mxu0 %vm790_vm5, %v717_v14 }
 0x1b6   : > { %v718_v17 = vpop.trf.xlu0  ;;  %v7064_v18 = vpop.trf.xlu1 }
 0x1b7   : > { %4985 = vmatprep.mubr.msk.f32.mxu0 %vm790_vm5, %v718_v17 }
 0x1ba   : > { %v719_v20 = vpop.trf.xlu0  ;;  %v7067_v22 = vpop.trf.xlu1 }
 0x1bb   : > { %4986 = vmatmul.mubr.msk.f32.gmra.mrb[24].mxu0 %vm790_vm5, %v719_v20  ;;  %v2220_v20 = vld [vmem:[%s7125_s23 + $0x40] sm:$0xff]  ;;  %v5950_v10 = vunpack.i.h.bf16 %v7067_v22 }
 0x1be   : > { %v720_v23 = vpop.trf.xlu0  ;;  %v7070_v24 = vpop.trf.xlu1 }
 0x1bf   : > { %4988 = vmatprep.mubr.msk.f32.mxu0 %vm790_vm5, %v720_v23  ;;  %v2221_v23 = vld [vmem:[%s7125_s23 + $0x48] sm:$0xff] }
 0x1c2   : > { %v721_v26 = vpop.trf.xlu0  ;;  %v7073_v27 = vpop.trf.xlu1 }
 0x1c3   : > { %4989 = vmatmul.mubr.msk.f32.gmra.mrb[26].mxu0 %vm790_vm5, %v721_v26  ;;  %v5937_v26 = vunpack.i.l.bf16 %v7061_v16 }
 0x1c6   : > { %v722_v28 = vpop.trf.xlu0  ;;  %v7076_v29 = vpop.trf.xlu1 }
 0x1c7   : > { %4991 = vmatprep.mubr.msk.f32.mxu0 %vm790_vm5, %v722_v28  ;;  %v5565_v28 = vpack.c.bf16 %v2221_v23, %v2220_v20 }
 0x1ca   : > { %v723_v30 = vpop.trf.xlu0  ;;  %v7079_v21 = vpop.trf.xlu1 }
 0x1cb   : > { %4992 = vmatmul.mubr.msk.f32.gmra.mrb[28].mxu0 %vm790_vm5, %v723_v30  ;;  %v5942_v30 = vunpack.i.l.bf16 %v7064_v18  ;;  %v5967_v55 = vunpack.i.l.bf16 %v7079_v21 }
 0x1ce   : > { %v724_v32 = vpop.trf.xlu0  ;;  %v7082_v33 = vpop.trf.xlu1 }
 0x1cf   : > { %4994 = vmatprep.mubr.msk.f32.mxu0 %vm790_vm5, %v724_v32 }
 0x1d2   : > { %v725_v34 = vpop.trf.xlu0  ;;  %v7085_v36 = vpop.trf.xlu1 }
 0x1d3   : > { %4995 = vmatmul.mubr.msk.f32.gmra.mrb[30].mxu0 %vm790_vm5, %v725_v34 }
 0x1d4   : > { %4997 = vmatprep.mubr.msk.f32.mxu0 %vm790_vm5, %v6980_v8 }
 0x1d6   : > { %v7090_v38 = vpop.trf.xlu0  ;;  %v774_v40 = vpop.trf.xlu1 }
 0x1d7   : > { %4998 = vmatmul.mubr.msk.f32.gmra.mrb[32].mxu0 %vm790_vm5, %v6995_v19  ;;  %5021 = vmatprep.mubr.msk.f32.mxu1 %vm790_vm5, %v774_v40  ;;  %v2222_v40 = vld [vmem:[%s7125_s23 + $0x50] sm:$0xff] }
 0x1d8   : > { %5000 = vmatprep.mubr.msk.f32.mxu0 %vm790_vm5, %v7000_v25 }
 0x1da   : > { %v7097_v42 = vpop.trf.xlu0  ;;  %v775_v44 = vpop.trf.xlu1 }
 0x1db   : > { %5001 = vmatmul.mubr.msk.f32.gmra.mrb[34].mxu0 %vm790_vm5, %v7005_v31  ;;  %5022 = vmatmul.mubr.msk.f32.gmra.mrb[6].mxu1 %vm790_vm5, %v775_v44  ;;  %v5902_v31 = vunpack.i.l.bf16 %v7040_v61  ;;  %v2223_v44 = vld [vmem:[%s7125_s23 + $0x58] sm:$0xff] }
 0x1dc   : > { %5003 = vmatprep.mubr.msk.f32.mxu0 %vm790_vm5, %v7010_v35 }
 0x1de   : > { %v7104_v8 = vpop.trf.xlu0  ;;  %v776_v46 = vpop.trf.xlu1 }
 0x1df   : > { %5004 = vmatmul.mubr.msk.f32.gmra.mrb[36].mxu0 %vm790_vm5, %v7013_v37  ;;  %5024 = vmatprep.mubr.msk.f32.mxu1 %vm790_vm5, %v776_v46  ;;  %v5947_v46 = vunpack.i.l.bf16 %v7067_v22  ;;  %v5980_v22 = vunpack.i.h.bf16 %v7085_v36 }
 0x1e0   : > { %5006 = vmatprep.mubr.msk.f32.mxu0 %vm790_vm5, %v7016_v39  ;;  %v2212_v39 = vld [vmem:[%s7125_s23] sm:$0xff] }
 0x1e2   : > { %v7112_v19 = vpop.trf.xlu0  ;;  %v777_v25 = vpop.trf.xlu1 }
 0x1e3   : > { %5007 = vmatmul.mubr.msk.f32.gmra.mrb[38].mxu0 %vm790_vm5, %v7019_v41  ;;  %5025 = vmatmul.mubr.msk.f32.gmra.mrb[8].mxu1 %vm790_vm5, %v777_v25  ;;  %v2213_v41 = vld [vmem:[%s7125_s23 + $0x8] sm:$0xff]  ;;  %v5569_v25 = vpack.c.bf16 %v2223_v44, %v2222_v40 }
 0x1e4   : > { %5009 = vmatprep.mubr.msk.f32.mxu0 %vm790_vm5, %v7022_v43  ;;  %v2214_v43 = vld [vmem:[%s7125_s23 + $0x10] sm:$0xff]  ;;  %v5549_v48 = vpack.c.bf16 %v2213_v41, %v2212_v39  ;;  %v2224_v41 = vld [vmem:[%s7125_s23 + $0x60] sm:$0xff] }
 0x1e6   : > { %v7120_v35 = vpop.trf.xlu0  ;;  %v778_v37 = vpop.trf.xlu1  ;;  %5550 = vmatprep.subr.bf16.mxu1 %v5549_v48 }
 0x1e7   : > { %5010 = vmatmul.mubr.msk.f32.gmra.mrb[40].mxu0 %vm790_vm5, %v7025_v45  ;;  %5027 = vmatprep.mubr.msk.f32.mxu1 %vm790_vm5, %v778_v37  ;;  %v5553_v45 = vpack.c.bf16 %v2215_v50, %v2214_v43  ;;  %v2225_v43 = vld [vmem:[%s7125_s23 + $0x68] sm:$0xff] }
 0x1e8   : > { %5057 = vmatprep.mubr.msk.f32.mxu0 %vm1496_vm1, %v5902_v31  ;;  %5552 = vmatpush3.bf16.msra.mxu1 %v5549_v48  ;;  %v5952_v31 = vunpack.i.l.bf16 %v7070_v24  ;;  %v5957_v48 = vunpack.i.l.bf16 %v7073_v27  ;;  %v5573_v50 = vpack.c.bf16 %v2225_v43, %v2224_v41  ;;  %v2226_v43 = vld [vmem:[%s7125_s23 + $0x70] sm:$0xff] }
 0x1e9   : > { %5554 = vmatprep.subr.bf16.mxu1 %v5553_v45 }
 0x1ea   : > { %v7134_v53 = vpop.trf.xlu0  ;;  %v779_v54 = vpop.trf.xlu1 }
 0x1eb   : > { %5058 = vmatmul.mubr.msk.f32.vlgmr.msra.gmra.mrb[0].mxu0 %vm1496_vm1, %v5907_v51  ;;  %5028 = vmatmul.mubr.msk.f32.gmra.mrb[10].mxu1 %vm790_vm5, %v779_v54  ;;  %v5962_v51 = vunpack.i.l.bf16 %v7076_v29  ;;  %v5972_v54 = vunpack.i.l.bf16 %v7082_v33 }
 0x1ec   : > { %5060 = vmatprep.mubr.msk.f32.mxu0 %vm1496_vm1, %v5912_v52  ;;  %5556 = vmatpush3.bf16.msra.mxu1 %v5553_v45 }
 0x1ed   : > { %5558 = vmatprep.subr.bf16.mxu1 %v5557_v58 }
 0x1ee   : > { %v7143_v60 = vpop.trf.xlu0  ;;  %v780_v62 = vpop.trf.xlu1 }
 0x1ef   : > { %5061 = vmatmul.mubr.msk.f32.gmra.mrb[2].mxu0 %vm1496_vm1, %v5917_v57  ;;  %5030 = vmatprep.mubr.msk.f32.mxu1 %vm790_vm5, %v780_v62  ;;  %v6024_v40 = vunpack.i.l.bf16 %v7143_v60 }
 0x1f0   : > { %5063 = vmatprep.mubr.msk.f32.mxu0 %vm1496_vm1, %v5922_v59  ;;  %5560 = vmatpush3.bf16.msra.mxu1 %v5557_v58  ;;  %v5977_v58 = vunpack.i.l.bf16 %v7085_v36  ;;  %v5905_v59 = vunpack.i.h.bf16 %v7040_v61  ;;  %v5920_v61 = vunpack.i.h.bf16 %v7049_v3  ;;  %v5940_v3 = vunpack.i.h.bf16 %v7061_v16 }
 0x1f1   : > { %5562 = vmatprep.subr.bf16.mxu1 %v5561_v7  ;;  %v5970_v16 = vunpack.i.h.bf16 %v7079_v21  ;;  %v6009_v21 = vunpack.i.l.bf16 %v7112_v19  ;;  %v6019_v36 = vunpack.i.l.bf16 %v7134_v53 }
 0x1f2   : > { %v7152_v14 = vpop.trf.xlu0  ;;  %v781_v17 = vpop.trf.xlu1 }
 0x1f3   : > { %5064 = vmatmul.mubr.msk.f32.gmra.mrb[4].mxu0 %vm1496_vm1, %v5927_v5  ;;  %5031 = vmatmul.mubr.msk.f32.gmra.mrb[12].mxu1 %vm790_vm5, %v781_v17  ;;  %v5915_v5 = vunpack.i.h.bf16 %v7046_v1  ;;  %v5925_v17 = vunpack.i.h.bf16 %v7052_v6  ;;  %v5935_v1 = vunpack.i.h.bf16 %v7058_v13  ;;  %v5945_v6 = vunpack.i.h.bf16 %v7064_v18 }
 0x1f4   : > { %5066 = vmatprep.mubr.msk.f32.mxu0 %vm1496_vm1, %v5932_v11  ;;  %5564 = vmatpush3.bf16.msra.mxu1 %v5561_v7  ;;  %v5955_v13 = vunpack.i.h.bf16 %v7070_v24  ;;  %v5975_v18 = vunpack.i.h.bf16 %v7082_v33  ;;  %v5994_v24 = vunpack.i.l.bf16 %v7090_v38  ;;  %v6014_v33 = vunpack.i.l.bf16 %v7120_v35 }
 0x1f5   : > { %5566 = vmatprep.subr.bf16.mxu1 %v5565_v28  ;;  %v6029_v44 = vunpack.i.l.bf16 %v7152_v14 }
 0x1f6   : > { %v7161_v32 = vpop.trf.xlu0  ;;  %v782_v34 = vpop.trf.xlu1 }
 0x1f7   : > { %5067 = vmatmul.mubr.msk.f32.gmra.mrb[6].mxu0 %vm1496_vm1, %v5937_v26  ;;  %5033 = vmatprep.mubr.msk.f32.mxu1 %vm790_vm5, %v782_v34  ;;  %v5965_v34 = vunpack.i.h.bf16 %v7076_v29  ;;  %v6004_v29 = vunpack.i.l.bf16 %v7104_v8 }
 0x1f8   : > { %5069 = vmatprep.mubr.msk.f32.mxu0 %vm1496_vm1, %v5942_v30  ;;  %5568 = vmatpush3.bf16.msra.mxu1 %v5565_v28  ;;  %v5960_v30 = vunpack.i.h.bf16 %v7073_v27  ;;  %v5999_v27 = vunpack.i.l.bf16 %v7097_v42 }
 0x1f9   : > { %5570 = vmatprep.subr.bf16.mxu1 %v5569_v25 }
 0x1fa   : > { %v7170_v37 = vpop.trf.xlu0  ;;  %v783_v39 = vpop.trf.xlu1 }
 0x1fb   : > { %5070 = vmatmul.mubr.msk.f32.gmra.mrb[8].mxu0 %vm1496_vm1, %v5947_v46  ;;  %5034 = vmatmul.mubr.msk.f32.gmra.mrb[14].mxu1 %vm790_vm5, %v783_v39  ;;  %v6034_v46 = vunpack.i.l.bf16 %v7161_v32 }
 0x1fc   : > { %5072 = vmatprep.mubr.msk.f32.mxu0 %vm1496_vm1, %v5952_v31  ;;  %5572 = vmatpush3.bf16.msra.mxu1 %v5569_v25  ;;  %v6039_v25 = vunpack.i.l.bf16 %v7170_v37 }
 0x1fd   : > { %5574 = vmatprep.subr.bf16.mxu1 %v5573_v50 }
 0x1fe   : > { %v7179_v45 = vpop.trf.xlu0  ;;  %v784_v52 = vpop.trf.xlu1 }
 0x1ff   : > { %5073 = vmatmul.mubr.msk.f32.gmra.mrb[10].mxu0 %vm1496_vm1, %v5957_v48  ;;  %5036 = vmatprep.mubr.msk.f32.mxu1 %vm790_vm5, %v784_v52  ;;  %v6044_v31 = vunpack.i.l.bf16 %v7179_v45  ;;  %v2227_v48 = vld [vmem:[%s7125_s23 + $0x78] sm:$0xff] }
 0x200   : > { %5075 = vmatprep.mubr.msk.f32.mxu0 %vm1496_vm1, %v5962_v51  ;;  %5576 = vmatpush3.bf16.msra.mxu1 %v5573_v50  ;;  %v5577_v50 = vpack.c.bf16 %v2227_v48, %v2226_v43 }
 0x202   : > { %v7186_v56 = vpop.trf.xlu0  ;;  %v785_v57 = vpop.trf.xlu1  ;;  %5578 = vmatprep.subr.bf16.mxu1 %v5577_v50 }
 0x203   : > { %5076 = vmatmul.mubr.msk.f32.gmra.mrb[12].mxu0 %vm1496_vm1, %v5967_v55  ;;  %5037 = vmatmul.mubr.msk.f32.gmra.mrb[16].mxu1 %vm790_vm5, %v785_v57  ;;  %v6049_v39 = vunpack.i.l.bf16 %v7186_v56  ;;  %v5997_v55 = vunpack.i.h.bf16 %v7090_v38  ;;  %v6002_v57 = vunpack.i.h.bf16 %v7097_v42  ;;  %v6022_v38 = vunpack.i.h.bf16 %v7134_v53 }
 0x204   : > { %5078 = vmatprep.mubr.msk.f32.mxu0 %vm1496_vm1, %v5972_v54  ;;  %5580 = vmatpush3.bf16.msra.mxu1 %v5577_v50  ;;  %v6032_v42 = vunpack.i.h.bf16 %v7152_v14  ;;  %v6047_v53 = vunpack.i.h.bf16 %v7179_v45 }
 0x206   : > { %v7193_v62 = vpop.trf.xlu0  ;;  %v786_v0 = vpop.trf.xlu1 }
 0x207   : > { %5079 = vmatmul.mubr.msk.f32.gmra.mrb[14].mxu0 %vm1496_vm1, %v5977_v58  ;;  %5039 = vmatprep.mubr.msk.f32.mxu1 %vm790_vm5, %v786_v0  ;;  %v6054_v41 = vunpack.i.l.bf16 %v7193_v62  ;;  %v6007_v58 = vunpack.i.h.bf16 %v7104_v8  ;;  %v6017_v0 = vunpack.i.h.bf16 %v7120_v35  ;;  %v6037_v8 = vunpack.i.h.bf16 %v7161_v32 }
 0x208   : > { %5081 = vmatprep.mubr.msk.f32.mxu0 %vm1496_vm1, %v5905_v59  ;;  %v6012_v59 = vunpack.i.h.bf16 %v7112_v19  ;;  %v6042_v35 = vunpack.i.h.bf16 %v7170_v37  ;;  %v6057_v14 = vunpack.i.h.bf16 %v7193_v62 }
 0x20a   : > { %v7200_v7 = vpop.trf.xlu0  ;;  %v787_v11 = vpop.trf.xlu1 }
 0x20b   : > { %5082 = vmatmul.mubr.msk.f32.gmra.mrb[16].mxu0 %vm1496_vm1, %v5910_v2  ;;  %5040 = vmatmul.mubr.msk.f32.gmra.mrb[18].mxu1 %vm790_vm5, %v787_v11  ;;  %v6059_v52 = vunpack.i.l.bf16 %v7200_v7  ;;  %v6027_v2 = vunpack.i.h.bf16 %v7143_v60  ;;  %v6052_v60 = vunpack.i.h.bf16 %v7186_v56  ;;  %v6062_v37 = vunpack.i.h.bf16 %v7200_v7 }
 0x20c   : > { %5084 = vmatprep.mubr.msk.f32.mxu0 %vm1496_vm1, %v5915_v5 }
 0x20e   : > { %v7207_v20 = vpop.trf.xlu0  ;;  %v788_v23 = vpop.trf.xlu1 }
 0x20f   : > { %5085 = vmatmul.mubr.msk.f32.gmra.mrb[18].mxu0 %vm1496_vm1, %v5920_v61  ;;  %5042 = vmatprep.mubr.msk.f32.mxu1 %vm790_vm5, %v788_v23  ;;  %v6064_v51 = vunpack.i.l.bf16 %v7207_v20  ;;  %v6067_v45 = vunpack.i.h.bf16 %v7207_v20 }
 0x210   : > { %5087 = vmatprep.mubr.msk.f32.mxu0 %vm1496_vm1, %v5925_v17 }
 0x212   : > { %v7214_v26 = vpop.trf.xlu0  ;;  %v789_v28 = vpop.trf.xlu1 }
 0x213   : > { %5088 = vmatmul.mubr.msk.f32.gmra.mrb[20].mxu0 %vm1496_vm1, %v5930_v63  ;;  %5043 = vmatmul.mubr.msk.f32.gmra.mrb[20].mxu1 %vm790_vm5, %v789_v28  ;;  %v6069_v54 = vunpack.i.l.bf16 %v7214_v26  ;;  %v6072_v56 = vunpack.i.h.bf16 %v7214_v26  ;;  %v7330_v63 = vld [vmem:[%s7327_s12] ss:$0 sm:$0xff] }
 0x214   : > { %5090 = vmatprep.mubr.msk.f32.mxu0 %vm1496_vm1, %v5935_v1 }
 0x217   : > { %5091 = vmatmul.mubr.msk.f32.gmra.mrb[22].mxu0 %vm1496_vm1, %v5940_v3 }
 0x218   : > { %5093 = vmatprep.mubr.msk.f32.mxu0 %vm1496_vm1, %v5945_v6 }
 0x21b   : > { %5094 = vmatmul.mubr.msk.f32.gmra.mrb[24].mxu0 %vm1496_vm1, %v5950_v10 }
 0x21c   : > { %5096 = vmatprep.mubr.msk.f32.mxu0 %vm1496_vm1, %v5955_v13 }
 0x21f   : > { %5097 = vmatmul.mubr.msk.f32.gmra.mrb[26].mxu0 %vm1496_vm1, %v5960_v30 }
 0x220   : > { %5099 = vmatprep.mubr.msk.f32.mxu0 %vm1496_vm1, %v5965_v34 }
 0x223   : > { %5100 = vmatmul.mubr.msk.f32.gmra.mrb[28].mxu0 %vm1496_vm1, %v5970_v16 }
 0x224   : > { %5102 = vmatprep.mubr.msk.f32.mxu0 %vm1496_vm1, %v5975_v18 }
 0x227   : > { %5103 = vmatmul.mubr.msk.f32.gmra.mrb[30].mxu0 %vm1496_vm1, %v5980_v22  ;;  %v4433_v22 = vld [vmem:[%s7125_s23 + $0x80] sm:$0xff] }
 0x228   : > { %5105 = vmatprep.mubr.msk.f32.mxu0 %vm1496_vm1, %v5994_v24  ;;  %v4434_v24 = vld [vmem:[%s7125_s23 + $0x88] sm:$0xff] }
 0x22b   : > { %5106 = vmatmul.mubr.msk.f32.gmra.mrb[32].mxu0 %vm1496_vm1, %v5999_v27  ;;  %v4435_v27 = vld [vmem:[%s7125_s23 + $0x90] sm:$0xff] }
 0x22c   : > { %5108 = vmatprep.mubr.msk.f32.mxu0 %vm1496_vm1, %v6004_v29 }
 0x22f   : > { %5109 = vmatmul.mubr.msk.f32.gmra.mrb[34].mxu0 %vm1496_vm1, %v6009_v21  ;;  %v5581_v21 = vpack.c.bf16 %v4434_v24, %v4433_v22 }
 0x230   : > { %5111 = vmatprep.mubr.msk.f32.mxu0 %vm1496_vm1, %v6014_v33  ;;  %v4436_v33 = vld [vmem:[%s7125_s23 + $0x98] sm:$0xff] }
 0x231   : > { %5582 = vmatprep.subr.bf16.mxu1 %v5581_v21 }
 0x233   : > { %5112 = vmatmul.mubr.msk.f32.gmra.mrb[36].mxu0 %vm1496_vm1, %v6019_v36  ;;  %v5585_v36 = vpack.c.bf16 %v4436_v33, %v4435_v27  ;;  %v4445_v27 = vld [vmem:[%s7125_s23 + $0xe0] sm:$0xff] }
 0x234   : > { %5114 = vmatprep.mubr.msk.f32.mxu0 %vm1496_vm1, %v6024_v40  ;;  %v4437_v40 = vld [vmem:[%s7125_s23 + $0xa0] sm:$0xff] }
 0x237   : > { %5115 = vmatmul.mubr.msk.f32.gmra.mrb[38].mxu0 %vm1496_vm1, %v6029_v44  ;;  %v4438_v44 = vld [vmem:[%s7125_s23 + $0xa8] sm:$0xff] }
 0x238   : > { %5117 = vmatprep.mubr.msk.f32.mxu0 %vm1496_vm1, %v6034_v46 }
 0x23b   : > { %5118 = vmatmul.mubr.msk.f32.gmra.mrb[40].mxu0 %vm1496_vm1, %v6039_v25 }
 0x23c   : > { %5120 = vmatprep.mubr.msk.f32.mxu0 %vm1496_vm1, %v6044_v31 }
 0x23f   : > { %5121 = vmatmul.mubr.msk.f32.gmra.mrb[42].mxu0 %vm1496_vm1, %v6049_v39 }
 0x240   : > { %5123 = vmatprep.mubr.msk.f32.mxu0 %vm1496_vm1, %v6054_v41 }
 0x243   : > { %5124 = vmatmul.mubr.msk.f32.gmra.mrb[44].mxu0 %vm1496_vm1, %v6059_v52  ;;  %v4439_v52 = vld [vmem:[%s7125_s23 + $0xb0] sm:$0xff] }
 0x244   : > { %5126 = vmatprep.mubr.msk.f32.mxu0 %vm1496_vm1, %v6064_v51  ;;  %v5589_v51 = vpack.c.bf16 %v4438_v44, %v4437_v40 }
 0x247   : > { %5127 = vmatmul.mubr.msk.f32.gmra.mrb[46].mxu0 %vm1496_vm1, %v6069_v54  ;;  %v4440_v54 = vld [vmem:[%s7125_s23 + $0xb8] sm:$0xff] }
 0x248   : > { %5129 = vmatprep.mubr.msk.f32.mxu0 %vm1496_vm1, %v5997_v55 }
 0x24b   : > { %5130 = vmatmul.mubr.msk.f32.gmra.mrb[48].mxu0 %vm1496_vm1, %v6002_v57 }
 0x24c   : > { %5132 = vmatprep.mubr.msk.f32.mxu0 %vm1496_vm1, %v6007_v58 }
 0x24f   : > { %5133 = vmatmul.mubr.msk.f32.gmra.mrb[50].mxu0 %vm1496_vm1, %v6012_v59 }
 0x250   : > { %5135 = vmatprep.mubr.msk.f32.mxu0 %vm1496_vm1, %v6017_v0 }
 0x253   : > { %5136 = vmatmul.mubr.msk.f32.gmra.mrb[52].mxu0 %vm1496_vm1, %v6022_v38 }
 0x254   : > { %5138 = vmatprep.mubr.msk.f32.mxu0 %vm1496_vm1, %v6027_v2  ;;  %v5593_v2 = vpack.c.bf16 %v4440_v54, %v4439_v52 }
 0x256   : > { %v7287_v5 = vpop.f32.mrb[0].mxu1 }
 0x257   : > { %5139 = vmatmul.mubr.msk.f32.gmra.mrb[54].mxu0 %vm1496_vm1, %v6032_v42  ;;  %v7290_v19 = vpop.f32.mrb[1].mxu1  ;;  %v4441_v42 = vld [vmem:[%s7125_s23 + $0xc0] sm:$0xff] }
 0x258   : > { %5141 = vmatprep.mubr.msk.f32.mxu0 %vm1496_vm1, %v6037_v8  ;;  %v4442_v8 = vld [vmem:[%s7125_s23 + $0xc8] sm:$0xff] }
 0x25b   : > { %5142 = vmatmul.mubr.msk.f32.gmra.mrb[56].mxu0 %vm1496_vm1, %v6042_v35 }
 0x25c   : > { %5144 = vmatprep.mubr.msk.f32.mxu0 %vm1496_vm1, %v6047_v53 }
 0x25e   : > { %v7299_v32 = vpop.f32.mrb[2].mxu1 }
 0x25f   : > { %5145 = vmatmul.mubr.msk.f32.gmra.mrb[58].mxu0 %vm1496_vm1, %v6052_v60  ;;  %v7302_v11 = vpop.f32.mrb[3].mxu1 }
 0x260   : > { %5147 = vmatprep.mubr.msk.f32.mxu0 %vm1496_vm1, %v6057_v14 }
 0x263   : > { %5148 = vmatmul.mubr.msk.f32.gmra.mrb[60].mxu0 %vm1496_vm1, %v6062_v37 }
 0x264   : > { %5150 = vmatprep.mubr.msk.f32.mxu0 %vm1496_vm1, %v6067_v45 }
 0x266   : > { %v7310_v61 = vpop.f32.mrb[4].mxu1 }
 0x267   : > { %5151 = vmatmul.mubr.msk.f32.gmra.mrb[62].mxu0 %vm1496_vm1, %v6072_v56  ;;  %v7313_v62 = vpop.f32.mrb[5].mxu1 }
 0x2ae   : > { %v7315_v17 = vpop.f32.mrb[6].mxu1 }
 0x2af   : > { %v7317_v23 = vpop.f32.mrb[7].mxu1 }
 0x2b6   : > { %v7320_v7 = vpop.f32.mrb[8].mxu1 }
 0x2b7   : > { %v7322_v20 = vpop.f32.mrb[9].mxu1 }
 0x2be   : > { %v5059_v1 = vpop.f32.mrb[0].mxu0  ;;  %v7332_v26 = vpop.f32.mrb[10].mxu1 }
 0x2bf   : > { %v2082_v28 = vadd.f32 %v5059_v1, %v7330_v63  ;;  %v1755_v3 = vpop.f32.mrb[1].mxu0  ;;  %v7335_v6 = vpop.f32.mrb[11].mxu1 }
 0x2c0   : > { %v2081_v10 = vadd.f32 %v7330_v63, %v1755_v3  ;;  %v4443_v3 = vld [vmem:[%s7125_s23 + $0xd0] sm:$0xff] }
 0x2c1   : > { %v2146_v34 = vmax.f32 %v2082_v28, 0.0  ;;  %v5597_v28 = vpack.c.bf16 %v4442_v8, %v4441_v42 }
 0x2c2   : > { %v2145_v13 = vmax.f32 %v2081_v10, 0.0  ;;  %v5062_v30 = vpop.f32.mrb[2].mxu0  ;;  %v4444_v10 = vld [vmem:[%s7125_s23 + $0xd8] sm:$0xff] }
 0x2c3   : > { %v2084_v16 = vadd.f32 %v5062_v30, %v7330_v63  ;;  %v1765_v18 = vpop.f32.mrb[3].mxu0  ;;  %v5601_v24 = vpack.c.bf16 %v4444_v10, %v4443_v3 }
 0x2c4   : > { %v2083_v29 = vadd.f32 %v7330_v63, %v1765_v18  ;;  %5185 = vmatprep.mubr.f32.mxu1 %v2145_v13 }
 0x2c5   : > { %5186 = vmatmul.mubr.f32.vlgmr.msra.gmra.mrb[22].mxu1 %v2146_v34  ;;  %v2148_v39 = vmax.f32 %v2084_v16, 0.0 }
 0x2c6   : > { %v2147_v46 = vmax.f32 %v2083_v29, 0.0  ;;  %v5065_v25 = vpop.f32.mrb[4].mxu0  ;;  %v7346_v31 = vpop.f32.mrb[12].mxu1  ;;  %5584 = vmatpush3.bf16.msra.mxu1 %v5581_v21  ;;  %v4446_v29 = vld [vmem:[%s7125_s23 + $0xe8] sm:$0xff] }
 0x2c7   : > { %v2086_v41 = vadd.f32 %v5065_v25, %v7330_v63  ;;  %v1775_v43 = vpop.f32.mrb[5].mxu0  ;;  %v7349_v48 = vpop.f32.mrb[13].mxu1  ;;  %5586 = vmatprep.subr.bf16.mxu1 %v5585_v36 }
 0x2c8   : > { %v2085_v50 = vadd.f32 %v7330_v63, %v1775_v43  ;;  %5188 = vmatprep.mubr.f32.mxu1 %v2147_v46 }
 0x2c9   : > { %5189 = vmatmul.mubr.f32.gmra.mrb[24].mxu1 %v2148_v39  ;;  %v2150_v58 = vmax.f32 %v2086_v41, 0.0  ;;  %v5605_v41 = vpack.c.bf16 %v4446_v29, %v4445_v27 }
 0x2ca   : > { %v2149_v55 = vmax.f32 %v2085_v50, 0.0  ;;  %v5068_v57 = vpop.f32.mrb[6].mxu0  ;;  %5588 = vmatpush3.bf16.msra.mxu1 %v5585_v36 }
 0x2cb   : > { %v2088_v59 = vadd.f32 %v5068_v57, %v7330_v63  ;;  %v1785_v0 = vpop.f32.mrb[7].mxu0  ;;  %5590 = vmatprep.subr.bf16.mxu1 %v5589_v51 }
 0x2cc   : > { %v2087_v38 = vadd.f32 %v7330_v63, %v1785_v0  ;;  %5191 = vmatprep.mubr.f32.mxu1 %v2149_v55 }
 0x2cd   : > { %5192 = vmatmul.mubr.f32.gmra.mrb[26].mxu1 %v2150_v58  ;;  %v2152_v14 = vmax.f32 %v2088_v59, 0.0 }
 0x2ce   : > { %v2151_v35 = vmax.f32 %v2087_v38, 0.0  ;;  %v5071_v53 = vpop.f32.mrb[8].mxu0  ;;  %v7358_v60 = vpop.f32.mrb[14].mxu1  ;;  %5592 = vmatpush3.bf16.msra.mxu1 %v5589_v51 }
 0x2cf   : > { %v2090_v37 = vadd.f32 %v5071_v53, %v7330_v63  ;;  %v1795_v45 = vpop.f32.mrb[9].mxu0  ;;  %v7361_v56 = vpop.f32.mrb[15].mxu1  ;;  %5594 = vmatprep.subr.bf16.mxu1 %v5593_v2 }
 0x2d0   : > { %v2089_v1 = vadd.f32 %v7330_v63, %v1795_v45  ;;  %5194 = vmatprep.mubr.f32.mxu1 %v2151_v35 }
 0x2d1   : > { %5195 = vmatmul.mubr.f32.gmra.mrb[28].mxu1 %v2152_v14  ;;  %v2154_v34 = vmax.f32 %v2090_v37, 0.0 }
 0x2d2   : > { %v2153_v13 = vmax.f32 %v2089_v1, 0.0  ;;  %v5074_v30 = vpop.f32.mrb[10].mxu0  ;;  %5596 = vmatpush3.bf16.msra.mxu1 %v5593_v2 }
 0x2d3   : > { %v2092_v16 = vadd.f32 %v5074_v30, %v7330_v63  ;;  %v1805_v18 = vpop.f32.mrb[11].mxu0  ;;  %5598 = vmatprep.subr.bf16.mxu1 %v5597_v28 }
 0x2d4   : > { %v2091_v22 = vadd.f32 %v7330_v63, %v1805_v18  ;;  %5197 = vmatprep.mubr.f32.mxu1 %v2153_v13 }
 0x2d5   : > { %5198 = vmatmul.mubr.f32.gmra.mrb[30].mxu1 %v2154_v34  ;;  %v2156_v40 = vmax.f32 %v2092_v16, 0.0 }
 0x2d6   : > { %v2155_v21 = vmax.f32 %v2091_v22, 0.0  ;;  %v5077_v33 = vpop.f32.mrb[12].mxu0  ;;  %v7370_v36 = vpop.f32.mrb[16].mxu1  ;;  %5600 = vmatpush3.bf16.msra.mxu1 %v5597_v28 }
 0x2d7   : > { %v2094_v44 = vadd.f32 %v5077_v33, %v7330_v63  ;;  %v1815_v46 = vpop.f32.mrb[13].mxu0  ;;  %v7373_v25 = vpop.f32.mrb[17].mxu1  ;;  %5602 = vmatprep.subr.bf16.mxu1 %v5601_v24 }
 0x2d8   : > { %v2093_v39 = vadd.f32 %v7330_v63, %v1815_v46  ;;  %5200 = vmatprep.mubr.f32.mxu1 %v2155_v21 }
 0x2d9   : > { %5201 = vmatmul.mubr.f32.gmra.mrb[32].mxu1 %v2156_v40  ;;  %v2158_v51 = vmax.f32 %v2094_v44, 0.0 }
 0x2da   : > { %v2157_v43 = vmax.f32 %v2093_v39, 0.0  ;;  %v5080_v50 = vpop.f32.mrb[14].mxu0  ;;  %5604 = vmatpush3.bf16.msra.mxu1 %v5601_v24 }
 0x2db   : > { %v2096_v52 = vadd.f32 %v5080_v50, %v7330_v63  ;;  %v1825_v54 = vpop.f32.mrb[15].mxu0  ;;  %5606 = vmatprep.subr.bf16.mxu1 %v5605_v41 }
 0x2dc   : > { %v2095_v55 = vadd.f32 %v7330_v63, %v1825_v54  ;;  %5203 = vmatprep.mubr.f32.mxu1 %v2157_v43 }
 0x2dd   : > { %5204 = vmatmul.mubr.f32.gmra.mrb[34].mxu1 %v2158_v51  ;;  %v2160_v0 = vmax.f32 %v2096_v52, 0.0 }
 0x2de   : > { %v2159_v57 = vmax.f32 %v2095_v55, 0.0  ;;  %v5083_v58 = vpop.f32.mrb[16].mxu0  ;;  %v7378_v59 = vpop.f32.mrb[18].mxu1  ;;  %5608 = vmatpush3.bf16.msra.mxu1 %v5605_v41 }
 0x2df   : > { %v2098_v38 = vadd.f32 %v5083_v58, %v7330_v63  ;;  %v1835_v2 = vpop.f32.mrb[17].mxu0  ;;  %v7381_v42 = vpop.f32.mrb[19].mxu1 }
 0x2e0   : > { %v2097_v8 = vadd.f32 %v7330_v63, %v1835_v2  ;;  %5206 = vmatprep.mubr.f32.mxu1 %v2159_v57 }
 0x2e1   : > { %5207 = vmatmul.mubr.f32.gmra.mrb[36].mxu1 %v2160_v0  ;;  %v2162_v14 = vmax.f32 %v2098_v38, 0.0 }
 0x2e2   : > { %v2161_v35 = vmax.f32 %v2097_v8, 0.0  ;;  %v5086_v53 = vpop.f32.mrb[18].mxu0 }
 0x2e3   : > { %v2100_v37 = vadd.f32 %v5086_v53, %v7330_v63  ;;  %v1845_v45 = vpop.f32.mrb[19].mxu0 }
 0x2e4   : > { %v2099_v1 = vadd.f32 %v7330_v63, %v1845_v45  ;;  %5209 = vmatprep.mubr.f32.mxu1 %v2161_v35 }
 0x2e5   : > { %5210 = vmatmul.mubr.f32.gmra.mrb[38].mxu1 %v2162_v14  ;;  %v2164_v13 = vmax.f32 %v2100_v37, 0.0 }
 0x2e6   : > { %v2163_v28 = vmax.f32 %v2099_v1, 0.0  ;;  %v5089_v3 = vpop.f32.mrb[20].mxu0  ;;  %v7386_v10 = vpop.f32.mrb[20].mxu1 }
 0x2e7   : > { %v2102_v30 = vadd.f32 %v5089_v3, %v7330_v63  ;;  %v1855_v34 = vpop.f32.mrb[21].mxu0  ;;  %v7389_v16 = vpop.f32.mrb[21].mxu1 }
 0x2e8   : > { %v2101_v18 = vadd.f32 %v7330_v63, %v1855_v34  ;;  %5212 = vmatprep.mubr.f32.mxu1 %v2163_v28 }
 0x2e9   : > { %5213 = vmatmul.mubr.f32.gmra.mrb[40].mxu1 %v2164_v13  ;;  %v2166_v27 = vmax.f32 %v2102_v30, 0.0 }
 0x2ea   : > { %v2165_v22 = vmax.f32 %v2101_v18, 0.0  ;;  %v5092_v24 = vpop.f32.mrb[22].mxu0 }
 0x2eb   : > { %v2104_v29 = vadd.f32 %v5092_v24, %v7330_v63  ;;  %v1865_v21 = vpop.f32.mrb[23].mxu0 }
 0x2ec   : > { %v2103_v33 = vadd.f32 %v7330_v63, %v1865_v21  ;;  %5215 = vmatprep.mubr.f32.mxu1 %v2165_v22 }
 0x2ed   : > { %5216 = vmatmul.mubr.f32.gmra.mrb[42].mxu1 %v2166_v27  ;;  %v2168_v46 = vmax.f32 %v2104_v29, 0.0 }
 0x2ee   : > { %v2167_v40 = vmax.f32 %v2103_v33, 0.0  ;;  %v5095_v44 = vpop.f32.mrb[24].mxu0 }
 0x2ef   : > { %v2106_v39 = vadd.f32 %v5095_v44, %v7330_v63  ;;  %v1875_v41 = vpop.f32.mrb[25].mxu0 }
 0x2f0   : > { %v2105_v43 = vadd.f32 %v7330_v63, %v1875_v41  ;;  %5218 = vmatprep.mubr.f32.mxu1 %v2167_v40 }
 0x2f1   : > { %5219 = vmatmul.mubr.f32.gmra.mrb[44].mxu1 %v2168_v46  ;;  %v2170_v52 = vmax.f32 %v2106_v39, 0.0 }
 0x2f2   : > { %v2169_v50 = vmax.f32 %v2105_v43, 0.0  ;;  %v5098_v51 = vpop.f32.mrb[26].mxu0 }
 0x2f3   : > { %v2108_v54 = vadd.f32 %v5098_v51, %v7330_v63  ;;  %v1885_v55 = vpop.f32.mrb[27].mxu0 }
 0x2f4   : > { %v2107_v57 = vadd.f32 %v7330_v63, %v1885_v55  ;;  %5221 = vmatprep.mubr.f32.mxu1 %v2169_v50 }
 0x2f5   : > { %5222 = vmatmul.mubr.f32.gmra.mrb[46].mxu1 %v2170_v52  ;;  %v2172_v38 = vmax.f32 %v2108_v54, 0.0 }
 0x2f6   : > { %v2171_v58 = vmax.f32 %v2107_v57, 0.0  ;;  %v5101_v0 = vpop.f32.mrb[28].mxu0 }
 0x2f7   : > { %v2110_v2 = vadd.f32 %v5101_v0, %v7330_v63  ;;  %v1895_v8 = vpop.f32.mrb[29].mxu0 }
 0x2f8   : > { %v2109_v35 = vadd.f32 %v7330_v63, %v1895_v8  ;;  %5224 = vmatprep.mubr.f32.mxu1 %v2171_v58 }
 0x2f9   : > { %5225 = vmatmul.mubr.f32.gmra.mrb[48].mxu1 %v2172_v38  ;;  %v2174_v37 = vmax.f32 %v2110_v2, 0.0 }
 0x2fa   : > { %v2173_v53 = vmax.f32 %v2109_v35, 0.0  ;;  %v5104_v14 = vpop.f32.mrb[30].mxu0 }
 0x2fb   : > { %v2112_v45 = vadd.f32 %v5104_v14, %v7330_v63  ;;  %v1905_v1 = vpop.f32.mrb[31].mxu0 }
 0x2fc   : > { %v2111_v28 = vadd.f32 %v7330_v63, %v1905_v1  ;;  %5227 = vmatprep.mubr.f32.mxu1 %v2173_v53 }
 0x2fd   : > { %5228 = vmatmul.mubr.f32.gmra.mrb[50].mxu1 %v2174_v37  ;;  %v2176_v30 = vmax.f32 %v2112_v45, 0.0 }
 0x2fe   : > { %v2175_v3 = vmax.f32 %v2111_v28, 0.0  ;;  %v5107_v13 = vpop.f32.mrb[32].mxu0 }
 0x2ff   : > { %v2114_v34 = vadd.f32 %v5107_v13, %v7330_v63  ;;  %v1915_v18 = vpop.f32.mrb[33].mxu0 }
 0x300   : > { %v2113_v22 = vadd.f32 %v7330_v63, %v1915_v18  ;;  %5230 = vmatprep.mubr.f32.mxu1 %v2175_v3 }
 0x301   : > { %5231 = vmatmul.mubr.f32.gmra.mrb[52].mxu1 %v2176_v30  ;;  %v2178_v29 = vmax.f32 %v2114_v34, 0.0 }
 0x302   : > { %v2177_v24 = vmax.f32 %v2113_v22, 0.0  ;;  %v5110_v27 = vpop.f32.mrb[34].mxu0 }
 0x303   : > { %v2116_v21 = vadd.f32 %v5110_v27, %v7330_v63  ;;  %v1925_v33 = vpop.f32.mrb[35].mxu0 }
 0x304   : > { %v2115_v40 = vadd.f32 %v7330_v63, %v1925_v33  ;;  %5233 = vmatprep.mubr.f32.mxu1 %v2177_v24 }
 0x305   : > { %5234 = vmatmul.mubr.f32.gmra.mrb[54].mxu1 %v2178_v29  ;;  %v2180_v39 = vmax.f32 %v2116_v21, 0.0  ;;  %v4447_v29 = vld [vmem:[%s7125_s23 + $0xf0] sm:$0xff]  ;;  %v4448_v21 = vld [vmem:[%s7125_s23 + $0xf8] sm:$0xff] }
 0x306   : > { %v2179_v44 = vmax.f32 %v2115_v40, 0.0  ;;  %v5113_v46 = vpop.f32.mrb[36].mxu0  ;;  %v5609_v40 = vpack.c.bf16 %v4448_v21, %v4447_v29 }
 0x307   : > { %v2118_v41 = vadd.f32 %v5113_v46, %v7330_v63  ;;  %v1935_v43 = vpop.f32.mrb[37].mxu0 }
 0x308   : > { %v2117_v50 = vadd.f32 %v7330_v63, %v1935_v43  ;;  %5236 = vmatprep.mubr.f32.mxu1 %v2179_v44  ;;  %5610 = vmatprep.subr.bf16.mxu1 %v5609_v40 }
 0x309   : > { %5237 = vmatmul.mubr.f32.gmra.mrb[56].mxu1 %v2180_v39  ;;  %v2182_v54 = vmax.f32 %v2118_v41, 0.0 }
 0x30a   : > { %v2181_v51 = vmax.f32 %v2117_v50, 0.0  ;;  %v5116_v52 = vpop.f32.mrb[38].mxu0  ;;  %5612 = vmatpush3.bf16.msra.mxu1 %v5609_v40 }
 0x30b   : > { %v2120_v55 = vadd.f32 %v5116_v52, %v7330_v63  ;;  %v1945_v57 = vpop.f32.mrb[39].mxu0 }
 0x30c   : > { %v2119_v58 = vadd.f32 %v7330_v63, %v1945_v57  ;;  %5239 = vmatprep.mubr.f32.mxu1 %v2181_v51 }
 0x30d   : > { %5240 = vmatmul.mubr.f32.gmra.mrb[58].mxu1 %v2182_v54  ;;  %v2184_v2 = vmax.f32 %v2120_v55, 0.0 }
 0x30e   : > { %v2183_v0 = vmax.f32 %v2119_v58, 0.0  ;;  %v5119_v38 = vpop.f32.mrb[40].mxu0 }
 0x30f   : > { %v2122_v8 = vadd.f32 %v5119_v38, %v7330_v63  ;;  %v1955_v35 = vpop.f32.mrb[41].mxu0 }
 0x310   : > { %v2121_v53 = vadd.f32 %v7330_v63, %v1955_v35  ;;  %5242 = vmatprep.mubr.f32.mxu1 %v2183_v0 }
 0x311   : > { %5243 = vmatmul.mubr.f32.gmra.mrb[60].mxu1 %v2184_v2  ;;  %v2186_v45 = vmax.f32 %v2122_v8, 0.0 }
 0x312   : > { %v2185_v14 = vmax.f32 %v2121_v53, 0.0  ;;  %v5122_v37 = vpop.f32.mrb[42].mxu0 }
 0x313   : > { %v1971_v1 = vadd.f32 %v5122_v37, %v7287_v5  ;;  %v1965_v28 = vpop.f32.mrb[43].mxu0 }
 0x314   : > { %v1966_v3 = vadd.f32 %v1965_v28, %v7290_v19  ;;  %5245 = vmatprep.mubr.f32.mxu1 %v2185_v14 }
 0x315   : > { %v2124_v13 = vadd.f32 %v7330_v63, %v1971_v1  ;;  %5246 = vmatmul.mubr.f32.gmra.mrb[62].mxu1 %v2186_v45 }
 0x316   : > { %v2123_v30 = vadd.f32 %v7330_v63, %v1966_v3  ;;  %v5125_v34 = vpop.f32.mrb[44].mxu0 }
 0x317   : > { %v1981_v18 = vadd.f32 %v5125_v34, %v7299_v32  ;;  %v1975_v22 = vpop.f32.mrb[45].mxu0  ;;  %v2188_v33 = vmax.f32 %v2124_v13, 0.0 }
 0x318   : > { %v2187_v24 = vmax.f32 %v2123_v30, 0.0  ;;  %v1976_v27 = vadd.f32 %v1975_v22, %v7302_v11 }
 0x319   : > { %v2126_v5 = vadd.f32 %v7330_v63, %v1981_v18 }
 0x31a   : > { %v2125_v19 = vadd.f32 %v7330_v63, %v1976_v27  ;;  %v5128_v44 = vpop.f32.mrb[46].mxu0  ;;  %5248 = vmatprep.mubr.f32.mxu1 %v2187_v24 }
 0x31b   : > { %v1991_v46 = vadd.f32 %v5128_v44, %v7310_v61  ;;  %v1985_v39 = vpop.f32.mrb[47].mxu0  ;;  %5249 = vmatmul.mubr.f32.gmra.mrb[64].mxu1 %v2188_v33  ;;  %v2190_v11 = vmax.f32 %v2126_v5, 0.0 }
 0x31c   : > { %v2189_v32 = vmax.f32 %v2125_v19, 0.0  ;;  %v1986_v41 = vadd.f32 %v1985_v39, %v7313_v62 }
 0x31d   : > { %v2128_v43 = vadd.f32 %v7330_v63, %v1991_v46 }
 0x31e   : > { %v2127_v50 = vadd.f32 %v7330_v63, %v1986_v41  ;;  %v5131_v51 = vpop.f32.mrb[48].mxu0  ;;  %5251 = vmatprep.mubr.f32.mxu1 %v2189_v32 }
 0x31f   : > { %v2001_v52 = vadd.f32 %v5131_v51, %v7315_v17  ;;  %v1995_v54 = vpop.f32.mrb[49].mxu0  ;;  %5252 = vmatmul.mubr.f32.gmra.mrb[66].mxu1 %v2190_v11  ;;  %v2192_v57 = vmax.f32 %v2128_v43, 0.0 }
 0x320   : > { %v2191_v55 = vmax.f32 %v2127_v50, 0.0  ;;  %v1996_v61 = vadd.f32 %v1995_v54, %v7317_v23 }
 0x321   : > { %v2130_v58 = vadd.f32 %v7330_v63, %v2001_v52 }
 0x322   : > { %v2129_v62 = vadd.f32 %v7330_v63, %v1996_v61  ;;  %v5134_v0 = vpop.f32.mrb[50].mxu0  ;;  %5254 = vmatprep.mubr.f32.mxu1 %v2191_v55 }
 0x323   : > { %v2011_v38 = vadd.f32 %v5134_v0, %v7320_v7  ;;  %v2005_v2 = vpop.f32.mrb[51].mxu0  ;;  %5255 = vmatmul.mubr.f32.gmra.mrb[68].mxu1 %v2192_v57  ;;  %v2194_v17 = vmax.f32 %v2130_v58, 0.0 }
 0x324   : > { %v2193_v8 = vmax.f32 %v2129_v62, 0.0  ;;  %v2006_v35 = vadd.f32 %v2005_v2, %v7322_v20 }
 0x325   : > { %v2132_v53 = vadd.f32 %v7330_v63, %v2011_v38 }
 0x326   : > { %v2131_v14 = vadd.f32 %v7330_v63, %v2006_v35  ;;  %v5137_v23 = vpop.f32.mrb[52].mxu0  ;;  %5257 = vmatprep.mubr.f32.mxu1 %v2193_v8 }
 0x327   : > { %v2021_v37 = vadd.f32 %v5137_v23, %v7332_v26  ;;  %v2015_v45 = vpop.f32.mrb[53].mxu0  ;;  %5258 = vmatmul.mubr.f32.gmra.mrb[70].mxu1 %v2194_v17  ;;  %v2196_v7 = vmax.f32 %v2132_v53, 0.0 }
 0x328   : > { %v2195_v1 = vmax.f32 %v2131_v14, 0.0  ;;  %v2016_v28 = vadd.f32 %v2015_v45, %v7335_v6  ;;  %v4453_v45 = vld [vmem:[%s7125_s23 + $0x100] sm:$0xff] }
 0x329   : > { %v2134_v3 = vadd.f32 %v7330_v63, %v2021_v37 }
 0x32a   : > { %v2133_v13 = vadd.f32 %v7330_v63, %v2016_v28  ;;  %v5140_v20 = vpop.f32.mrb[54].mxu0  ;;  %5260 = vmatprep.mubr.f32.mxu1 %v2195_v1  ;;  %v4454_v1 = vld [vmem:[%s7125_s23 + $0x108] sm:$0xff]  ;;  %v4455_v28 = vld [vmem:[%s7125_s23 + $0x110] sm:$0xff] }
 0x32b   : > { %v2031_v30 = vadd.f32 %v5140_v20, %v7346_v31  ;;  %v2025_v34 = vpop.f32.mrb[55].mxu0  ;;  %5261 = vmatmul.mubr.f32.gmra.mrb[72].mxu1 %v2196_v7  ;;  %v2198_v26 = vmax.f32 %v2134_v3, 0.0  ;;  %v5613_v3 = vpack.c.bf16 %v4454_v1, %v4453_v45 }
 0x32c   : > { %v2197_v18 = vmax.f32 %v2133_v13, 0.0  ;;  %v2026_v22 = vadd.f32 %v2025_v34, %v7349_v48  ;;  %v4456_v13 = vld [vmem:[%s7125_s23 + $0x118] sm:$0xff]  ;;  %v4458_v34 = vld [vmem:[%s7125_s23 + $0x128] sm:$0xff] }
 0x32d   : > { %v2136_v24 = vadd.f32 %v7330_v63, %v2031_v30  ;;  %v5617_v20 = vpack.c.bf16 %v4456_v13, %v4455_v28  ;;  %v4457_v30 = vld [vmem:[%s7125_s23 + $0x120] sm:$0xff]  ;;  %5614 = vmatprep.subr.bf16.mxu0 %v5613_v3 }
 0x32e   : > { %v2135_v27 = vadd.f32 %v7330_v63, %v2026_v22  ;;  %v5143_v6 = vpop.f32.mrb[56].mxu0  ;;  %5263 = vmatprep.mubr.f32.mxu1 %v2197_v18  ;;  %5616 = vmatpush3.bf16.msra.mxu0 %v5613_v3 }
 0x32f   : > { %v2041_v29 = vadd.f32 %v5143_v6, %v7358_v60  ;;  %v2035_v21 = vpop.f32.mrb[57].mxu0  ;;  %5264 = vmatmul.mubr.f32.gmra.mrb[74].mxu1 %v2198_v26  ;;  %v2200_v31 = vmax.f32 %v2136_v24, 0.0  ;;  %5618 = vmatprep.subr.bf16.mxu0 %v5617_v20 }
 0x330   : > { %v2199_v33 = vmax.f32 %v2135_v27, 0.0  ;;  %v2036_v5 = vadd.f32 %v2035_v21, %v7361_v56  ;;  %v4459_v21 = vld [vmem:[%s7125_s23 + $0x130] sm:$0xff] }
 0x331   : > { %v2138_v40 = vadd.f32 %v7330_v63, %v2041_v29  ;;  %v5621_v29 = vpack.c.bf16 %v4458_v34, %v4457_v30 }
 0x332   : > { %v2137_v19 = vadd.f32 %v7330_v63, %v2036_v5  ;;  %v5146_v48 = vpop.f32.mrb[58].mxu0  ;;  %5266 = vmatprep.mubr.f32.mxu1 %v2199_v33  ;;  %v4460_v33 = vld [vmem:[%s7125_s23 + $0x138] sm:$0xff]  ;;  %5620 = vmatpush3.bf16.msra.mxu0 %v5617_v20 }
 0x333   : > { %v2051_v44 = vadd.f32 %v5146_v48, %v7370_v36  ;;  %v2045_v46 = vpop.f32.mrb[59].mxu0  ;;  %5267 = vmatmul.mubr.f32.gmra.mrb[76].mxu1 %v2200_v31  ;;  %v2202_v60 = vmax.f32 %v2138_v40, 0.0  ;;  %5622 = vmatprep.subr.bf16.mxu0 %v5621_v29 }
 0x334   : > { %v2201_v39 = vmax.f32 %v2137_v19, 0.0  ;;  %v2046_v32 = vadd.f32 %v2045_v46, %v7373_v25  ;;  %v5625_v46 = vpack.c.bf16 %v4460_v33, %v4459_v21 }
 0x335   : > { %v2140_v41 = vadd.f32 %v7330_v63, %v2051_v44 }
 0x336   : > { %v2139_v11 = vadd.f32 %v7330_v63, %v2046_v32  ;;  %v5149_v56 = vpop.f32.mrb[60].mxu0  ;;  %5269 = vmatprep.mubr.f32.mxu1 %v2201_v39  ;;  %v4461_v39 = vld [vmem:[%s7125_s23 + $0x140] sm:$0xff]  ;;  %v4462_v32 = vld [vmem:[%s7125_s23 + $0x148] sm:$0xff]  ;;  %5624 = vmatpush3.bf16.msra.mxu0 %v5621_v29 }
 0x337   : > { %v2061_v43 = vadd.f32 %v5149_v56, %v7378_v59  ;;  %v2055_v50 = vpop.f32.mrb[61].mxu0  ;;  %5270 = vmatmul.mubr.f32.gmra.mrb[78].mxu1 %v2202_v60  ;;  %v2204_v36 = vmax.f32 %v2140_v41, 0.0  ;;  %5626 = vmatprep.subr.bf16.mxu0 %v5625_v46 }
 0x338   : > { %v2203_v51 = vmax.f32 %v2139_v11, 0.0  ;;  %v2056_v52 = vadd.f32 %v2055_v50, %v7381_v42 }
 0x339   : > { %v2142_v54 = vadd.f32 %v7330_v63, %v2061_v43 }
 0x33a   : > { %v2141_v55 = vadd.f32 %v7330_v63, %v2056_v52  ;;  %v5152_v25 = vpop.f32.mrb[62].mxu0  ;;  %5272 = vmatprep.mubr.f32.mxu1 %v2203_v51  ;;  %v5629_v51 = vpack.c.bf16 %v4462_v32, %v4461_v39  ;;  %v4463_v52 = vld [vmem:[%s7125_s23 + $0x150] sm:$0xff]  ;;  %5628 = vmatpush3.bf16.msra.mxu0 %v5625_v46 }
 0x33b   : > { %v2071_v61 = vadd.f32 %v5152_v25, %v7386_v10  ;;  %v2065_v57 = vpop.f32.mrb[63].mxu0  ;;  %5273 = vmatmul.mubr.f32.gmra.mrb[80].mxu1 %v2204_v36  ;;  %v2206_v62 = vmax.f32 %v2142_v54, 0.0  ;;  %v7459_v10 = vld [vmem:[%s7327_s12 + $0x1] ss:$0 sm:$0xff]  ;;  %v4464_v36 = vld [vmem:[%s7125_s23 + $0x158] sm:$0xff] }
 0x33c   : > { %v2205_v58 = vmax.f32 %v2141_v55, 0.0  ;;  %v2066_v59 = vadd.f32 %v2065_v57, %v7389_v16  ;;  %5630 = vmatprep.subr.bf16.mxu0 %v5629_v51 }
 0x33d   : > { %v2144_v0 = vadd.f32 %v7330_v63, %v2071_v61 }
 0x33e   : > { %v2143_v42 = vadd.f32 %v7330_v63, %v2066_v59  ;;  %5275 = vmatprep.mubr.f32.mxu1 %v2205_v58  ;;  %v5633_v59 = vpack.c.bf16 %v4464_v36, %v4463_v52  ;;  %5632 = vmatpush3.bf16.msra.mxu0 %v5629_v51 }
 0x33f   : > { %5276 = vmatmul.mubr.f32.gmra.mrb[82].mxu1 %v2206_v62  ;;  %v2208_v2 = vmax.f32 %v2144_v0, 0.0  ;;  %v4465_v62 = vld [vmem:[%s7125_s23 + $0x160] sm:$0xff]  ;;  %v4466_v0 = vld [vmem:[%s7125_s23 + $0x168] sm:$0xff] }
 0x340   : > { %v2207_v38 = vmax.f32 %v2143_v42, 0.0  ;;  %5634 = vmatprep.subr.bf16.mxu0 %v5633_v59 }
 0x342   : > { %5278 = vmatprep.mubr.f32.mxu1 %v2207_v38  ;;  %5636 = vmatpush3.bf16.msra.mxu0 %v5633_v59 }
 0x343   : > { %5279 = vmatmul.mubr.f32.gmra.mrb[84].mxu1 %v2208_v2 }
 0x398   : > { %v5187_v8 = vpop.f32.mrb[22].mxu1 }
 0x399   : > { %v2307_v16 = vadd.f32 %v5187_v8, %v7459_v10  ;;  %v2301_v35 = vpop.f32.mrb[23].mxu1 }
 0x39a   : > { %v2302_v17 = vadd.f32 %v7459_v10, %v2301_v35 }
 0x39b   : > { %v2621_v14 = vmax.f32 %v2307_v16, 0.0 }
 0x39c   : > { %v2620_v63 = vmax.f32 %v2302_v17, 0.0  ;;  %v5190_v53 = vpop.f32.mrb[24].mxu1  ;;  %v5637_v17 = vpack.c.bf16 %v4466_v0, %v4465_v62 }
 0x39d   : > { %v2317_v23 = vadd.f32 %v5190_v53, %v7459_v10  ;;  %v2311_v37 = vpop.f32.mrb[25].mxu1 }
 0x39e   : > { %v2312_v7 = vadd.f32 %v7459_v10, %v2311_v37  ;;  %5313 = vmatprep.mubr.f32.mxu1 %v2620_v63  ;;  %5638 = vmatprep.subr.bf16.mxu0 %v5637_v17 }
 0x39f   : > { %5314 = vmatmul.mubr.f32.vlgmr.msra.gmra.mrb[86].mxu1 %v2621_v14  ;;  %v2623_v26 = vmax.f32 %v2317_v23, 0.0  ;;  %5640 = vmatpush3.bf16.msra.mxu0 %v5637_v17 }
 0x3a0   : > { %v2622_v18 = vmax.f32 %v2312_v7, 0.0  ;;  %v5193_v22 = vpop.f32.mrb[26].mxu1 }
 0x3a1   : > { %v2327_v24 = vadd.f32 %v5193_v22, %v7459_v10  ;;  %v2321_v27 = vpop.f32.mrb[27].mxu1 }
 0x3a2   : > { %v2322_v6 = vadd.f32 %v7459_v10, %v2321_v27  ;;  %5316 = vmatprep.mubr.f32.mxu1 %v2622_v18 }
 0x3a3   : > { %5317 = vmatmul.mubr.f32.gmra.mrb[88].mxu1 %v2623_v26  ;;  %v2625_v40 = vmax.f32 %v2327_v24, 0.0 }
 0x3a4   : > { %v2624_v5 = vmax.f32 %v2322_v6, 0.0  ;;  %v5196_v31 = vpop.f32.mrb[28].mxu1 }
 0x3a5   : > { %v2337_v19 = vadd.f32 %v5196_v31, %v7459_v10  ;;  %v2331_v48 = vpop.f32.mrb[29].mxu1 }
 0x3a6   : > { %v2332_v44 = vadd.f32 %v7459_v10, %v2331_v48  ;;  %5319 = vmatprep.mubr.f32.mxu1 %v2624_v5 }
 0x3a7   : > { %5320 = vmatmul.mubr.f32.gmra.mrb[90].mxu1 %v2625_v40  ;;  %v2627_v11 = vmax.f32 %v2337_v19, 0.0 }
 0x3a8   : > { %v2626_v60 = vmax.f32 %v2332_v44, 0.0  ;;  %v5199_v41 = vpop.f32.mrb[30].mxu1 }
 0x3a9   : > { %v2347_v56 = vadd.f32 %v5199_v41, %v7459_v10  ;;  %v2341_v43 = vpop.f32.mrb[31].mxu1 }
 0x3aa   : > { %v2342_v50 = vadd.f32 %v7459_v10, %v2341_v43  ;;  %5322 = vmatprep.mubr.f32.mxu1 %v2626_v60 }
 0x3ab   : > { %5323 = vmatmul.mubr.f32.gmra.mrb[92].mxu1 %v2627_v11  ;;  %v2629_v25 = vmax.f32 %v2347_v56, 0.0 }
 0x3ac   : > { %v2628_v54 = vmax.f32 %v2342_v50, 0.0  ;;  %v5202_v55 = vpop.f32.mrb[32].mxu1 }
 0x3ad   : > { %v2357_v61 = vadd.f32 %v5202_v55, %v7459_v10  ;;  %v2351_v57 = vpop.f32.mrb[33].mxu1 }
 0x3ae   : > { %v2352_v58 = vadd.f32 %v7459_v10, %v2351_v57  ;;  %5325 = vmatprep.mubr.f32.mxu1 %v2628_v54 }
 0x3af   : > { %5326 = vmatmul.mubr.f32.gmra.mrb[94].mxu1 %v2629_v25  ;;  %v2631_v2 = vmax.f32 %v2357_v61, 0.0 }
 0x3b0   : > { %v2630_v42 = vmax.f32 %v2352_v58, 0.0  ;;  %v5205_v38 = vpop.f32.mrb[34].mxu1 }
 0x3b1   : > { %v2367_v8 = vadd.f32 %v5205_v38, %v7459_v10  ;;  %v2361_v16 = vpop.f32.mrb[35].mxu1 }
 0x3b2   : > { %v2362_v35 = vadd.f32 %v7459_v10, %v2361_v16  ;;  %5328 = vmatprep.mubr.f32.mxu1 %v2630_v42 }
 0x3b3   : > { %5329 = vmatmul.mubr.f32.gmra.mrb[96].mxu1 %v2631_v2  ;;  %v2633_v14 = vmax.f32 %v2367_v8, 0.0 }
 0x3b4   : > { %v2632_v63 = vmax.f32 %v2362_v35, 0.0  ;;  %v5208_v53 = vpop.f32.mrb[36].mxu1 }
 0x3b5   : > { %v2377_v23 = vadd.f32 %v5208_v53, %v7459_v10  ;;  %v2371_v37 = vpop.f32.mrb[37].mxu1 }
 0x3b6   : > { %v2372_v45 = vadd.f32 %v7459_v10, %v2371_v37  ;;  %5331 = vmatprep.mubr.f32.mxu1 %v2632_v63 }
 0x3b7   : > { %5332 = vmatmul.mubr.f32.gmra.mrb[98].mxu1 %v2633_v14  ;;  %v2635_v7 = vmax.f32 %v2377_v23, 0.0 }
 0x3b8   : > { %v2634_v1 = vmax.f32 %v2372_v45, 0.0  ;;  %v5211_v28 = vpop.f32.mrb[38].mxu1 }
 0x3b9   : > { %v2387_v3 = vadd.f32 %v5211_v28, %v7459_v10  ;;  %v2381_v13 = vpop.f32.mrb[39].mxu1 }
 0x3ba   : > { %v2382_v20 = vadd.f32 %v7459_v10, %v2381_v13  ;;  %5334 = vmatprep.mubr.f32.mxu1 %v2634_v1 }
 0x3bb   : > { %5335 = vmatmul.mubr.f32.gmra.mrb[100].mxu1 %v2635_v7  ;;  %v2637_v18 = vmax.f32 %v2387_v3, 0.0 }
 0x3bc   : > { %v2636_v30 = vmax.f32 %v2382_v20, 0.0  ;;  %v5214_v34 = vpop.f32.mrb[40].mxu1 }
 0x3bd   : > { %v2397_v22 = vadd.f32 %v5214_v34, %v7459_v10  ;;  %v2391_v26 = vpop.f32.mrb[41].mxu1 }
 0x3be   : > { %v2392_v24 = vadd.f32 %v7459_v10, %v2391_v26  ;;  %5337 = vmatprep.mubr.f32.mxu1 %v2636_v30 }
 0x3bf   : > { %5338 = vmatmul.mubr.f32.gmra.mrb[102].mxu1 %v2637_v18  ;;  %v2639_v29 = vmax.f32 %v2397_v22, 0.0 }
 0x3c0   : > { %v2638_v27 = vmax.f32 %v2392_v24, 0.0  ;;  %v5217_v6 = vpop.f32.mrb[42].mxu1 }
 0x3c1   : > { %v2407_v21 = vadd.f32 %v5217_v6, %v7459_v10  ;;  %v2401_v33 = vpop.f32.mrb[43].mxu1 }
 0x3c2   : > { %v2402_v5 = vadd.f32 %v7459_v10, %v2401_v33  ;;  %5340 = vmatprep.mubr.f32.mxu1 %v2638_v27 }
 0x3c3   : > { %5341 = vmatmul.mubr.f32.gmra.mrb[104].mxu1 %v2639_v29  ;;  %v2641_v19 = vmax.f32 %v2407_v21, 0.0 }
 0x3c4   : > { %v2640_v31 = vmax.f32 %v2402_v5, 0.0  ;;  %v5220_v40 = vpop.f32.mrb[44].mxu1 }
 0x3c5   : > { %v2417_v48 = vadd.f32 %v5220_v40, %v7459_v10  ;;  %v2411_v44 = vpop.f32.mrb[45].mxu1 }
 0x3c6   : > { %v2412_v46 = vadd.f32 %v7459_v10, %v2411_v44  ;;  %5343 = vmatprep.mubr.f32.mxu1 %v2640_v31 }
 0x3c7   : > { %5344 = vmatmul.mubr.f32.gmra.mrb[106].mxu1 %v2641_v19  ;;  %v2643_v60 = vmax.f32 %v2417_v48, 0.0 }
 0x3c8   : > { %v2642_v39 = vmax.f32 %v2412_v46, 0.0  ;;  %v5223_v32 = vpop.f32.mrb[46].mxu1 }
 0x3c9   : > { %v2427_v41 = vadd.f32 %v5223_v32, %v7459_v10  ;;  %v2421_v11 = vpop.f32.mrb[47].mxu1 }
 0x3ca   : > { %v2422_v56 = vadd.f32 %v7459_v10, %v2421_v11  ;;  %5346 = vmatprep.mubr.f32.mxu1 %v2642_v39 }
 0x3cb   : > { %5347 = vmatmul.mubr.f32.gmra.mrb[108].mxu1 %v2643_v60  ;;  %v2645_v51 = vmax.f32 %v2427_v41, 0.0 }
 0x3cc   : > { %v2644_v43 = vmax.f32 %v2422_v56, 0.0  ;;  %v5226_v50 = vpop.f32.mrb[48].mxu1  ;;  %v4467_v56 = vld [vmem:[%s7125_s23 + $0x170] sm:$0xff] }
 0x3cd   : > { %v2437_v52 = vadd.f32 %v5226_v50, %v7459_v10  ;;  %v2431_v36 = vpop.f32.mrb[49].mxu1 }
 0x3ce   : > { %v2432_v54 = vadd.f32 %v7459_v10, %v2431_v36  ;;  %5349 = vmatprep.mubr.f32.mxu1 %v2644_v43  ;;  %v4468_v43 = vld [vmem:[%s7125_s23 + $0x178] sm:$0xff] }
 0x3cf   : > { %5350 = vmatmul.mubr.f32.gmra.mrb[110].mxu1 %v2645_v51  ;;  %v2647_v61 = vmax.f32 %v2437_v52, 0.0  ;;  %v5641_v36 = vpack.c.bf16 %v4468_v43, %v4467_v56 }
 0x3d0   : > { %v2646_v55 = vmax.f32 %v2432_v54, 0.0  ;;  %v5229_v25 = vpop.f32.mrb[50].mxu1 }
 0x3d1   : > { %v2447_v57 = vadd.f32 %v5229_v25, %v7459_v10  ;;  %v2441_v58 = vpop.f32.mrb[51].mxu1  ;;  %5642 = vmatprep.subr.bf16.mxu0 %v5641_v36 }
 0x3d2   : > { %v2442_v59 = vadd.f32 %v7459_v10, %v2441_v58  ;;  %5352 = vmatprep.mubr.f32.mxu1 %v2646_v55  ;;  %5644 = vmatpush3.bf16.msra.mxu0 %v5641_v36 }
 0x3d3   : > { %5353 = vmatmul.mubr.f32.gmra.mrb[112].mxu1 %v2647_v61  ;;  %v2649_v42 = vmax.f32 %v2447_v57, 0.0 }
 0x3d4   : > { %v2648_v62 = vmax.f32 %v2442_v59, 0.0  ;;  %v5232_v0 = vpop.f32.mrb[52].mxu1 }
 0x3d5   : > { %v2457_v38 = vadd.f32 %v5232_v0, %v7459_v10  ;;  %v2451_v2 = vpop.f32.mrb[53].mxu1 }
 0x3d6   : > { %v2452_v8 = vadd.f32 %v7459_v10, %v2451_v2  ;;  %5355 = vmatprep.mubr.f32.mxu1 %v2648_v62 }
 0x3d7   : > { %5356 = vmatmul.mubr.f32.gmra.mrb[114].mxu1 %v2649_v42  ;;  %v2651_v17 = vmax.f32 %v2457_v38, 0.0 }
 0x3d8   : > { %v2650_v16 = vmax.f32 %v2452_v8, 0.0  ;;  %v5235_v35 = vpop.f32.mrb[54].mxu1 }
 0x3d9   : > { %v2467_v63 = vadd.f32 %v5235_v35, %v7459_v10  ;;  %v2461_v53 = vpop.f32.mrb[55].mxu1 }
 0x3da   : > { %v2462_v14 = vadd.f32 %v7459_v10, %v2461_v53  ;;  %5358 = vmatprep.mubr.f32.mxu1 %v2650_v16 }
 0x3db   : > { %5359 = vmatmul.mubr.f32.gmra.mrb[116].mxu1 %v2651_v17  ;;  %v2653_v45 = vmax.f32 %v2467_v63, 0.0 }
 0x3dc   : > { %v2652_v23 = vmax.f32 %v2462_v14, 0.0  ;;  %v5238_v37 = vpop.f32.mrb[56].mxu1 }
 0x3dd   : > { %v2477_v1 = vadd.f32 %v5238_v37, %v7459_v10  ;;  %v2471_v28 = vpop.f32.mrb[57].mxu1 }
 0x3de   : > { %v2472_v7 = vadd.f32 %v7459_v10, %v2471_v28  ;;  %5361 = vmatprep.mubr.f32.mxu1 %v2652_v23 }
 0x3df   : > { %5362 = vmatmul.mubr.f32.gmra.mrb[118].mxu1 %v2653_v45  ;;  %v2655_v20 = vmax.f32 %v2477_v1, 0.0 }
 0x3e0   : > { %v2654_v3 = vmax.f32 %v2472_v7, 0.0  ;;  %v5241_v13 = vpop.f32.mrb[58].mxu1 }
 0x3e1   : > { %v2487_v30 = vadd.f32 %v5241_v13, %v7459_v10  ;;  %v2481_v34 = vpop.f32.mrb[59].mxu1 }
 0x3e2   : > { %v2482_v18 = vadd.f32 %v7459_v10, %v2481_v34  ;;  %5364 = vmatprep.mubr.f32.mxu1 %v2654_v3 }
 0x3e3   : > { %5365 = vmatmul.mubr.f32.gmra.mrb[120].mxu1 %v2655_v20  ;;  %v2657_v24 = vmax.f32 %v2487_v30, 0.0 }
 0x3e4   : > { %v2656_v22 = vmax.f32 %v2482_v18, 0.0  ;;  %v5244_v26 = vpop.f32.mrb[60].mxu1 }
 0x3e5   : > { %v2497_v27 = vadd.f32 %v5244_v26, %v7459_v10  ;;  %v2491_v6 = vpop.f32.mrb[61].mxu1 }
 0x3e6   : > { %v2492_v29 = vadd.f32 %v7459_v10, %v2491_v6  ;;  %5367 = vmatprep.mubr.f32.mxu1 %v2656_v22 }
 0x3e7   : > { %5368 = vmatmul.mubr.f32.gmra.mrb[122].mxu1 %v2657_v24  ;;  %v2659_v5 = vmax.f32 %v2497_v27, 0.0 }
 0x3e8   : > { %v2658_v21 = vmax.f32 %v2492_v29, 0.0  ;;  %v5247_v33 = vpop.f32.mrb[62].mxu1 }
 0x3e9   : > { %v2507_v31 = vadd.f32 %v5247_v33, %v7459_v10  ;;  %v2501_v40 = vpop.f32.mrb[63].mxu1 }
 0x3ea   : > { %v2502_v19 = vadd.f32 %v7459_v10, %v2501_v40  ;;  %5370 = vmatprep.mubr.f32.mxu1 %v2658_v21 }
 0x3eb   : > { %5371 = vmatmul.mubr.f32.gmra.mrb[124].mxu1 %v2659_v5  ;;  %v2661_v44 = vmax.f32 %v2507_v31, 0.0 }
 0x3ec   : > { %v2660_v48 = vmax.f32 %v2502_v19, 0.0 }
 0x3ee   : > { %v5250_v46 = vpop.f32.mrb[64].mxu1  ;;  %5373 = vmatprep.mubr.f32.mxu1 %v2660_v48 }
 0x3ef   : > { %v2517_v39 = vadd.f32 %v5250_v46, %v7459_v10  ;;  %v2511_v32 = vpop.f32.mrb[65].mxu1  ;;  %5374 = vmatmul.mubr.f32.gmra.mrb[126].mxu1 %v2661_v44 }
 0x3f0   : > { %v2512_v60 = vadd.f32 %v7459_v10, %v2511_v32 }
 0x3f1   : > { %v2663_v50 = vmax.f32 %v2517_v39, 0.0 }
 0x3f2   : > { %v2662_v41 = vmax.f32 %v2512_v60, 0.0  ;;  %v5253_v11 = vpop.f32.mrb[66].mxu1 }
 0x3f3   : > { %v2527_v51 = vadd.f32 %v5253_v11, %v7459_v10  ;;  %v2521_v52 = vpop.f32.mrb[67].mxu1 }
 0x3f4   : > { %v2522_v54 = vadd.f32 %v7459_v10, %v2521_v52  ;;  %5376 = vmatprep.mubr.f32.mxu1 %v2662_v41 }
 0x3f5   : > { %5377 = vmatmul.mubr.f32.gmra.mrb[128].mxu1 %v2663_v50  ;;  %v2665_v61 = vmax.f32 %v2527_v51, 0.0 }
 0x3f6   : > { %v2664_v55 = vmax.f32 %v2522_v54, 0.0  ;;  %v5256_v25 = vpop.f32.mrb[68].mxu1  ;;  %v7542_v54 = vld [vmem:[%s7327_s12 + $0x2] ss:$0 sm:$0xff] }
 0x3f7   : > { %v2537_v57 = vadd.f32 %v5256_v25, %v7459_v10  ;;  %v2531_v58 = vpop.f32.mrb[69].mxu1 }
 0x3f8   : > { %v2532_v59 = vadd.f32 %v7459_v10, %v2531_v58  ;;  %5379 = vmatprep.mubr.f32.mxu1 %v2664_v55 }
 0x3f9   : > { %5380 = vmatmul.mubr.f32.gmra.mrb[130].mxu1 %v2665_v61  ;;  %v2667_v42 = vmax.f32 %v2537_v57, 0.0 }
 0x3fa   : > { %v2666_v62 = vmax.f32 %v2532_v59, 0.0  ;;  %v5259_v0 = vpop.f32.mrb[70].mxu1 }
 0x3fb   : > { %v2547_v38 = vadd.f32 %v5259_v0, %v7459_v10  ;;  %v2541_v2 = vpop.f32.mrb[71].mxu1 }
 0x3fc   : > { %v2542_v8 = vadd.f32 %v7459_v10, %v2541_v2  ;;  %5382 = vmatprep.mubr.f32.mxu1 %v2666_v62 }
 0x3fd   : > { %5383 = vmatmul.mubr.f32.gmra.mrb[132].mxu1 %v2667_v42  ;;  %v2669_v17 = vmax.f32 %v2547_v38, 0.0 }
 0x3fe   : > { %v2668_v16 = vmax.f32 %v2542_v8, 0.0  ;;  %v5262_v35 = vpop.f32.mrb[72].mxu1 }
 0x3ff   : > { %v2557_v63 = vadd.f32 %v5262_v35, %v7459_v10  ;;  %v2551_v53 = vpop.f32.mrb[73].mxu1 }
 0x400   : > { %v2552_v14 = vadd.f32 %v7459_v10, %v2551_v53  ;;  %5385 = vmatprep.mubr.f32.mxu1 %v2668_v16 }
 0x401   : > { %5386 = vmatmul.mubr.f32.gmra.mrb[134].mxu1 %v2669_v17  ;;  %v2671_v45 = vmax.f32 %v2557_v63, 0.0 }
 0x402   : > { %v2670_v23 = vmax.f32 %v2552_v14, 0.0  ;;  %v5265_v37 = vpop.f32.mrb[74].mxu1 }
 0x403   : > { %v2567_v1 = vadd.f32 %v5265_v37, %v7459_v10  ;;  %v2561_v28 = vpop.f32.mrb[75].mxu1 }
 0x404   : > { %v2562_v7 = vadd.f32 %v7459_v10, %v2561_v28  ;;  %5388 = vmatprep.mubr.f32.mxu1 %v2670_v23 }
 0x405   : > { %5389 = vmatmul.mubr.f32.gmra.mrb[136].mxu1 %v2671_v45  ;;  %v2673_v20 = vmax.f32 %v2567_v1, 0.0 }
 0x406   : > { %v2672_v3 = vmax.f32 %v2562_v7, 0.0  ;;  %v5268_v13 = vpop.f32.mrb[76].mxu1 }
 0x407   : > { %v2577_v30 = vadd.f32 %v5268_v13, %v7459_v10  ;;  %v2571_v34 = vpop.f32.mrb[77].mxu1 }
 0x408   : > { %v2572_v18 = vadd.f32 %v7459_v10, %v2571_v34  ;;  %5391 = vmatprep.mubr.f32.mxu1 %v2672_v3 }
 0x409   : > { %5392 = vmatmul.mubr.f32.gmra.mrb[138].mxu1 %v2673_v20  ;;  %v2675_v24 = vmax.f32 %v2577_v30, 0.0 }
 0x40a   : > { %v2674_v22 = vmax.f32 %v2572_v18, 0.0  ;;  %v5271_v26 = vpop.f32.mrb[78].mxu1 }
 0x40b   : > { %v2587_v27 = vadd.f32 %v5271_v26, %v7459_v10  ;;  %v2581_v6 = vpop.f32.mrb[79].mxu1 }
 0x40c   : > { %v2582_v29 = vadd.f32 %v7459_v10, %v2581_v6  ;;  %5394 = vmatprep.mubr.f32.mxu1 %v2674_v22 }
 0x40d   : > { %5395 = vmatmul.mubr.f32.gmra.mrb[140].mxu1 %v2675_v24  ;;  %v2677_v5 = vmax.f32 %v2587_v27, 0.0 }
 0x40e   : > { %v2676_v21 = vmax.f32 %v2582_v29, 0.0  ;;  %v5274_v33 = vpop.f32.mrb[80].mxu1 }
 0x40f   : > { %v2597_v31 = vadd.f32 %v5274_v33, %v7459_v10  ;;  %v2591_v40 = vpop.f32.mrb[81].mxu1 }
 0x410   : > { %v2592_v19 = vadd.f32 %v7459_v10, %v2591_v40  ;;  %5397 = vmatprep.mubr.f32.mxu1 %v2676_v21 }
 0x411   : > { %5398 = vmatmul.mubr.f32.gmra.mrb[142].mxu1 %v2677_v5  ;;  %v2679_v46 = vmax.f32 %v2597_v31, 0.0 }
 0x412   : > { %v2678_v48 = vmax.f32 %v2592_v19, 0.0  ;;  %v5277_v44 = vpop.f32.mrb[82].mxu1 }
 0x413   : > { %v2607_v39 = vadd.f32 %v5277_v44, %v7459_v10  ;;  %v2601_v32 = vpop.f32.mrb[83].mxu1 }
 0x414   : > { %v2602_v60 = vadd.f32 %v7459_v10, %v2601_v32  ;;  %5400 = vmatprep.mubr.f32.mxu1 %v2678_v48 }
 0x415   : > { %5401 = vmatmul.mubr.f32.gmra.mrb[144].mxu1 %v2679_v46  ;;  %v2681_v56 = vmax.f32 %v2607_v39, 0.0 }
 0x416   : > { %v2680_v41 = vmax.f32 %v2602_v60, 0.0  ;;  %v5280_v11 = vpop.f32.mrb[84].mxu1 }
 0x417   : > { %v2617_v43 = vadd.f32 %v5280_v11, %v7459_v10  ;;  %v2611_v50 = vpop.f32.mrb[85].mxu1 }
 0x418   : > { %v2612_v51 = vadd.f32 %v7459_v10, %v2611_v50  ;;  %5403 = vmatprep.mubr.f32.mxu1 %v2680_v41 }
 0x419   : > { %5404 = vmatmul.mubr.f32.gmra.mrb[146].mxu1 %v2681_v56  ;;  %v2683_v36 = vmax.f32 %v2617_v43, 0.0 }
 0x41a   : > { %v2682_v52 = vmax.f32 %v2612_v51, 0.0 }
 0x41c   : > { %5406 = vmatprep.mubr.f32.mxu1 %v2682_v52 }
 0x41d   : > { %5407 = vmatmul.mubr.f32.gmra.mrb[148].mxu1 %v2683_v36 }
 0x472   : > { %v5315_v55 = vpop.f32.mrb[86].mxu1 }
 0x473   : > { %v2782_v25 = vadd.f32 %v5315_v55, %v7542_v54  ;;  %v2776_v61 = vpop.f32.mrb[87].mxu1 }
 0x474   : > { %v2777_v57 = vadd.f32 %v7542_v54, %v2776_v61 }
 0x475   : > { %v3096_v62 = vmax.f32 %v2782_v25, 0.0 }
 0x476   : > { %v3095_v58 = vmax.f32 %v2777_v57, 0.0  ;;  %v5318_v59 = vpop.f32.mrb[88].mxu1 }
 0x477   : > { %v2792_v0 = vadd.f32 %v5318_v59, %v7542_v54  ;;  %v2786_v10 = vpop.f32.mrb[89].mxu1 }
 0x478   : > { %v2787_v42 = vadd.f32 %v7542_v54, %v2786_v10  ;;  %5441 = vmatprep.mubr.f32.mxu0 %v3095_v58 }
 0x479   : > { %5442 = vmatmul.mubr.f32.vlgmr.msra.gmra.mrb[64].mxu0 %v3096_v62  ;;  %v3098_v8 = vmax.f32 %v2792_v0, 0.0 }
 0x47a   : > { %v3097_v38 = vmax.f32 %v2787_v42, 0.0  ;;  %v5321_v2 = vpop.f32.mrb[90].mxu1 }
 0x47b   : > { %v2802_v16 = vadd.f32 %v5321_v2, %v7542_v54  ;;  %v2796_v35 = vpop.f32.mrb[91].mxu1 }
 0x47c   : > { %v2797_v17 = vadd.f32 %v7542_v54, %v2796_v35  ;;  %5444 = vmatprep.mubr.f32.mxu0 %v3097_v38 }
 0x47d   : > { %5445 = vmatmul.mubr.f32.gmra.mrb[66].mxu0 %v3098_v8  ;;  %v3100_v14 = vmax.f32 %v2802_v16, 0.0 }
 0x47e   : > { %v3099_v63 = vmax.f32 %v2797_v17, 0.0  ;;  %v5324_v53 = vpop.f32.mrb[92].mxu1 }
 0x47f   : > { %v2812_v23 = vadd.f32 %v5324_v53, %v7542_v54  ;;  %v2806_v37 = vpop.f32.mrb[93].mxu1 }
 0x480   : > { %v2807_v45 = vadd.f32 %v7542_v54, %v2806_v37  ;;  %5447 = vmatprep.mubr.f32.mxu0 %v3099_v63 }
 0x481   : > { %5448 = vmatmul.mubr.f32.gmra.mrb[68].mxu0 %v3100_v14  ;;  %v3102_v7 = vmax.f32 %v2812_v23, 0.0 }
 0x482   : > { %v3101_v1 = vmax.f32 %v2807_v45, 0.0  ;;  %v5327_v28 = vpop.f32.mrb[94].mxu1 }
 0x483   : > { %v2822_v3 = vadd.f32 %v5327_v28, %v7542_v54  ;;  %v2816_v13 = vpop.f32.mrb[95].mxu1 }
 0x484   : > { %v2817_v20 = vadd.f32 %v7542_v54, %v2816_v13  ;;  %5450 = vmatprep.mubr.f32.mxu0 %v3101_v1 }
 0x485   : > { %5451 = vmatmul.mubr.f32.gmra.mrb[70].mxu0 %v3102_v7  ;;  %v3104_v18 = vmax.f32 %v2822_v3, 0.0 }
 0x486   : > { %v3103_v30 = vmax.f32 %v2817_v20, 0.0  ;;  %v5330_v34 = vpop.f32.mrb[96].mxu1 }
 0x487   : > { %v2832_v22 = vadd.f32 %v5330_v34, %v7542_v54  ;;  %v2826_v26 = vpop.f32.mrb[97].mxu1 }
 0x488   : > { %v2827_v24 = vadd.f32 %v7542_v54, %v2826_v26  ;;  %5453 = vmatprep.mubr.f32.mxu0 %v3103_v30 }
 0x489   : > { %5454 = vmatmul.mubr.f32.gmra.mrb[72].mxu0 %v3104_v18  ;;  %v3106_v29 = vmax.f32 %v2832_v22, 0.0 }
 0x48a   : > { %v3105_v27 = vmax.f32 %v2827_v24, 0.0  ;;  %v5333_v6 = vpop.f32.mrb[98].mxu1 }
 0x48b   : > { %v2842_v21 = vadd.f32 %v5333_v6, %v7542_v54  ;;  %v2836_v33 = vpop.f32.mrb[99].mxu1 }
 0x48c   : > { %v2837_v5 = vadd.f32 %v7542_v54, %v2836_v33  ;;  %5456 = vmatprep.mubr.f32.mxu0 %v3105_v27 }
 0x48d   : > { %5457 = vmatmul.mubr.f32.gmra.mrb[74].mxu0 %v3106_v29  ;;  %v3108_v19 = vmax.f32 %v2842_v21, 0.0 }
 0x48e   : > { %v3107_v31 = vmax.f32 %v2837_v5, 0.0  ;;  %v5336_v40 = vpop.f32.mrb[100].mxu1 }
 0x48f   : > { %v2852_v48 = vadd.f32 %v5336_v40, %v7542_v54  ;;  %v2846_v44 = vpop.f32.mrb[101].mxu1 }
 0x490   : > { %v2847_v46 = vadd.f32 %v7542_v54, %v2846_v44  ;;  %5459 = vmatprep.mubr.f32.mxu0 %v3107_v31 }
 0x491   : > { %5460 = vmatmul.mubr.f32.gmra.mrb[76].mxu0 %v3108_v19  ;;  %v3110_v60 = vmax.f32 %v2852_v48, 0.0 }
 0x492   : > { %v3109_v39 = vmax.f32 %v2847_v46, 0.0  ;;  %v5339_v32 = vpop.f32.mrb[102].mxu1 }
 0x493   : > { %v2862_v41 = vadd.f32 %v5339_v32, %v7542_v54  ;;  %v2856_v11 = vpop.f32.mrb[103].mxu1 }
 0x494   : > { %v2857_v56 = vadd.f32 %v7542_v54, %v2856_v11  ;;  %5462 = vmatprep.mubr.f32.mxu0 %v3109_v39 }
 0x495   : > { %5463 = vmatmul.mubr.f32.gmra.mrb[78].mxu0 %v3110_v60  ;;  %v3112_v51 = vmax.f32 %v2862_v41, 0.0 }
 0x496   : > { %v3111_v43 = vmax.f32 %v2857_v56, 0.0  ;;  %v5342_v50 = vpop.f32.mrb[104].mxu1 }
 0x497   : > { %v2872_v52 = vadd.f32 %v5342_v50, %v7542_v54  ;;  %v2866_v36 = vpop.f32.mrb[105].mxu1 }
 0x498   : > { %v2867_v55 = vadd.f32 %v7542_v54, %v2866_v36  ;;  %5465 = vmatprep.mubr.f32.mxu0 %v3111_v43 }
 0x499   : > { %5466 = vmatmul.mubr.f32.gmra.mrb[80].mxu0 %v3112_v51  ;;  %v3114_v57 = vmax.f32 %v2872_v52, 0.0 }
 0x49a   : > { %v3113_v25 = vmax.f32 %v2867_v55, 0.0  ;;  %v5345_v61 = vpop.f32.mrb[106].mxu1 }
 0x49b   : > { %v2882_v58 = vadd.f32 %v5345_v61, %v7542_v54  ;;  %v2876_v59 = vpop.f32.mrb[107].mxu1 }
 0x49c   : > { %v2877_v62 = vadd.f32 %v7542_v54, %v2876_v59  ;;  %5468 = vmatprep.mubr.f32.mxu0 %v3113_v25 }
 0x49d   : > { %5469 = vmatmul.mubr.f32.gmra.mrb[82].mxu0 %v3114_v57  ;;  %v3116_v42 = vmax.f32 %v2882_v58, 0.0 }
 0x49e   : > { %v3115_v0 = vmax.f32 %v2877_v62, 0.0  ;;  %v5348_v10 = vpop.f32.mrb[108].mxu1 }
 0x49f   : > { %v2892_v38 = vadd.f32 %v5348_v10, %v7542_v54  ;;  %v2886_v2 = vpop.f32.mrb[109].mxu1 }
 0x4a0   : > { %v2887_v8 = vadd.f32 %v7542_v54, %v2886_v2  ;;  %5471 = vmatprep.mubr.f32.mxu0 %v3115_v0 }
 0x4a1   : > { %5472 = vmatmul.mubr.f32.gmra.mrb[84].mxu0 %v3116_v42  ;;  %v3118_v17 = vmax.f32 %v2892_v38, 0.0 }
 0x4a2   : > { %v3117_v16 = vmax.f32 %v2887_v8, 0.0  ;;  %v5351_v35 = vpop.f32.mrb[110].mxu1 }
 0x4a3   : > { %v2902_v63 = vadd.f32 %v5351_v35, %v7542_v54  ;;  %v2896_v53 = vpop.f32.mrb[111].mxu1 }
 0x4a4   : > { %v2897_v14 = vadd.f32 %v7542_v54, %v2896_v53  ;;  %5474 = vmatprep.mubr.f32.mxu0 %v3117_v16 }
 0x4a5   : > { %5475 = vmatmul.mubr.f32.gmra.mrb[86].mxu0 %v3118_v17  ;;  %v3120_v45 = vmax.f32 %v2902_v63, 0.0 }
 0x4a6   : > { %v3119_v23 = vmax.f32 %v2897_v14, 0.0  ;;  %v5354_v37 = vpop.f32.mrb[112].mxu1 }
 0x4a7   : > { %v2912_v1 = vadd.f32 %v5354_v37, %v7542_v54  ;;  %v2906_v28 = vpop.f32.mrb[113].mxu1 }
 0x4a8   : > { %v2907_v7 = vadd.f32 %v7542_v54, %v2906_v28  ;;  %5477 = vmatprep.mubr.f32.mxu0 %v3119_v23 }
 0x4a9   : > { %5478 = vmatmul.mubr.f32.gmra.mrb[88].mxu0 %v3120_v45  ;;  %v3122_v20 = vmax.f32 %v2912_v1, 0.0 }
 0x4aa   : > { %v3121_v3 = vmax.f32 %v2907_v7, 0.0  ;;  %v5357_v13 = vpop.f32.mrb[114].mxu1 }
 0x4ab   : > { %v2922_v30 = vadd.f32 %v5357_v13, %v7542_v54  ;;  %v2916_v34 = vpop.f32.mrb[115].mxu1 }
 0x4ac   : > { %v2917_v18 = vadd.f32 %v7542_v54, %v2916_v34  ;;  %5480 = vmatprep.mubr.f32.mxu0 %v3121_v3 }
 0x4ad   : > { %5481 = vmatmul.mubr.f32.gmra.mrb[90].mxu0 %v3122_v20  ;;  %v3124_v24 = vmax.f32 %v2922_v30, 0.0 }
 0x4ae   : > { %v3123_v22 = vmax.f32 %v2917_v18, 0.0  ;;  %v5360_v26 = vpop.f32.mrb[116].mxu1 }
 0x4af   : > { %v2932_v27 = vadd.f32 %v5360_v26, %v7542_v54  ;;  %v2926_v6 = vpop.f32.mrb[117].mxu1 }
 0x4b0   : > { %v2927_v29 = vadd.f32 %v7542_v54, %v2926_v6  ;;  %5483 = vmatprep.mubr.f32.mxu0 %v3123_v22 }
 0x4b1   : > { %5484 = vmatmul.mubr.f32.gmra.mrb[92].mxu0 %v3124_v24  ;;  %v3126_v5 = vmax.f32 %v2932_v27, 0.0 }
 0x4b2   : > { %v3125_v21 = vmax.f32 %v2927_v29, 0.0  ;;  %v5363_v33 = vpop.f32.mrb[118].mxu1 }
 0x4b3   : > { %v2942_v31 = vadd.f32 %v5363_v33, %v7542_v54  ;;  %v2936_v40 = vpop.f32.mrb[119].mxu1 }
 0x4b4   : > { %v2937_v19 = vadd.f32 %v7542_v54, %v2936_v40  ;;  %5486 = vmatprep.mubr.f32.mxu0 %v3125_v21 }
 0x4b5   : > { %5487 = vmatmul.mubr.f32.gmra.mrb[94].mxu0 %v3126_v5  ;;  %v3128_v46 = vmax.f32 %v2942_v31, 0.0 }
 0x4b6   : > { %v3127_v48 = vmax.f32 %v2937_v19, 0.0  ;;  %v5366_v44 = vpop.f32.mrb[120].mxu1 }
 0x4b7   : > { %v2952_v39 = vadd.f32 %v5366_v44, %v7542_v54  ;;  %v2946_v32 = vpop.f32.mrb[121].mxu1 }
 0x4b8   : > { %v2947_v60 = vadd.f32 %v7542_v54, %v2946_v32  ;;  %5489 = vmatprep.mubr.f32.mxu0 %v3127_v48 }
 0x4b9   : > { %5490 = vmatmul.mubr.f32.gmra.mrb[96].mxu0 %v3128_v46  ;;  %v3130_v56 = vmax.f32 %v2952_v39, 0.0 }
 0x4ba   : > { %v3129_v41 = vmax.f32 %v2947_v60, 0.0  ;;  %v5369_v11 = vpop.f32.mrb[122].mxu1 }
 0x4bb   : > { %v2962_v43 = vadd.f32 %v5369_v11, %v7542_v54  ;;  %v2956_v50 = vpop.f32.mrb[123].mxu1 }
 0x4bc   : > { %v2957_v51 = vadd.f32 %v7542_v54, %v2956_v50  ;;  %5492 = vmatprep.mubr.f32.mxu0 %v3129_v41 }
 0x4bd   : > { %5493 = vmatmul.mubr.f32.gmra.mrb[98].mxu0 %v3130_v56  ;;  %v3132_v55 = vmax.f32 %v2962_v43, 0.0 }
 0x4be   : > { %v3131_v52 = vmax.f32 %v2957_v51, 0.0  ;;  %v5372_v36 = vpop.f32.mrb[124].mxu1 }
 0x4bf   : > { %v2972_v25 = vadd.f32 %v5372_v36, %v7542_v54  ;;  %v2966_v61 = vpop.f32.mrb[125].mxu1 }
 0x4c0   : > { %v2967_v57 = vadd.f32 %v7542_v54, %v2966_v61  ;;  %5495 = vmatprep.mubr.f32.mxu0 %v3131_v52 }
 0x4c1   : > { %5496 = vmatmul.mubr.f32.gmra.mrb[100].mxu0 %v3132_v55  ;;  %v3134_v62 = vmax.f32 %v2972_v25, 0.0 }
 0x4c2   : > { %v3133_v58 = vmax.f32 %v2967_v57, 0.0  ;;  %v5375_v59 = vpop.f32.mrb[126].mxu1 }
 0x4c3   : > { %v2982_v0 = vadd.f32 %v5375_v59, %v7542_v54  ;;  %v2976_v10 = vpop.f32.mrb[127].mxu1 }
 0x4c4   : > { %v2977_v42 = vadd.f32 %v7542_v54, %v2976_v10  ;;  %5498 = vmatprep.mubr.f32.mxu0 %v3133_v58 }
 0x4c5   : > { %5499 = vmatmul.mubr.f32.gmra.mrb[102].mxu0 %v3134_v62  ;;  %v3136_v2 = vmax.f32 %v2982_v0, 0.0 }
 0x4c6   : > { %v3135_v38 = vmax.f32 %v2977_v42, 0.0 }
 0x4c8   : > { %v5378_v8 = vpop.f32.mrb[128].mxu1  ;;  %5501 = vmatprep.mubr.f32.mxu0 %v3135_v38 }
 0x4c9   : > { %v2992_v16 = vadd.f32 %v5378_v8, %v7542_v54  ;;  %v2986_v35 = vpop.f32.mrb[129].mxu1  ;;  %5502 = vmatmul.mubr.f32.gmra.mrb[104].mxu0 %v3136_v2 }
 0x4ca   : > { %v2987_v17 = vadd.f32 %v7542_v54, %v2986_v35 }
 0x4cb   : > { %v3138_v14 = vmax.f32 %v2992_v16, 0.0 }
 0x4cc   : > { %v3137_v63 = vmax.f32 %v2987_v17, 0.0  ;;  %v5381_v53 = vpop.f32.mrb[130].mxu1 }
 0x4cd   : > { %v3002_v23 = vadd.f32 %v5381_v53, %v7542_v54  ;;  %v2996_v37 = vpop.f32.mrb[131].mxu1 }
 0x4ce   : > { %v2997_v45 = vadd.f32 %v7542_v54, %v2996_v37  ;;  %5504 = vmatprep.mubr.f32.mxu0 %v3137_v63 }
 0x4cf   : > { %5505 = vmatmul.mubr.f32.gmra.mrb[106].mxu0 %v3138_v14  ;;  %v3140_v7 = vmax.f32 %v3002_v23, 0.0 }
 0x4d0   : > { %v3139_v1 = vmax.f32 %v2997_v45, 0.0  ;;  %v5384_v28 = vpop.f32.mrb[132].mxu1  ;;  %v6339_v45 = vmov 1.0  }
 0x4d1   : > { %v3012_v3 = vadd.f32 %v5384_v28, %v7542_v54  ;;  %v3006_v13 = vpop.f32.mrb[133].mxu1  ;;  %4480 = vmatprep.mubr.msk.f32.mxu1 %vm8043_vm14, %v6339_v45 }
 0x4d2   : > { %v3007_v20 = vadd.f32 %v7542_v54, %v3006_v13  ;;  %5507 = vmatprep.mubr.f32.mxu0 %v3139_v1  ;;  %v7614_v1 = vld [vmem:[%s7327_s12 + $0x3] ss:$0 sm:$0xff] }
 0x4d3   : > { %5508 = vmatmul.mubr.f32.gmra.mrb[108].mxu0 %v3140_v7  ;;  %v3142_v18 = vmax.f32 %v3012_v3, 0.0 }
 0x4d4   : > { %v3141_v30 = vmax.f32 %v3007_v20, 0.0  ;;  %v5387_v34 = vpop.f32.mrb[134].mxu1 }
 0x4d5   : > { %v3022_v22 = vadd.f32 %v5387_v34, %v7542_v54  ;;  %v3016_v26 = vpop.f32.mrb[135].mxu1  ;;  %v7618_v34 = vstv %s3826_s3 }
 0x4d6   : > { %v3017_v24 = vadd.f32 %v7542_v54, %v3016_v26  ;;  %5510 = vmatprep.mubr.f32.mxu0 %v3141_v30 }
 0x4d7   : > { %5511 = vmatmul.mubr.f32.gmra.mrb[110].mxu0 %v3142_v18  ;;  %v3144_v29 = vmax.f32 %v3022_v22, 0.0 }
 0x4d8   : > { %v3143_v27 = vmax.f32 %v3017_v24, 0.0  ;;  %v5390_v6 = vpop.f32.mrb[136].mxu1 }
 0x4d9   : > { %v3032_v21 = vadd.f32 %v5390_v6, %v7542_v54  ;;  %v3026_v33 = vpop.f32.mrb[137].mxu1 }
 0x4da   : > { %v3027_v5 = vadd.f32 %v7542_v54, %v3026_v33  ;;  %5513 = vmatprep.mubr.f32.mxu0 %v3143_v27 }
 0x4db   : > { %5514 = vmatmul.mubr.f32.gmra.mrb[112].mxu0 %v3144_v29  ;;  %v3146_v19 = vmax.f32 %v3032_v21, 0.0 }
 0x4dc   : > { %v3145_v31 = vmax.f32 %v3027_v5, 0.0  ;;  %v5393_v40 = vpop.f32.mrb[138].mxu1 }
 0x4dd   : > { %v3042_v48 = vadd.f32 %v5393_v40, %v7542_v54  ;;  %v3036_v44 = vpop.f32.mrb[139].mxu1 }
 0x4de   : > { %v3037_v46 = vadd.f32 %v7542_v54, %v3036_v44  ;;  %5516 = vmatprep.mubr.f32.mxu0 %v3145_v31 }
 0x4df   : > { %5517 = vmatmul.mubr.f32.gmra.mrb[114].mxu0 %v3146_v19  ;;  %v3148_v60 = vmax.f32 %v3042_v48, 0.0 }
 0x4e0   : > { %v3147_v39 = vmax.f32 %v3037_v46, 0.0  ;;  %v5396_v32 = vpop.f32.mrb[140].mxu1 }
 0x4e1   : > { %v3052_v41 = vadd.f32 %v5396_v32, %v7542_v54  ;;  %v3046_v11 = vpop.f32.mrb[141].mxu1 }
 0x4e2   : > { %v3047_v56 = vadd.f32 %v7542_v54, %v3046_v11  ;;  %5519 = vmatprep.mubr.f32.mxu0 %v3147_v39 }
 0x4e3   : > { %5520 = vmatmul.mubr.f32.gmra.mrb[116].mxu0 %v3148_v60  ;;  %v3150_v51 = vmax.f32 %v3052_v41, 0.0 }
 0x4e4   : > { %v3149_v43 = vmax.f32 %v3047_v56, 0.0  ;;  %v5399_v50 = vpop.f32.mrb[142].mxu1 }
 0x4e5   : > { %v3062_v52 = vadd.f32 %v5399_v50, %v7542_v54  ;;  %v3056_v36 = vpop.f32.mrb[143].mxu1 }
 0x4e6   : > { %v3057_v55 = vadd.f32 %v7542_v54, %v3056_v36  ;;  %5522 = vmatprep.mubr.f32.mxu0 %v3149_v43 }
 0x4e7   : > { %5523 = vmatmul.mubr.f32.gmra.mrb[118].mxu0 %v3150_v51  ;;  %v3152_v57 = vmax.f32 %v3062_v52, 0.0 }
 0x4e8   : > { %v3151_v25 = vmax.f32 %v3057_v55, 0.0  ;;  %v5402_v61 = vpop.f32.mrb[144].mxu1 }
 0x4e9   : > { %v3072_v58 = vadd.f32 %v5402_v61, %v7542_v54  ;;  %v3066_v59 = vpop.f32.mrb[145].mxu1 }
 0x4ea   : > { %v3067_v62 = vadd.f32 %v7542_v54, %v3066_v59  ;;  %5525 = vmatprep.mubr.f32.mxu0 %v3151_v25 }
 0x4eb   : > { %5526 = vmatmul.mubr.f32.gmra.mrb[120].mxu0 %v3152_v57  ;;  %v3154_v42 = vmax.f32 %v3072_v58, 0.0 }
 0x4ec   : > { %v3153_v0 = vmax.f32 %v3067_v62, 0.0  ;;  %v5405_v10 = vpop.f32.mrb[146].mxu1 }
 0x4ed   : > { %v3082_v38 = vadd.f32 %v5405_v10, %v7542_v54  ;;  %v3076_v2 = vpop.f32.mrb[147].mxu1 }
 0x4ee   : > { %v3077_v8 = vadd.f32 %v7542_v54, %v3076_v2  ;;  %5528 = vmatprep.mubr.f32.mxu0 %v3153_v0 }
 0x4ef   : > { %5529 = vmatmul.mubr.f32.gmra.mrb[122].mxu0 %v3154_v42  ;;  %v3156_v17 = vmax.f32 %v3082_v38, 0.0 }
 0x4f0   : > { %v3155_v16 = vmax.f32 %v3077_v8, 0.0  ;;  %v5408_v35 = vpop.f32.mrb[148].mxu1 }
 0x4f1   : > { %v3092_v63 = vadd.f32 %v5408_v35, %v7542_v54  ;;  %v3086_v53 = vpop.f32.mrb[149].mxu1 }
 0x4f2   : > { %v3087_v14 = vadd.f32 %v7542_v54, %v3086_v53  ;;  %5531 = vmatprep.mubr.f32.mxu0 %v3155_v16 }
 0x4f3   : > { %5532 = vmatmul.mubr.f32.gmra.mrb[124].mxu0 %v3156_v17  ;;  %v3158_v37 = vmax.f32 %v3092_v63, 0.0 }
 0x4f4   : > { %v3157_v23 = vmax.f32 %v3087_v14, 0.0 }
 0x4f6   : > { %5534 = vmatprep.mubr.f32.mxu0 %v3157_v23 }
 0x4f7   : > { %5535 = vmatmul.mubr.f32.gmra.mrb[126].mxu0 %v3158_v37 }
 0x54c   : > { %v5443_v28 = vpop.f32.mrb[64].mxu0 }
 0x54d   : > { %v3257_v7 = vadd.f32 %v5443_v28, %v7614_v1  ;;  %v3251_v3 = vpop.f32.mrb[65].mxu0 }
 0x54e   : > { %v3252_v54 = vadd.f32 %v7614_v1, %v3251_v3 }
 0x54f   : > { %v3571_v13 = vmax.f32 %v3257_v7, 0.0 }
 0x550   : > { %v3570_v20 = vmax.f32 %v3252_v54, 0.0  ;;  %v5446_v30 = vpop.f32.mrb[66].mxu0 }
 0x551   : > { %vm3635_vm6 = vcmp.ge.f32.partialorder %v3571_v13, 0.0  ;;  %v3699_v18 = vmul.f32 0.01, %v3571_v13  ;;  %v3267_v22 = vadd.f32 %v5446_v30, %v7614_v1  ;;  %v3261_v26 = vpop.f32.mrb[67].mxu0 }
 0x552   : > { %vm3634_vm3 = vcmp.ge.f32.partialorder %v3570_v20, 0.0  ;;  %v3698_v24 = vmul.f32 0.01, %v3570_v20  ;;  %v3262_v27 = vadd.f32 %v7614_v1, %v3261_v26 }
 0x553   : > { %v3763_v6 = vsel %vm3635_vm6, %v3571_v13, %v3699_v18  ;;  %v3573_v29 = vmax.f32 %v3267_v22, 0.0 }
 0x554   : > { %v7623_v21 = vmul.f32 %v7618_v34, %v3763_v6  ;;  %v3762_v33 = vsel %vm3634_vm3, %v3570_v20, %v3698_v24  ;;  %v3572_v5 = vmax.f32 %v3262_v27, 0.0  ;;  %v5449_v31 = vpop.f32.mrb[68].mxu0 }
 0x555   : > { %v7626_v40 = vmul.f32 %v7618_v34, %v3762_v33  ;;  %vm3637_vm4 = vcmp.ge.f32.partialorder %v3573_v29, 0.0  ;;  %v3701_v19 = vmul.f32 0.01, %v3573_v29  ;;  %v3277_v48 = vadd.f32 %v5449_v31, %v7614_v1  ;;  %v3271_v44 = vpop.f32.mrb[69].mxu0 }
 0x556   : > { %vm3636_vm5 = vcmp.ge.f32.partialorder %v3572_v5, 0.0  ;;  %v3700_v46 = vmul.f32 0.01, %v3572_v5  ;;  %v3272_v39 = vadd.f32 %v7614_v1, %v3271_v44 }
 0x557   : > { %v3765_v32 = vsel %vm3637_vm4, %v3573_v29, %v3701_v19  ;;  %v3575_v60 = vmax.f32 %v3277_v48, 0.0  ;;  %v5647_v41 = vpack.c.bf16 %v7623_v21, %v7626_v40 }
 0x558   : > { %v7633_v11 = vmul.f32 %v7618_v34, %v3765_v32  ;;  %v3764_v56 = vsel %vm3636_vm5, %v3572_v5, %v3700_v46  ;;  %v3574_v43 = vmax.f32 %v3272_v39, 0.0  ;;  %v5452_v50 = vpop.f32.mrb[70].mxu0 }
 0x559   : > { %v7636_v51 = vmul.f32 %v7618_v34, %v3764_v56  ;;  %vm3639_vm10 = vcmp.ge.f32.partialorder %v3575_v60, 0.0  ;;  %v3703_v52 = vmul.f32 0.01, %v3575_v60  ;;  %v3287_v36 = vadd.f32 %v5452_v50, %v7614_v1  ;;  %v3281_v55 = vpop.f32.mrb[71].mxu0 }
 0x55a   : > { %vm3638_vm9 = vcmp.ge.f32.partialorder %v3574_v43, 0.0  ;;  %v3702_v25 = vmul.f32 0.01, %v3574_v43  ;;  %v3282_v61 = vadd.f32 %v7614_v1, %v3281_v55 }
 0x55b   : > { %v3767_v57 = vsel %vm3639_vm10, %v3575_v60, %v3703_v52  ;;  %v3577_v58 = vmax.f32 %v3287_v36, 0.0  ;;  %v5651_v59 = vpack.c.bf16 %v7633_v11, %v7636_v51 }
 0x55c   : > { %v7643_v62 = vmul.f32 %v7618_v34, %v3767_v57  ;;  %v3766_v0 = vsel %vm3638_vm9, %v3574_v43, %v3702_v25  ;;  %v3576_v10 = vmax.f32 %v3282_v61, 0.0  ;;  %v5455_v42 = vpop.f32.mrb[72].mxu0 }
 0x55d   : > { %v7646_v38 = vmul.f32 %v7618_v34, %v3766_v0  ;;  %vm3641_vm8 = vcmp.ge.f32.partialorder %v3577_v58, 0.0  ;;  %v3705_v2 = vmul.f32 0.01, %v3577_v58  ;;  %v3297_v8 = vadd.f32 %v5455_v42, %v7614_v1  ;;  %v3291_v16 = vpop.f32.mrb[73].mxu0 }
 0x55e   : > { %vm3640_vm15 = vcmp.ge.f32.partialorder %v3576_v10, 0.0  ;;  %v3704_v35 = vmul.f32 0.01, %v3576_v10  ;;  %v3292_v17 = vadd.f32 %v7614_v1, %v3291_v16 }
 0x55f   : > { %v3769_v63 = vsel %vm3641_vm8, %v3577_v58, %v3705_v2  ;;  %v3579_v53 = vmax.f32 %v3297_v8, 0.0  ;;  %v5655_v14 = vpack.c.bf16 %v7643_v62, %v7646_v38 }
 0x560   : > { %v7653_v23 = vmul.f32 %v7618_v34, %v3769_v63  ;;  %v3768_v37 = vsel %vm3640_vm15, %v3576_v10, %v3704_v35  ;;  %v3578_v28 = vmax.f32 %v3292_v17, 0.0  ;;  %v5458_v7 = vpop.f32.mrb[74].mxu0 }
 0x561   : > { %v7656_v3 = vmul.f32 %v7618_v34, %v3768_v37  ;;  %vm3643_vm0 = vcmp.ge.f32.partialorder %v3579_v53, 0.0  ;;  %v3707_v54 = vmul.f32 0.01, %v3579_v53  ;;  %v3307_v13 = vadd.f32 %v5458_v7, %v7614_v1  ;;  %v3301_v20 = vpop.f32.mrb[75].mxu0 }
 0x562   : > { %vm3642_vm2 = vcmp.ge.f32.partialorder %v3578_v28, 0.0  ;;  %v3706_v30 = vmul.f32 0.01, %v3578_v28  ;;  %v3302_v18 = vadd.f32 %v7614_v1, %v3301_v20 }
 0x563   : > { %v3771_v22 = vsel %vm3643_vm0, %v3579_v53, %v3707_v54  ;;  %v3581_v26 = vmax.f32 %v3307_v13, 0.0  ;;  %v5659_v24 = vpack.c.bf16 %v7653_v23, %v7656_v3 }
 0x564   : > { %v7663_v27 = vmul.f32 %v7618_v34, %v3771_v22  ;;  %v3770_v6 = vsel %vm3642_vm2, %v3578_v28, %v3706_v30  ;;  %v3580_v29 = vmax.f32 %v3302_v18, 0.0  ;;  %v5461_v33 = vpop.f32.mrb[76].mxu0 }
 0x565   : > { %v7666_v5 = vmul.f32 %v7618_v34, %v3770_v6  ;;  %vm3645_vm11 = vcmp.ge.f32.partialorder %v3581_v26, 0.0  ;;  %v3709_v31 = vmul.f32 0.01, %v3581_v26  ;;  %v3317_v19 = vadd.f32 %v5461_v33, %v7614_v1  ;;  %v3311_v48 = vpop.f32.mrb[77].mxu0 }
 0x566   : > { %vm3644_vm13 = vcmp.ge.f32.partialorder %v3580_v29, 0.0  ;;  %v3708_v44 = vmul.f32 0.01, %v3580_v29  ;;  %v3312_v46 = vadd.f32 %v7614_v1, %v3311_v48 }
 0x567   : > { %v3773_v39 = vsel %vm3645_vm11, %v3581_v26, %v3709_v31  ;;  %v3583_v32 = vmax.f32 %v3317_v19, 0.0  ;;  %v5663_v60 = vpack.c.bf16 %v7663_v27, %v7666_v5 }
 0x568   : > { %v7673_v56 = vmul.f32 %v7618_v34, %v3773_v39  ;;  %v3772_v43 = vsel %vm3644_vm13, %v3580_v29, %v3708_v44  ;;  %v3582_v50 = vmax.f32 %v3312_v46, 0.0  ;;  %v5464_v52 = vpop.f32.mrb[78].mxu0 }
 0x569   : > { %v7676_v36 = vmul.f32 %v7618_v34, %v3772_v43  ;;  %vm3647_vm12 = vcmp.ge.f32.partialorder %v3583_v32, 0.0  ;;  %v3711_v55 = vmul.f32 0.01, %v3583_v32  ;;  %v3327_v25 = vadd.f32 %v5464_v52, %v7614_v1  ;;  %v3321_v61 = vpop.f32.mrb[79].mxu0 }
 0x56a   : > { %vm3646_vm7 = vcmp.ge.f32.partialorder %v3582_v50, 0.0  ;;  %v3710_v57 = vmul.f32 0.01, %v3582_v50  ;;  %v3322_v58 = vadd.f32 %v7614_v1, %v3321_v61 }
 0x56b   : > { %v3775_v0 = vsel %vm3647_vm12, %v3583_v32, %v3711_v55  ;;  %v3585_v10 = vmax.f32 %v3327_v25, 0.0  ;;  %v5667_v42 = vpack.c.bf16 %v7673_v56, %v7676_v36 }
 0x56c   : > { %v7683_v2 = vmul.f32 %v7618_v34, %v3775_v0  ;;  %v3774_v8 = vsel %vm3646_vm7, %v3582_v50, %v3710_v57  ;;  %v3584_v16 = vmax.f32 %v3322_v58, 0.0  ;;  %v5467_v35 = vpop.f32.mrb[80].mxu0 }
 0x56d   : > { %v7686_v17 = vmul.f32 %v7618_v34, %v3774_v8  ;;  %vm3649_vm1 = vcmp.ge.f32.partialorder %v3585_v10, 0.0  ;;  %v3713_v63 = vmul.f32 0.01, %v3585_v10  ;;  %v3337_v53 = vadd.f32 %v5467_v35, %v7614_v1  ;;  %v3331_v37 = vpop.f32.mrb[81].mxu0 }
 0x56e   : > { %vm3648_vm14 = vcmp.ge.f32.partialorder %v3584_v16, 0.0  ;;  %v3712_v28 = vmul.f32 0.01, %v3584_v16  ;;  %v3332_v7 = vadd.f32 %v7614_v1, %v3331_v37 }
 0x56f   : > { %v3777_v54 = vsel %vm3649_vm1, %v3585_v10, %v3713_v63  ;;  %v3587_v13 = vmax.f32 %v3337_v53, 0.0  ;;  %v5671_v20 = vpack.c.bf16 %v7683_v2, %v7686_v17 }
 0x570   : > { %v7693_v30 = vmul.f32 %v7618_v34, %v3777_v54  ;;  %v3776_v18 = vsel %vm3648_vm14, %v3584_v16, %v3712_v28  ;;  %v3586_v22 = vmax.f32 %v3332_v7, 0.0  ;;  %v5470_v26 = vpop.f32.mrb[82].mxu0 }
 0x571   : > { %v7696_v6 = vmul.f32 %v7618_v34, %v3776_v18  ;;  %vm3651_vm6 = vcmp.ge.f32.partialorder %v3587_v13, 0.0  ;;  %v3715_v29 = vmul.f32 0.01, %v3587_v13  ;;  %v3347_v33 = vadd.f32 %v5470_v26, %v7614_v1  ;;  %v3341_v31 = vpop.f32.mrb[83].mxu0 }
 0x572   : > { %vm3650_vm3 = vcmp.ge.f32.partialorder %v3586_v22, 0.0  ;;  %v3714_v19 = vmul.f32 0.01, %v3586_v22  ;;  %v3342_v48 = vadd.f32 %v7614_v1, %v3341_v31 }
 0x573   : > { %v3779_v44 = vsel %vm3651_vm6, %v3587_v13, %v3715_v29  ;;  %v3589_v46 = vmax.f32 %v3347_v33, 0.0  ;;  %v5675_v39 = vpack.c.bf16 %v7693_v30, %v7696_v6 }
 0x574   : > { %v3778_v32 = vsel %vm3650_vm3, %v3586_v22, %v3714_v19  ;;  %v3588_v43 = vmax.f32 %v3342_v48, 0.0  ;;  %v5473_v50 = vpop.f32.mrb[84].mxu0  ;;  %v3845_v52 = vmul.f32 %v7618_v34, %v3779_v44 }
 0x575   : > { %vm3653_vm4 = vcmp.ge.f32.partialorder %v3589_v46, 0.0  ;;  %v3717_v55 = vmul.f32 0.01, %v3589_v46  ;;  %v3357_v25 = vadd.f32 %v5473_v50, %v7614_v1  ;;  %v3351_v61 = vpop.f32.mrb[85].mxu0  ;;  %v3844_v57 = vmul.f32 %v7618_v34, %v3778_v32 }
 0x576   : > { %vm3652_vm5 = vcmp.ge.f32.partialorder %v3588_v43, 0.0  ;;  %v3716_v58 = vmul.f32 0.01, %v3588_v43  ;;  %v3352_v0 = vadd.f32 %v7614_v1, %v3351_v61 }
 0x577   : > { %v3781_v10 = vsel %vm3653_vm4, %v3589_v46, %v3717_v55  ;;  %v3591_v8 = vmax.f32 %v3357_v25, 0.0  ;;  %v5645_v16 = vpack.c.bf16 %v3845_v52, %v3844_v57 }
 0x578   : > { %v3780_v35 = vsel %vm3652_vm5, %v3588_v43, %v3716_v58  ;;  %v3590_v63 = vmax.f32 %v3352_v0, 0.0  ;;  %v5476_v53 = vpop.f32.mrb[86].mxu0  ;;  %v3847_v37 = vmul.f32 %v7618_v34, %v3781_v10 }
 0x579   : > { %vm3655_vm10 = vcmp.ge.f32.partialorder %v3591_v8, 0.0  ;;  %v3719_v28 = vmul.f32 0.01, %v3591_v8  ;;  %v3367_v7 = vadd.f32 %v5476_v53, %v7614_v1  ;;  %v3361_v54 = vpop.f32.mrb[87].mxu0  ;;  %5646 = vmatprep.subr.bf16.mxu1 %v5645_v16  ;;  %v3846_v13 = vmul.f32 %v7618_v34, %v3780_v35 }
 0x57a   : > { %vm3654_vm9 = vcmp.ge.f32.partialorder %v3590_v63, 0.0  ;;  %v3718_v18 = vmul.f32 0.01, %v3590_v63  ;;  %v3362_v22 = vadd.f32 %v7614_v1, %v3361_v54  ;;  %5648 = vmatpush3.bf16.msra.mxu1 %v5647_v41 }
 0x57b   : > { %v3783_v26 = vsel %vm3655_vm10, %v3591_v8, %v3719_v28  ;;  %v3593_v29 = vmax.f32 %v3367_v7, 0.0  ;;  %v5649_v33 = vpack.c.bf16 %v3847_v37, %v3846_v13 }
 0x57c   : > { %v3782_v31 = vsel %vm3654_vm9, %v3590_v63, %v3718_v18  ;;  %v3592_v19 = vmax.f32 %v3362_v22, 0.0  ;;  %v5479_v48 = vpop.f32.mrb[88].mxu0  ;;  %v3849_v44 = vmul.f32 %v7618_v34, %v3783_v26  ;;  %vm8044_vm9 = vcmp.eq.s32.totalorder %v6678_v4, %v6687_v9 }
 0x57d   : > { %vm3657_vm8 = vcmp.ge.f32.partialorder %v3593_v29, 0.0  ;;  %v3721_v46 = vmul.f32 0.01, %v3593_v29  ;;  %v3377_v32 = vadd.f32 %v5479_v48, %v7614_v1  ;;  %v3371_v43 = vpop.f32.mrb[89].mxu0  ;;  %5650 = vmatprep.subr.bf16.mxu1 %v5649_v33  ;;  %v3848_v50 = vmul.f32 %v7618_v34, %v3782_v31 }
 0x57e   : > { %vm3656_vm15 = vcmp.ge.f32.partialorder %v3592_v19, 0.0  ;;  %v3720_v52 = vmul.f32 0.01, %v3592_v19  ;;  %v3372_v21 = vadd.f32 %v7614_v1, %v3371_v43  ;;  %5652 = vmatpush3.bf16.msra.mxu1 %v5651_v59 }
 0x57f   : > { %v3785_v40 = vsel %vm3657_vm8, %v3593_v29, %v3721_v46  ;;  %v3595_v41 = vmax.f32 %v3377_v32, 0.0  ;;  %v5653_v55 = vpack.c.bf16 %v3849_v44, %v3848_v50 }
 0x580   : > { %v3784_v25 = vsel %vm3656_vm15, %v3592_v19, %v3720_v52  ;;  %v3594_v61 = vmax.f32 %v3372_v21, 0.0  ;;  %v5482_v57 = vpop.f32.mrb[90].mxu0  ;;  %v3851_v58 = vmul.f32 %v7618_v34, %v3785_v40  ;;  %vm8045_vm15 = vcmp.eq.s32.totalorder %v6708_v15, %v6695_v12 }
 0x581   : > { %vm3659_vm0 = vcmp.ge.f32.partialorder %v3595_v41, 0.0  ;;  %v3723_v0 = vmul.f32 0.01, %v3595_v41  ;;  %v3387_v10 = vadd.f32 %v5482_v57, %v7614_v1  ;;  %v3381_v8 = vpop.f32.mrb[91].mxu0  ;;  %5654 = vmatprep.subr.bf16.mxu1 %v5653_v55  ;;  %v3850_v16 = vmul.f32 %v7618_v34, %v3784_v25 }
 0x582   : > { %vm3658_vm2 = vcmp.ge.f32.partialorder %v3594_v61, 0.0  ;;  %v3722_v35 = vmul.f32 0.01, %v3594_v61  ;;  %v3382_v11 = vadd.f32 %v7614_v1, %v3381_v8  ;;  %5656 = vmatpush3.bf16.msra.mxu1 %v5655_v14 }
 0x583   : > { %v3787_v51 = vsel %vm3659_vm0, %v3595_v41, %v3723_v0  ;;  %v3597_v59 = vmax.f32 %v3387_v10, 0.0  ;;  %v5657_v63 = vpack.c.bf16 %v3851_v58, %v3850_v16 }
 0x584   : > { %v3786_v53 = vsel %vm3658_vm2, %v3594_v61, %v3722_v35  ;;  %v3596_v37 = vmax.f32 %v3382_v11, 0.0  ;;  %v5485_v28 = vpop.f32.mrb[92].mxu0  ;;  %v3853_v7 = vmul.f32 %v7618_v34, %v3787_v51  ;;  %vm8046_vm2 = vcmp.eq.s32.totalorder %v6708_v15, %v6687_v9 }
 0x585   : > { %vm3661_vm11 = vcmp.ge.f32.partialorder %v3597_v59, 0.0  ;;  %v3725_v54 = vmul.f32 0.01, %v3597_v59  ;;  %v3397_v13 = vadd.f32 %v5485_v28, %v7614_v1  ;;  %v3391_v18 = vpop.f32.mrb[93].mxu0  ;;  %5658 = vmatprep.subr.bf16.mxu1 %v5657_v63  ;;  %v3852_v22 = vmul.f32 %v7618_v34, %v3786_v53 }
 0x586   : > { %vm3660_vm13 = vcmp.ge.f32.partialorder %v3596_v37, 0.0  ;;  %v3724_v26 = vmul.f32 0.01, %v3596_v37  ;;  %v3392_v62 = vadd.f32 %v7614_v1, %v3391_v18  ;;  %5660 = vmatpush3.bf16.msra.mxu1 %v5659_v24 }
 0x587   : > { %v3789_v38 = vsel %vm3661_vm11, %v3597_v59, %v3725_v54  ;;  %v3599_v14 = vmax.f32 %v3397_v13, 0.0  ;;  %v5661_v29 = vpack.c.bf16 %v3853_v7, %v3852_v22 }
 0x588   : > { %v3788_v33 = vsel %vm3660_vm13, %v3596_v37, %v3724_v26  ;;  %v3598_v31 = vmax.f32 %v3392_v62, 0.0  ;;  %v5488_v19 = vpop.f32.mrb[94].mxu0  ;;  %v3855_v48 = vmul.f32 %v7618_v34, %v3789_v38  ;;  %vm8047_vm13 = vcmp.eq.s32.totalorder %v6678_v4, %v6851_v49 }
 0x589   : > { %vm3663_vm12 = vcmp.ge.f32.partialorder %v3599_v14, 0.0  ;;  %v3727_v44 = vmul.f32 0.01, %v3599_v14  ;;  %v3407_v46 = vadd.f32 %v5488_v19, %v7614_v1  ;;  %v3401_v32 = vpop.f32.mrb[95].mxu0  ;;  %5662 = vmatprep.subr.bf16.mxu1 %v5661_v29  ;;  %v3854_v43 = vmul.f32 %v7618_v34, %v3788_v33 }
 0x58a   : > { %vm3662_vm7 = vcmp.ge.f32.partialorder %v3598_v31, 0.0  ;;  %v3726_v50 = vmul.f32 0.01, %v3598_v31  ;;  %v3402_v23 = vadd.f32 %v7614_v1, %v3401_v32  ;;  %5664 = vmatpush3.bf16.msra.mxu1 %v5663_v60 }
 0x58b   : > { %v3791_v3 = vsel %vm3663_vm12, %v3599_v14, %v3727_v44  ;;  %v3601_v24 = vmax.f32 %v3407_v46, 0.0  ;;  %v5665_v52 = vpack.c.bf16 %v3855_v48, %v3854_v43 }
 0x58c   : > { %v3790_v21 = vsel %vm3662_vm7, %v3598_v31, %v3726_v50  ;;  %v3600_v40 = vmax.f32 %v3402_v23, 0.0  ;;  %v5491_v41 = vpop.f32.mrb[96].mxu0  ;;  %v3857_v55 = vmul.f32 %v7618_v34, %v3791_v3 }
 0x58d   : > { %vm3665_vm1 = vcmp.ge.f32.partialorder %v3601_v24, 0.0  ;;  %v3729_v25 = vmul.f32 0.01, %v3601_v24  ;;  %v3417_v61 = vadd.f32 %v5491_v41, %v7614_v1  ;;  %v3411_v57 = vpop.f32.mrb[97].mxu0  ;;  %5666 = vmatprep.subr.bf16.mxu1 %v5665_v52  ;;  %v3856_v58 = vmul.f32 %v7618_v34, %v3790_v21 }
 0x58e   : > { %vm3664_vm14 = vcmp.ge.f32.partialorder %v3600_v40, 0.0  ;;  %v3728_v0 = vmul.f32 0.01, %v3600_v40  ;;  %v3412_v27 = vadd.f32 %v7614_v1, %v3411_v57  ;;  %5668 = vmatpush3.bf16.msra.mxu1 %v5667_v42 }
 0x58f   : > { %v3793_v5 = vsel %vm3665_vm1, %v3601_v24, %v3729_v25  ;;  %v3603_v60 = vmax.f32 %v3417_v61, 0.0  ;;  %v5669_v10 = vpack.c.bf16 %v3857_v55, %v3856_v58 }
 0x590   : > { %v3792_v8 = vsel %vm3664_vm14, %v3600_v40, %v3728_v0  ;;  %v3602_v16 = vmax.f32 %v3412_v27, 0.0  ;;  %v5494_v35 = vpop.f32.mrb[98].mxu0  ;;  %v3859_v11 = vmul.f32 %v7618_v34, %v3793_v5 }
 0x591   : > { %vm3667_vm6 = vcmp.ge.f32.partialorder %v3603_v60, 0.0  ;;  %v3731_v51 = vmul.f32 0.01, %v3603_v60  ;;  %v3427_v59 = vadd.f32 %v5494_v35, %v7614_v1  ;;  %v3421_v63 = vpop.f32.mrb[99].mxu0  ;;  %5670 = vmatprep.subr.bf16.mxu1 %v5669_v10  ;;  %v3858_v53 = vmul.f32 %v7618_v34, %v3792_v8 }
 0x592   : > { %vm3666_vm3 = vcmp.ge.f32.partialorder %v3602_v16, 0.0  ;;  %v3730_v37 = vmul.f32 0.01, %v3602_v16  ;;  %v3422_v56 = vadd.f32 %v7614_v1, %v3421_v63  ;;  %5672 = vmatpush3.bf16.msra.mxu1 %v5671_v20 }
 0x593   : > { %v3795_v36 = vsel %vm3667_vm6, %v3603_v60, %v3731_v51  ;;  %v3605_v42 = vmax.f32 %v3427_v59, 0.0  ;;  %v5673_v28 = vpack.c.bf16 %v3859_v11, %v3858_v53 }
 0x594   : > { %v7756_v7 = vmul.f32 %v7618_v34, %v3795_v36  ;;  %v3794_v54 = vsel %vm3666_vm3, %v3602_v16, %v3730_v37  ;;  %v3604_v13 = vmax.f32 %v3422_v56, 0.0  ;;  %v5497_v18 = vpop.f32.mrb[100].mxu0 }
 0x595   : > { %v7759_v22 = vmul.f32 %v7618_v34, %v3794_v54  ;;  %vm3669_vm4 = vcmp.ge.f32.partialorder %v3605_v42, 0.0  ;;  %v3733_v26 = vmul.f32 0.01, %v3605_v42  ;;  %v3437_v62 = vadd.f32 %v5497_v18, %v7614_v1  ;;  %v3431_v38 = vpop.f32.mrb[101].mxu0  ;;  %5674 = vmatprep.subr.bf16.mxu1 %v5673_v28 }
 0x596   : > { %vm3668_vm5 = vcmp.ge.f32.partialorder %v3604_v13, 0.0  ;;  %v3732_v2 = vmul.f32 0.01, %v3604_v13  ;;  %v3432_v17 = vadd.f32 %v7614_v1, %v3431_v38  ;;  %5676 = vmatpush3.bf16.msra.mxu1 %v5675_v39 }
 0x597   : > { %v3797_v20 = vsel %vm3669_vm4, %v3605_v42, %v3733_v26  ;;  %v3607_v14 = vmax.f32 %v3437_v62, 0.0  ;;  %v5679_v29 = vpack.c.bf16 %v7756_v7, %v7759_v22 }
 0x598   : > { %v7769_v33 = vmul.f32 %v7618_v34, %v3797_v20  ;;  %v3796_v31 = vsel %vm3668_vm5, %v3604_v13, %v3732_v2  ;;  %v3606_v19 = vmax.f32 %v3432_v17, 0.0  ;;  %v5500_v48 = vpop.f32.mrb[102].mxu0 }
 0x599   : > { %v7772_v44 = vmul.f32 %v7618_v34, %v3796_v31  ;;  %vm3671_vm10 = vcmp.ge.f32.partialorder %v3607_v14, 0.0  ;;  %v3735_v46 = vmul.f32 0.01, %v3607_v14  ;;  %v3447_v32 = vadd.f32 %v5500_v48, %v7614_v1  ;;  %v3441_v30 = vpop.f32.mrb[103].mxu0  ;;  %4481 = vmatmul.mubr.msk.f32.vlgmr.msra.gmra.mrb[150].mxu1 %vm8044_vm9, %v6339_v45 }
 0x59a   : > { %vm3670_vm8 = vcmp.ge.f32.partialorder %v3606_v19, 0.0  ;;  %v3734_v6 = vmul.f32 0.01, %v3606_v19  ;;  %v3442_v39 = vadd.f32 %v7614_v1, %v3441_v30  ;;  %4482 = vmatprep.mubr.msk.f32.mxu1 %vm8045_vm15, %v6339_v45 }
 0x59b   : > { %v3799_v43 = vsel %vm3671_vm10, %v3607_v14, %v3735_v46  ;;  %v3609_v50 = vmax.f32 %v3447_v32, 0.0  ;;  %v5683_v23 = vpack.c.bf16 %v7769_v33, %v7772_v44 }
 0x59c   : > { %v7787_v3 = vmul.f32 %v7618_v34, %v3799_v43  ;;  %v3798_v24 = vsel %vm3670_vm8, %v3606_v19, %v3734_v6  ;;  %v3608_v52 = vmax.f32 %v3442_v39, 0.0  ;;  %v5503_v21 = vpop.f32.mrb[104].mxu0 }
 0x59d   : > { %v7790_v40 = vmul.f32 %v7618_v34, %v3798_v24  ;;  %vm3673_vm0 = vcmp.ge.f32.partialorder %v3609_v50, 0.0  ;;  %v3737_v41 = vmul.f32 0.01, %v3609_v50  ;;  %v3457_v55 = vadd.f32 %v5503_v21, %v7614_v1  ;;  %v3451_v12 = vpop.f32.mrb[105].mxu0  ;;  %4483 = vmatmul.mubr.msk.f32.gmra.mrb[152].mxu1 %vm8046_vm2, %v6339_v45 }
 0x59e   : > { %vm3672_vm11 = vcmp.ge.f32.partialorder %v3608_v52, 0.0  ;;  %v3736_v25 = vmul.f32 0.01, %v3608_v52  ;;  %v3452_v61 = vadd.f32 %v7614_v1, %v3451_v12  ;;  %4484 = vmatprep.mubr.msk.f32.mxu1 %vm8047_vm13, %v6339_v45 }
 0x59f   : > { %v3801_v57 = vsel %vm3673_vm0, %v3609_v50, %v3737_v41  ;;  %v3611_v58 = vmax.f32 %v3457_v55, 0.0  ;;  %v5687_v0 = vpack.c.bf16 %v7787_v3, %v7790_v40 }
 0x5a0   : > { %v7805_v27 = vmul.f32 %v7618_v34, %v3801_v57  ;;  %v3800_v5 = vsel %vm3672_vm11, %v3608_v52, %v3736_v25  ;;  %v3610_v9 = vmax.f32 %v3452_v61, 0.0 }
 0x5a1   : > { %v7808_v60 = vmul.f32 %v7618_v34, %v3800_v5  ;;  %vm3675_vm12 = vcmp.ge.f32.partialorder %v3611_v58, 0.0  ;;  %v3739_v10 = vmul.f32 0.01, %v3611_v58 }
 0x5a2   : > { %vm3674_vm7 = vcmp.ge.f32.partialorder %v3610_v9, 0.0  ;;  %v3738_v8 = vmul.f32 0.01, %v3610_v9  ;;  %v5506_v16 = vpop.f32.mrb[106].mxu0 }
 0x5a3   : > { %v3803_v35 = vsel %vm3675_vm12, %v3611_v58, %v3739_v10  ;;  %v3467_v11 = vadd.f32 %v5506_v16, %v7614_v1  ;;  %v3461_v51 = vpop.f32.mrb[107].mxu0  ;;  %v5691_v59 = vpack.c.bf16 %v7805_v27, %v7808_v60 }
 0x5a4   : > { %v7814_v63 = vmul.f32 %v7618_v34, %v3803_v35  ;;  %v3802_v53 = vsel %vm3674_vm7, %v3610_v9, %v3738_v8  ;;  %v3462_v37 = vadd.f32 %v7614_v1, %v3461_v51 }
 0x5a5   : > { %v7818_v56 = vmul.f32 %v7618_v34, %v3802_v53  ;;  %v3613_v36 = vmax.f32 %v3467_v11, 0.0 }
 0x5a6   : > { %v3612_v42 = vmax.f32 %v3462_v37, 0.0  ;;  %v5509_v28 = vpop.f32.mrb[108].mxu0 }
 0x5a7   : > { %vm3677_vm1 = vcmp.ge.f32.partialorder %v3613_v36, 0.0  ;;  %v3741_v54 = vmul.f32 0.01, %v3613_v36  ;;  %v3477_v13 = vadd.f32 %v5509_v28, %v7614_v1  ;;  %v3471_v18 = vpop.f32.mrb[109].mxu0  ;;  %v5695_v26 = vpack.c.bf16 %v7814_v63, %v7818_v56 }
 0x5a8   : > { %vm3676_vm14 = vcmp.ge.f32.partialorder %v3612_v42, 0.0  ;;  %v3740_v62 = vmul.f32 0.01, %v3612_v42  ;;  %v3472_v38 = vadd.f32 %v7614_v1, %v3471_v18 }
 0x5a9   : > { %v3805_v2 = vsel %vm3677_vm1, %v3613_v36, %v3741_v54  ;;  %v3615_v17 = vmax.f32 %v3477_v13, 0.0 }
 0x5aa   : > { %v7825_v20 = vmul.f32 %v7618_v34, %v3805_v2  ;;  %v3804_v14 = vsel %vm3676_vm14, %v3612_v42, %v3740_v62  ;;  %v3614_v31 = vmax.f32 %v3472_v38, 0.0  ;;  %v5512_v19 = vpop.f32.mrb[110].mxu0 }
 0x5ab   : > { %v7828_v48 = vmul.f32 %v7618_v34, %v3804_v14  ;;  %vm3679_vm6 = vcmp.ge.f32.partialorder %v3615_v17, 0.0  ;;  %v3743_v46 = vmul.f32 0.01, %v3615_v17  ;;  %v3487_v32 = vadd.f32 %v5512_v19, %v7614_v1  ;;  %v3481_v30 = vpop.f32.mrb[111].mxu0 }
 0x5ac   : > { %vm3678_vm3 = vcmp.ge.f32.partialorder %v3614_v31, 0.0  ;;  %v3742_v6 = vmul.f32 0.01, %v3614_v31  ;;  %v3482_v39 = vadd.f32 %v7614_v1, %v3481_v30 }
 0x5ad   : > { %v3807_v43 = vsel %vm3679_vm6, %v3615_v17, %v3743_v46  ;;  %v3617_v50 = vmax.f32 %v3487_v32, 0.0  ;;  %v5699_v24 = vpack.c.bf16 %v7825_v20, %v7828_v48 }
 0x5ae   : > { %v7835_v52 = vmul.f32 %v7618_v34, %v3807_v43  ;;  %v3806_v21 = vsel %vm3678_vm3, %v3614_v31, %v3742_v6  ;;  %v3616_v41 = vmax.f32 %v3482_v39, 0.0  ;;  %v5515_v55 = vpop.f32.mrb[112].mxu0 }
 0x5af   : > { %v7838_v12 = vmul.f32 %v7618_v34, %v3806_v21  ;;  %vm3681_vm4 = vcmp.ge.f32.partialorder %v3617_v50, 0.0  ;;  %v3745_v25 = vmul.f32 0.01, %v3617_v50  ;;  %v3497_v61 = vadd.f32 %v5515_v55, %v7614_v1  ;;  %v3491_v57 = vpop.f32.mrb[113].mxu0 }
 0x5b0   : > { %vm3680_vm5 = vcmp.ge.f32.partialorder %v3616_v41, 0.0  ;;  %v3744_v58 = vmul.f32 0.01, %v3616_v41  ;;  %v3492_v5 = vadd.f32 %v7614_v1, %v3491_v57 }
 0x5b1   : > { %v3809_v9 = vsel %vm3681_vm4, %v3617_v50, %v3745_v25  ;;  %v3619_v10 = vmax.f32 %v3497_v61, 0.0  ;;  %v5703_v8 = vpack.c.bf16 %v7835_v52, %v7838_v12 }
 0x5b2   : > { %v7845_v16 = vmul.f32 %v7618_v34, %v3809_v9  ;;  %v3808_v35 = vsel %vm3680_vm5, %v3616_v41, %v3744_v58  ;;  %v3618_v11 = vmax.f32 %v3492_v5, 0.0  ;;  %v5518_v51 = vpop.f32.mrb[114].mxu0 }
 0x5b3   : > { %v7848_v53 = vmul.f32 %v7618_v34, %v3808_v35  ;;  %vm3683_vm10 = vcmp.ge.f32.partialorder %v3619_v10, 0.0  ;;  %v3747_v37 = vmul.f32 0.01, %v3619_v10  ;;  %v3507_v36 = vadd.f32 %v5518_v51, %v7614_v1  ;;  %v3501_v42 = vpop.f32.mrb[115].mxu0 }
 0x5b4   : > { %vm3682_vm9 = vcmp.ge.f32.partialorder %v3618_v11, 0.0  ;;  %v3746_v28 = vmul.f32 0.01, %v3618_v11  ;;  %v3502_v54 = vadd.f32 %v7614_v1, %v3501_v42 }
 0x5b5   : > { %v3811_v13 = vsel %vm3683_vm10, %v3619_v10, %v3747_v37  ;;  %v3621_v18 = vmax.f32 %v3507_v36, 0.0  ;;  %v5707_v62 = vpack.c.bf16 %v7845_v16, %v7848_v53  ;;  %vm8048_vm10 = vcmp.eq.s32.totalorder %v6678_v4, %v6845_v47 }
 0x5b6   : > { %v3810_v38 = vsel %vm3682_vm9, %v3618_v11, %v3746_v28  ;;  %v3620_v2 = vmax.f32 %v3502_v54, 0.0  ;;  %v5521_v17 = vpop.f32.mrb[116].mxu0  ;;  %v3877_v14 = vmul.f32 %v7618_v34, %v3811_v13  ;;  %vm8049_vm9 = vcmp.eq.s32.totalorder %v6708_v15, %v6851_v49 }
 0x5b7   : > { %vm3685_vm8 = vcmp.ge.f32.partialorder %v3621_v18, 0.0  ;;  %v3749_v31 = vmul.f32 0.01, %v3621_v18  ;;  %v3517_v19 = vadd.f32 %v5521_v17, %v7614_v1  ;;  %v3511_v46 = vpop.f32.mrb[117].mxu0  ;;  %v3876_v32 = vmul.f32 %v7618_v34, %v3810_v38 }
 0x5b8   : > { %vm3684_vm15 = vcmp.ge.f32.partialorder %v3620_v2, 0.0  ;;  %v3748_v30 = vmul.f32 0.01, %v3620_v2  ;;  %v3512_v6 = vadd.f32 %v7614_v1, %v3511_v46 }
 0x5b9   : > { %v3813_v39 = vsel %vm3685_vm8, %v3621_v18, %v3749_v31  ;;  %v3623_v43 = vmax.f32 %v3517_v19, 0.0  ;;  %v5677_v50 = vpack.c.bf16 %v3877_v14, %v3876_v32  ;;  %vm8050_vm8 = vcmp.eq.s32.totalorder %v6708_v15, %v6845_v47 }
 0x5ba   : > { %v3812_v21 = vsel %vm3684_vm15, %v3620_v2, %v3748_v30  ;;  %v3622_v41 = vmax.f32 %v3512_v6, 0.0  ;;  %v5524_v55 = vpop.f32.mrb[118].mxu0  ;;  %v3879_v25 = vmul.f32 %v7618_v34, %v3813_v39 }
 0x5bb   : > { %vm3687_vm0 = vcmp.ge.f32.partialorder %v3623_v43, 0.0  ;;  %v3751_v61 = vmul.f32 0.01, %v3623_v43  ;;  %v3527_v57 = vadd.f32 %v5524_v55, %v7614_v1  ;;  %v3521_v58 = vpop.f32.mrb[119].mxu0  ;;  %5678 = vmatprep.subr.bf16.mxu1 %v5677_v50  ;;  %v3878_v5 = vmul.f32 %v7618_v34, %v3812_v21 }
 0x5bc   : > { %vm3686_vm2 = vcmp.ge.f32.partialorder %v3622_v41, 0.0  ;;  %v3750_v9 = vmul.f32 0.01, %v3622_v41  ;;  %v3522_v10 = vadd.f32 %v7614_v1, %v3521_v58  ;;  %5680 = vmatpush3.bf16.msra.mxu1 %v5679_v29 }
 0x5bd   : > { %v3815_v35 = vsel %vm3687_vm0, %v3623_v43, %v3751_v61  ;;  %v3625_v11 = vmax.f32 %v3527_v57, 0.0  ;;  %v5681_v51 = vpack.c.bf16 %v3879_v25, %v3878_v5 }
 0x5be   : > { %v3814_v37 = vsel %vm3686_vm2, %v3622_v41, %v3750_v9  ;;  %v3624_v36 = vmax.f32 %v3522_v10, 0.0  ;;  %v5527_v42 = vpop.f32.mrb[120].mxu0  ;;  %v3881_v28 = vmul.f32 %v7618_v34, %v3815_v35 }
 0x5bf   : > { %vm3689_vm11 = vcmp.ge.f32.partialorder %v3625_v11, 0.0  ;;  %v3753_v54 = vmul.f32 0.01, %v3625_v11  ;;  %v3537_v13 = vadd.f32 %v5527_v42, %v7614_v1  ;;  %v3531_v18 = vpop.f32.mrb[121].mxu0  ;;  %5682 = vmatprep.subr.bf16.mxu1 %v5681_v51  ;;  %v3880_v38 = vmul.f32 %v7618_v34, %v3814_v37 }
 0x5c0   : > { %vm3688_vm13 = vcmp.ge.f32.partialorder %v3624_v36, 0.0  ;;  %v3752_v2 = vmul.f32 0.01, %v3624_v36  ;;  %v3532_v7 = vadd.f32 %v7614_v1, %v3531_v18  ;;  %5684 = vmatpush3.bf16.msra.mxu1 %v5683_v23 }
 0x5c1   : > { %v3817_v22 = vsel %vm3689_vm11, %v3625_v11, %v3753_v54  ;;  %v3627_v29 = vmax.f32 %v3537_v13, 0.0  ;;  %v5685_v17 = vpack.c.bf16 %v3881_v28, %v3880_v38 }
 0x5c2   : > { %v3816_v14 = vsel %vm3688_vm13, %v3624_v36, %v3752_v2  ;;  %v3626_v31 = vmax.f32 %v3532_v7, 0.0  ;;  %v5530_v19 = vpop.f32.mrb[122].mxu0  ;;  %v3883_v46 = vmul.f32 %v7618_v34, %v3817_v22 }
 0x5c3   : > { %vm3691_vm12 = vcmp.ge.f32.partialorder %v3627_v29, 0.0  ;;  %v3755_v32 = vmul.f32 0.01, %v3627_v29  ;;  %v3547_v30 = vadd.f32 %v5530_v19, %v7614_v1  ;;  %v3541_v6 = vpop.f32.mrb[123].mxu0  ;;  %5686 = vmatprep.subr.bf16.mxu1 %v5685_v17  ;;  %v3882_v39 = vmul.f32 %v7618_v34, %v3816_v14 }
 0x5c4   : > { %vm3690_vm7 = vcmp.ge.f32.partialorder %v3626_v31, 0.0  ;;  %v3754_v43 = vmul.f32 0.01, %v3626_v31  ;;  %v3542_v33 = vadd.f32 %v7614_v1, %v3541_v6  ;;  %5688 = vmatpush3.bf16.msra.mxu1 %v5687_v0 }
 0x5c5   : > { %v3819_v44 = vsel %vm3691_vm12, %v3627_v29, %v3755_v32  ;;  %v3629_v23 = vmax.f32 %v3547_v30, 0.0  ;;  %v5689_v50 = vpack.c.bf16 %v3883_v46, %v3882_v39 }
 0x5c6   : > { %v3818_v21 = vsel %vm3690_vm7, %v3626_v31, %v3754_v43  ;;  %v3628_v41 = vmax.f32 %v3542_v33, 0.0  ;;  %v5533_v55 = vpop.f32.mrb[124].mxu0  ;;  %v3885_v25 = vmul.f32 %v7618_v34, %v3819_v44 }
 0x5c7   : > { %vm3693_vm1 = vcmp.ge.f32.partialorder %v3629_v23, 0.0  ;;  %v3757_v61 = vmul.f32 0.01, %v3629_v23  ;;  %v3557_v57 = vadd.f32 %v5533_v55, %v7614_v1  ;;  %v3551_v58 = vpop.f32.mrb[125].mxu0  ;;  %5690 = vmatprep.subr.bf16.mxu1 %v5689_v50  ;;  %v3884_v5 = vmul.f32 %v7618_v34, %v3818_v21 }
 0x5c8   : > { %vm3692_vm14 = vcmp.ge.f32.partialorder %v3628_v41, 0.0  ;;  %v3756_v9 = vmul.f32 0.01, %v3628_v41  ;;  %v3552_v3 = vadd.f32 %v7614_v1, %v3551_v58  ;;  %5692 = vmatpush3.bf16.msra.mxu1 %v5691_v59 }
 0x5c9   : > { %v3821_v40 = vsel %vm3693_vm1, %v3629_v23, %v3757_v61  ;;  %v3631_v0 = vmax.f32 %v3557_v57, 0.0  ;;  %v5693_v10 = vpack.c.bf16 %v3885_v25, %v3884_v5 }
 0x5ca   : > { %v3820_v35 = vsel %vm3692_vm14, %v3628_v41, %v3756_v9  ;;  %v3630_v11 = vmax.f32 %v3552_v3, 0.0  ;;  %v5536_v51 = vpop.f32.mrb[126].mxu0  ;;  %v3887_v37 = vmul.f32 %v7618_v34, %v3821_v40 }
 0x5cb   : > { %vm3695_vm6 = vcmp.ge.f32.partialorder %v3631_v0, 0.0  ;;  %v3759_v36 = vmul.f32 0.01, %v3631_v0  ;;  %v3567_v42 = vadd.f32 %v5536_v51, %v7614_v1  ;;  %v3561_v28 = vpop.f32.mrb[127].mxu0  ;;  %5694 = vmatprep.subr.bf16.mxu1 %v5693_v10  ;;  %v3886_v54 = vmul.f32 %v7618_v34, %v3820_v35 }
 0x5cc   : > { %vm3694_vm3 = vcmp.ge.f32.partialorder %v3630_v11, 0.0  ;;  %v3758_v13 = vmul.f32 0.01, %v3630_v11  ;;  %v3562_v27 = vadd.f32 %v7614_v1, %v3561_v28  ;;  %5696 = vmatpush3.bf16.msra.mxu1 %v5695_v26 }
 0x5cd   : > { %v3823_v60 = vsel %vm3695_vm6, %v3631_v0, %v3759_v36  ;;  %v3633_v59 = vmax.f32 %v3567_v42, 0.0  ;;  %v5697_v18 = vpack.c.bf16 %v3887_v37, %v3886_v54 }
 0x5ce   : > { %v3822_v38 = vsel %vm3694_vm3, %v3630_v11, %v3758_v13  ;;  %v3632_v2 = vmax.f32 %v3562_v27, 0.0  ;;  %v3889_v7 = vmul.f32 %v7618_v34, %v3823_v60 }
 0x5cf   : > { %vm3697_vm4 = vcmp.ge.f32.partialorder %v3633_v59, 0.0  ;;  %v3761_v22 = vmul.f32 0.01, %v3633_v59  ;;  %5698 = vmatprep.subr.bf16.mxu1 %v5697_v18  ;;  %v3888_v29 = vmul.f32 %v7618_v34, %v3822_v38 }
 0x5d0   : > { %vm3696_vm5 = vcmp.ge.f32.partialorder %v3632_v2, 0.0  ;;  %v3760_v17 = vmul.f32 0.01, %v3632_v2  ;;  %5700 = vmatpush3.bf16.msra.mxu1 %v5699_v24 }
 0x5d1   : > { %v3825_v1 = vsel %vm3697_vm4, %v3633_v59, %v3761_v22  ;;  %v5701_v63 = vpack.c.bf16 %v3889_v7, %v3888_v29 }
 0x5d2   : > { %v3824_v56 = vsel %vm3696_vm5, %v3632_v2, %v3760_v17  ;;  %v3891_v26 = vmul.f32 %v7618_v34, %v3825_v1 }
 0x5d3   : > { %5702 = vmatprep.subr.bf16.mxu1 %v5701_v63  ;;  %v3890_v14 = vmul.f32 %v7618_v34, %v3824_v56 }
 0x5d4   : > { %5704 = vmatpush3.bf16.msra.mxu1 %v5703_v8 }
 0x5d5   : > { %v5705_v31 = vpack.c.bf16 %v3891_v26, %v3890_v14 }
 0x5d7   : > { %5706 = vmatprep.subr.bf16.mxu1 %v5705_v31 }
 0x5d8   : > { %5708 = vmatpush3.bf16.msra.mxu1 %v5707_v62 }
 0x5db   : > { %4485 = vmatmul.mubr.msk.f32.vlgmr.msra.gmra.mrb[154].mxu1 %vm8048_vm10, %v6339_v45 }
 0x5dc   : > { %4486 = vmatprep.mubr.msk.f32.mxu1 %vm8049_vm9, %v6339_v45 }
 0x5df   : > { %4487 = vmatmul.mubr.msk.f32.gmra.mrb[156].mxu1 %vm8050_vm8, %v6339_v45 }
 0x66c   : > { %v4903_v34 = vpop.f32.mrb[150].mxu1 }
 0x66d   : > { %v4904_v20 = vpop.f32.mrb[151].mxu1 }
 0x66e   : > { %v4905_v48 = vadd.f32 %v4904_v20, %v4903_v34 }
 0x670   : > { %v4906_v24 = vpop.f32.mrb[152].mxu1 }
 0x671   : > { %v4907_v52 = vpop.f32.mrb[153].mxu1 }
 0x672   : > { %v4908_v12 = vadd.f32 %v4907_v52, %v4906_v24 }
 0x6ae   : > { %v4941_v4 = vpop.f32.mrb[154].mxu1 }
 0x6af   : > { %v4942_v8 = vpop.f32.mrb[155].mxu1 }
 0x6b0   : > { %v4943_v16 = vadd.f32 %v4942_v8, %v4941_v4 }
 0x6b2   : > { %v4052_v49 = vadd.f32 %v4943_v16, %v4905_v48  ;;  %v4944_v53 = vpop.f32.mrb[156].mxu1 }
 0x6b3   : > { %v4945_v62 = vpop.f32.mrb[157].mxu1 }
 0x6b4   : > { %v4946_v19 = vadd.f32 %v4945_v62, %v4944_v53  ;;  %4062 = vst [vmem:[%s405_s1] sm:$0xff] %v4052_v49 }
 0x6b6   : > { %v4057_v15 = vadd.f32 %v4946_v19, %v4908_v12 }
 0x6b8   : > { %4063 = vst [vmem:[%s405_s1 + $0x8] sm:$0xff] %v4057_v15 }
 0x6b9   : > { %6243 = shalt.err (!%p6240_p3)
}
 0x6ba   : > { %s6244_s8 = scalar_lea.hbm %s7924_s17, 256  ;;  %s6248_s22 = scalar_lea.hbm %s7982_s7, 512 }
 0x6bb   : > { %p6245_p10 = scmp.ne.s32.totalorder %s7924_s17, %s6244_s8  ;;  %p6249_p8 = scmp.lt.u32.totalorder %s7924_s17, %s7982_s7 }
 0x6bc   : > { %p6250_p5 = scmp.lt.u32.totalorder %s6248_s22, %s6244_s8  ;;  %p6252_p9 = scmp.lt.u32.totalorder %s6244_s8, %s7924_s17 }
 0x6bd   : > { %p6246_p2 = pnand %p6245_p10, %p8051_p11 }
 0x6be   : > { %p6251_p6 = por %p6250_p5, %p6249_p8 }
 0x6bf   : > { %p6247_p1 = pneg %p6246_p2 }
 0x6c0   : > { %p6253_p13 = por %p6252_p9, %p6251_p6 }
 0x6c2   : > { %p6254_p4 = pnand %p6253_p13, %p6247_p1 }
 0x6c4   : > { %6257 = shalt.err (!%p6254_p4)
}
 0x6c5   : > { %s6341_s3 = smov 128   ;;  %s6342_s30 = smov 8  }
 0x6c6   : > { %5795 = dma.vmem_to_hbm [thread:$0]  (%p8051_p11), %s7926_s10, 256, %s7924_s17, %s4065_s11, %s6341_s3, %s6341_s3, %s6342_s30  }
 0x6c7 PF: > { %s4093_s1 = sand.u32 1, %s6308_s24   ;;  %p8052_p12 = scmp.ne.s32.totalorder %s8013_s21, 0 }
 0x6c8   : > { %p8053_p7 = scmp.ge.s32.totalorder %s6328_s29, 2  ;;  %s4094_s16 = scalar_lea.sflag [#allocation4], %s4093_s1 }
 0x6ca   : > { %p5818_p0 = pnand %p8053_p7, %p8052_p12 }
 0x6cc   : > { %6303 = dma.done.wait (!%p5818_p0), %s4094_s16, 256  }
 0x6cd   : > { %6305 = vsyncadd (!%p5818_p0), %s4094_s16, 4294967040  ;;  %s28_s29 = sadd.s32 1, %s6328_s29   ;;  %s8054_s24 = smov %s6312_s25 }
 0x6ce   : > { %p25_p3 = scmp.ge.s32.totalorder %s28_s29, 4   ;;  %s8055_s25 = smov %s6316_s26 }
 0x6cf   : > { %s8056_s26 = smov %s6559_s20  ;;  %s8057_s27 = smov %s6324_s28 }
 0x6d0   : > { %s8058_s28 = smov %s8060_s19  ;;  %27 = sbr.rel (!%p25_p3) target bundleno = 16 (0x10), region = 138 }
 0x6d7   :  { %4099 = vsyncpa [#allocation3], 1 }
 0x6d8   :  { %4101 = vsyncpa [#allocation3 + $0x1], 1 }
 0x6d9   :  { %4102 = vsyncpa [#allocation8], 1 }
 0x6da   :  { %4104 = vsyncpa [#allocation8 + $0x1], 1 }
 0x6db   :  { %4105 = vsyncpa [#allocation11], 1 }
 0x6dc   :  { %4106 = vsyncpa [#allocation4], 1 }
 0x6dd   :  { %4108 = vsyncpa [#allocation4 + $0x1], 1 }
 0x6de   :  { %4109 = vsyncpa [#allocation5], 1 }
 0x6df   :  { %4111 = vsyncpa [#allocation5 + $0x1], 1 }

</bundles_post_ra>
